<compile_context>
chip_gen: v7x
topology: tpu7x:2x2x1
jax: 0.10.0
libtpu: 0.0.40
codegen_flags: <defaults>
</compile_context>

<pallas_src>
import jax
import jax.numpy as jnp
from jax import lax
from jax.experimental import pallas as pl
from jax.experimental.pallas import tpu as pltpu


# ----------------------------- geometry (LeNet on 32x32 RGB) ----------------- #
KH = KW = 5
CIN, C1, C2 = 3, 6, 16
H1, W1S = 32, 32                               # stage-1 spatial / row stride
HO1, WO1 = H1 - KH + 1, W1S - KW + 1           # 28, 28
HP1, WP1 = HO1 // 2, WO1 // 2                  # 14, 14
W2S = WP1                                      # 14: stage-2 row stride
HO2, WO2 = HP1 - KH + 1, WP1 - KW + 1          # 10, 10
HP2, WP2 = HO2 // 2, WO2 // 2                  # 5, 5

K1 = KH * KW * CIN                             # 75  : conv1 contraction depth
K2 = KH * KW * C1                              # 150 : conv2 contraction depth
L1 = H1 * W1S - ((KH - 1) * W1S + (KW - 1))    # 892 : conv1 shifted-slice length
LP1 = L1 - (W1S + 1)                           # 859 : pool1 anchor length
P1N = HP1 * WP1                                # 196 : pooled stage-1 map size
L2 = HP1 * W2S - ((KH - 1) * W2S + (KW - 1))   # 136 : conv2 shifted-slice length
LP2 = L2 - (W2S + 1)                           # 121 : pool2 anchor length
P2N = HP2 * WP2                                # 25  : pooled stage-2 map size

NFEAT = C2 * HP2 * WP2                         # 400
NPAD = 128                                     # lane-dense FC / logits width
NUM_CLASSES = 10

_TAPS = [(i, j) for i in range(KH) for j in range(KW)]


# --------------------------------- fused kernel ------------------------------- #

def _lenet_kernel(x_ref, w1_ref, b1_ref, s1_ref, w2_ref, b2_ref, s2_ref,
                  fw1_ref, fb1_ref, fw2_ref, fb2_ref, fw3_ref, fb3_ref,
                  o_ref, col1_ref, col2_ref, flat_ref):
    """Full LeNet forward for one image (grid axis = batch, 'parallel')."""
    x = x_ref[0]                                              # [3, 1024]

    # conv1: stack the 25 taps along the contraction axis -> ONE matmul, K=75.
    for t, (i, j) in enumerate(_TAPS):
        off = i * W1S + j
        col1_ref[t * CIN:(t + 1) * CIN, :] = x[:, off:off + L1]
    acc1 = jnp.dot(w1_ref[...], col1_ref[...],
                   preferred_element_type=jnp.float32)        # [6, 892]
    acc1 = jnp.maximum(acc1 + b1_ref[...], 0.0)

    # pool1: 2x2/2 max = max of 4 lane-shifted views, then a constant 0/1
    # selection matmul performs the stride-2 downsample + relayout to stride 14.
    m1 = jnp.maximum(
        jnp.maximum(acc1[:, 0:LP1], acc1[:, 1:1 + LP1]),
        jnp.maximum(acc1[:, W1S:W1S + LP1], acc1[:, W1S + 1:W1S + 1 + LP1]))
    p1 = jnp.dot(m1, s1_ref[...], preferred_element_type=jnp.float32)    # [6, 196]

    # conv2 (row stride 14): same single-matmul scheme, K=150.
    for t, (i, j) in enumerate(_TAPS):
        off = i * W2S + j
        col2_ref[t * C1:(t + 1) * C1, :] = p1[:, off:off + L2]
    acc2 = jnp.dot(w2_ref[...], col2_ref[...],
                   preferred_element_type=jnp.float32)        # [16, 136]
    acc2 = jnp.maximum(acc2 + b2_ref[...], 0.0)

    # pool2 + downsample to [16, 25] (row = channel, lane = 5*ph + pw).
    m2 = jnp.maximum(
        jnp.maximum(acc2[:, 0:LP2], acc2[:, 1:1 + LP2]),
        jnp.maximum(acc2[:, W2S:W2S + LP2], acc2[:, W2S + 1:W2S + 1 + LP2]))
    p2 = jnp.dot(m2, s2_ref[...], preferred_element_type=jnp.float32)    # [16, 25]

    # in-kernel flatten ('b c h w -> b (c h w)'): 16 sub-row copies into a
    # lane-contiguous [1, 400] scratch (no XLA reshape, no HBM round trip).
    for c in range(C2):
        flat_ref[0:1, c * P2N:(c + 1) * P2N] = p2[c:c + 1, :]

    # FC head: weights pre-transposed and zero-padded to 128 lanes at prep time.
    h = jnp.dot(flat_ref[...], fw1_ref[...], preferred_element_type=jnp.float32)
    h = jnp.maximum(h + fb1_ref[...], 0.0)
    h = jnp.dot(h, fw2_ref[...], preferred_element_type=jnp.float32)
    h = jnp.maximum(h + fb2_ref[...], 0.0)
    o_ref[0] = (jnp.dot(h, fw3_ref[...], preferred_element_type=jnp.float32)
                + fb3_ref[...])                               # [1, 128] lane-dense


# ------------------------------ kernel wrapper -------------------------------- #

def lenet_forward(x, prep):
    conv_prep, fc_prep = prep
    w1mat, b1col, s1, w2mat, b2col, s2 = conv_prep
    fw1p, fb1p, fw2p, fb2p, fw3p, fb3p = fc_prep
    B = x.shape[0]
    x3 = x.reshape(B, CIN, H1 * W1S)             # contiguous NCHW reshape (cheap)

    flops = 2 * B * (C1 * K1 * L1 + C1 * LP1 * P1N + C2 * K2 * L2 + C2 * LP2 * P2N
                     + NFEAT * NPAD + 2 * NPAD * NPAD)
    const_bytes = 4 * (C1 * K1 + C1 + LP1 * P1N + C2 * K2 + C2 + LP2 * P2N
                       + NFEAT * NPAD + 2 * NPAD * NPAD + 3 * NPAD)
    bytes_accessed = 4 * B * (CIN * H1 * W1S + NPAD) + const_bytes

    def full(shape):   # whole-array block, fetched once (constant index map)
        return pl.BlockSpec(shape, lambda b, _s=len(shape): (0,) * _s)

    out = pl.pallas_call(
        _lenet_kernel,
        out_shape=jax.ShapeDtypeStruct((B, 1, NPAD), jnp.float32),
        grid_spec=pltpu.PrefetchScalarGridSpec(
            num_scalar_prefetch=0,
            grid=(B,),
            in_specs=[
                pl.BlockSpec((1, CIN, H1 * W1S), lambda b: (b, 0, 0)),  # per-image
                full((C1, K1)), full((C1, 1)), full((LP1, P1N)),
                full((C2, K2)), full((C2, 1)), full((LP2, P2N)),
                full((NFEAT, NPAD)), full((1, NPAD)),
                full((NPAD, NPAD)), full((1, NPAD)),
                full((NPAD, NPAD)), full((1, NPAD)),
            ],
            out_specs=pl.BlockSpec((1, 1, NPAD), lambda b: (b, 0, 0)),
            scratch_shapes=[
                pltpu.VMEM((K1, L1), jnp.float32),    # conv1 tap-stacked im2col
                pltpu.VMEM((K2, L2), jnp.float32),    # conv2 tap-stacked im2col
                pltpu.VMEM((1, NFEAT), jnp.float32),  # flattened fc1 input
            ],
        ),
        compiler_params=pltpu.CompilerParams(dimension_semantics=("parallel",)),
        cost_estimate=pl.CostEstimate(flops=flops, transcendentals=0,
                                      bytes_accessed=bytes_accessed),
    )(x3, w1mat, b1col, s1, w2mat, b2col, s2, fw1p, fb1p, fw2p, fb2p, fw3p, fb3p)
    return out[:, 0, :NUM_CLASSES]


# ----------------------- one-time parameter preparation ---------------------- #

def prepare_params(params):
    """Batch-independent weight packing, hoisted out of the forward path."""
    (w1, b1, w2, b2, fw1, fb1, fw2, fb2, fw3, fb3) = params

    # Conv weights: OIHW -> [O, (kh kw i)], matching the tap-stacked im2col rows.
    w1mat = jnp.transpose(w1, (0, 2, 3, 1)).reshape(C1, K1)
    w2mat = jnp.transpose(w2, (0, 2, 3, 1)).reshape(C2, K2)
    b1col = b1.reshape(C1, 1)
    b2col = b2.reshape(C2, 1)

    # Constant 0/1 stride-2 downsample / relayout selection matrices.
    ho, wo = jnp.meshgrid(jnp.arange(HP1), jnp.arange(WP1), indexing="ij")
    s1 = jnp.zeros((LP1, P1N), jnp.float32).at[
        (2 * ho * W1S + 2 * wo).ravel(), (ho * WP1 + wo).ravel()].set(1.0)
    ph, pw = jnp.meshgrid(jnp.arange(HP2), jnp.arange(WP2), indexing="ij")
    s2 = jnp.zeros((LP2, P2N), jnp.float32).at[
        (2 * ph * W2S + 2 * pw).ravel(), (ph * WP2 + pw).ravel()].set(1.0)

    def pad2(a, rows, cols):
        return jnp.zeros((rows, cols), jnp.float32).at[:a.shape[0], :a.shape[1]].set(a)

    fc_prep = (pad2(fw1.T, NFEAT, NPAD), pad2(fb1[None, :], 1, NPAD),
               pad2(fw2.T, NPAD, NPAD),  pad2(fb2[None, :], 1, NPAD),
               pad2(fw3.T, NPAD, NPAD),  pad2(fb3[None, :], 1, NPAD))
    conv_prep = (w1mat, b1col, s1, w2mat, b2col, s2)
    return conv_prep, fc_prep


# ----------------------------- pure-JAX reference ----------------------------- #

def ref_forward(x, params):
    (w1, b1, w2, b2, fw1, fb1, fw2, fb2, fw3, fb3) = params
    hi = lax.Precision.HIGHEST

    def conv(x, w, b):
        y = lax.conv_general_dilated(x, w, (1, 1), 'VALID',
                                     dimension_numbers=('NCHW', 'OIHW', 'NCHW'),
                                     precision=hi)
        return jax.nn.relu(y + b[None, :, None, None])

    def pool(x):
        return lax.reduce_window(x, -jnp.inf, lax.max, (1, 1, 2, 2), (1, 1, 2, 2),
                                 'VALID')

    y = pool(conv(x, w1, b1))
    y = pool(conv(y, w2, b2))
    y = y.reshape(y.shape[0], -1)
    y = jax.nn.relu(jnp.dot(y, fw1.T, precision=hi) + fb1)
    y = jax.nn.relu(jnp.dot(y, fw2.T, precision=hi) + fb2)
    return jnp.dot(y, fw3.T, precision=hi) + fb3


# ----------------------------------- params ----------------------------------- #

def init_params(key):
    def uniform(key, shape, fan_in):
        bound = 1.0 / jnp.sqrt(float(fan_in))
        return jax.random.uniform(key, shape, jnp.float32, -bound, bound)

    ks = jax.random.split(key, 10)
    w1 = uniform(ks[0], (C1, CIN, KH, KW), CIN * KH * KW)
    b1 = uniform(ks[1], (C1,), CIN * KH * KW)
    w2 = uniform(ks[2], (C2, C1, KH, KW), C1 * KH * KW)
    b2 = uniform(ks[3], (C2,), C1 * KH * KW)
    fw1 = uniform(ks[4], (120, NFEAT), NFEAT)
    fb1 = uniform(ks[5], (120,), NFEAT)
    fw2 = uniform(ks[6], (84, 120), 120)
    fb2 = uniform(ks[7], (84,), 120)
    fw3 = uniform(ks[8], (10, 84), 84)
    fb3 = uniform(ks[9], (10,), 84)
    return (w1, b1, w2, b2, fw1, fb1, fw2, fb2, fw3, fb3)


# ------------------------------------ main ------------------------------------ #

if __name__ == "__main__":
    key = jax.random.PRNGKey(0)
    kx, kp = jax.random.split(key)

    # 32x32 input is implied by the 16*5*5 flatten in the module.
    x = jax.random.normal(kx, (2, CIN, H1, W1S), jnp.float32)
    params = init_params(kp)
    prep = prepare_params(params)            # batch-independent weight packing

    fwd = jax.jit(lenet_forward)
    out = jax.block_until_ready(fwd(x, prep))
    assert out.shape == (2, NUM_CLASSES)

    ref = ref_forward(x, params)
    assert jnp.allclose(out, ref, rtol=1e-4, atol=1e-5), (
        "mismatch vs JAX reference, max abs err = "
        f"{jnp.max(jnp.abs(out - ref))}")
    print("KERNEL_OK")
</pallas_src>

<mosaic_0001>
module attributes {stable_mosaic.version = 11 : i64} {
  func.func @_lenet_kernel(%arg0: i32, %arg1: memref<1x3x1024xf32, #tpu.memory_space<vmem>>, %arg2: memref<6x75xf32, #tpu.memory_space<vmem>>, %arg3: memref<6x1xf32, #tpu.memory_space<vmem>>, %arg4: memref<859x196xf32, #tpu.memory_space<vmem>>, %arg5: memref<16x150xf32, #tpu.memory_space<vmem>>, %arg6: memref<16x1xf32, #tpu.memory_space<vmem>>, %arg7: memref<121x25xf32, #tpu.memory_space<vmem>>, %arg8: memref<400x128xf32, #tpu.memory_space<vmem>>, %arg9: memref<1x128xf32, #tpu.memory_space<vmem>>, %arg10: memref<128x128xf32, #tpu.memory_space<vmem>>, %arg11: memref<1x128xf32, #tpu.memory_space<vmem>>, %arg12: memref<128x128xf32, #tpu.memory_space<vmem>>, %arg13: memref<1x128xf32, #tpu.memory_space<vmem>>, %arg14: memref<1x1x128xf32, #tpu.memory_space<vmem>>, %arg15: memref<75x892xf32, #tpu.memory_space<vmem>>, %arg16: memref<150x136xf32, #tpu.memory_space<vmem>>, %arg17: memref<1x400xf32, #tpu.memory_space<vmem>>) attributes {dimension_semantics = [#tpu.dimension_semantics<parallel>], iteration_bounds = array<i64: 2>, scalar_prefetch = 0 : i64, scratch_operands = 3 : i64, tpu.core_type = #tpu.core_type<tc>, window_params = [{transform_indices = @transform_0, window_bounds = array<i64: 1, 3, 1024>}, {pipeline_mode = #tpu.pipeline_mode<synchronous>, transform_indices = @transform_1, window_bounds = array<i64: 6, 75>}, {pipeline_mode = #tpu.pipeline_mode<synchronous>, transform_indices = @transform_2, window_bounds = array<i64: 6, 1>}, {pipeline_mode = #tpu.pipeline_mode<synchronous>, transform_indices = @transform_3, window_bounds = array<i64: 859, 196>}, {pipeline_mode = #tpu.pipeline_mode<synchronous>, transform_indices = @transform_4, window_bounds = array<i64: 16, 150>}, {pipeline_mode = #tpu.pipeline_mode<synchronous>, transform_indices = @transform_5, window_bounds = array<i64: 16, 1>}, {pipeline_mode = #tpu.pipeline_mode<synchronous>, transform_indices = @transform_6, window_bounds = array<i64: 121, 25>}, {pipeline_mode = #tpu.pipeline_mode<synchronous>, transform_indices = @transform_7, window_bounds = array<i64: 400, 128>}, {pipeline_mode = #tpu.pipeline_mode<synchronous>, transform_indices = @transform_8, window_bounds = array<i64: 1, 128>}, {pipeline_mode = #tpu.pipeline_mode<synchronous>, transform_indices = @transform_9, window_bounds = array<i64: 128, 128>}, {pipeline_mode = #tpu.pipeline_mode<synchronous>, transform_indices = @transform_10, window_bounds = array<i64: 1, 128>}, {pipeline_mode = #tpu.pipeline_mode<synchronous>, transform_indices = @transform_11, window_bounds = array<i64: 128, 128>}, {pipeline_mode = #tpu.pipeline_mode<synchronous>, transform_indices = @transform_12, window_bounds = array<i64: 1, 128>}, {transform_indices = @transform_13, window_bounds = array<i64: 1, 1, 128>}]} {
    %c0 = arith.constant 0 : index
    %c0_0 = arith.constant 0 : index
    %c0_1 = arith.constant 0 : index
    %0 = vector.load %arg1[%c0, %c0_0, %c0_1] : memref<1x3x1024xf32, #tpu.memory_space<vmem>>, vector<1x3x1024xf32>
    %1 = vector.shape_cast %0 : vector<1x3x1024xf32> to vector<3x1024xf32>
    %2 = vector.extract_strided_slice %1 {offsets = [0, 0], sizes = [3, 892], strides = [1, 1]} : vector<3x1024xf32> to vector<3x892xf32>
    %c0_2 = arith.constant 0 : index
    %c0_3 = arith.constant 0 : index
    %3 = vector.load %arg15[%c0_2, %c0_3] : memref<75x892xf32, #tpu.memory_space<vmem>>, vector<3x892xf32>
    tpu.vector_store %arg15[%c0_2, %c0_3], %2 {strides = array<i32>} : memref<75x892xf32, #tpu.memory_space<vmem>>, vector<3x892xf32>,
    %4 = vector.extract_strided_slice %1 {offsets = [0, 1], sizes = [3, 892], strides = [1, 1]} : vector<3x1024xf32> to vector<3x892xf32>
    %c3 = arith.constant 3 : index
    %c0_4 = arith.constant 0 : index
    %5 = vector.load %arg15[%c3, %c0_4] : memref<75x892xf32, #tpu.memory_space<vmem>>, vector<3x892xf32>
    tpu.vector_store %arg15[%c3, %c0_4], %4 {strides = array<i32>} : memref<75x892xf32, #tpu.memory_space<vmem>>, vector<3x892xf32>,
    %6 = vector.extract_strided_slice %1 {offsets = [0, 2], sizes = [3, 892], strides = [1, 1]} : vector<3x1024xf32> to vector<3x892xf32>
    %c6 = arith.constant 6 : index
    %c0_5 = arith.constant 0 : index
    %7 = vector.load %arg15[%c6, %c0_5] : memref<75x892xf32, #tpu.memory_space<vmem>>, vector<3x892xf32>
    tpu.vector_store %arg15[%c6, %c0_5], %6 {strides = array<i32>} : memref<75x892xf32, #tpu.memory_space<vmem>>, vector<3x892xf32>,
    %8 = vector.extract_strided_slice %1 {offsets = [0, 3], sizes = [3, 892], strides = [1, 1]} : vector<3x1024xf32> to vector<3x892xf32>
    %c9 = arith.constant 9 : index
    %c0_6 = arith.constant 0 : index
    %9 = vector.load %arg15[%c9, %c0_6] : memref<75x892xf32, #tpu.memory_space<vmem>>, vector<3x892xf32>
    tpu.vector_store %arg15[%c9, %c0_6], %8 {strides = array<i32>} : memref<75x892xf32, #tpu.memory_space<vmem>>, vector<3x892xf32>,
    %10 = vector.extract_strided_slice %1 {offsets = [0, 4], sizes = [3, 892], strides = [1, 1]} : vector<3x1024xf32> to vector<3x892xf32>
    %c12 = arith.constant 12 : index
    %c0_7 = arith.constant 0 : index
    %11 = vector.load %arg15[%c12, %c0_7] : memref<75x892xf32, #tpu.memory_space<vmem>>, vector<3x892xf32>
    tpu.vector_store %arg15[%c12, %c0_7], %10 {strides = array<i32>} : memref<75x892xf32, #tpu.memory_space<vmem>>, vector<3x892xf32>,
    %12 = vector.extract_strided_slice %1 {offsets = [0, 32], sizes = [3, 892], strides = [1, 1]} : vector<3x1024xf32> to vector<3x892xf32>
    %c15 = arith.constant 15 : index
    %c0_8 = arith.constant 0 : index
    %13 = vector.load %arg15[%c15, %c0_8] : memref<75x892xf32, #tpu.memory_space<vmem>>, vector<3x892xf32>
    tpu.vector_store %arg15[%c15, %c0_8], %12 {strides = array<i32>} : memref<75x892xf32, #tpu.memory_space<vmem>>, vector<3x892xf32>,
    %14 = vector.extract_strided_slice %1 {offsets = [0, 33], sizes = [3, 892], strides = [1, 1]} : vector<3x1024xf32> to vector<3x892xf32>
    %c18 = arith.constant 18 : index
    %c0_9 = arith.constant 0 : index
    %15 = vector.load %arg15[%c18, %c0_9] : memref<75x892xf32, #tpu.memory_space<vmem>>, vector<3x892xf32>
    tpu.vector_store %arg15[%c18, %c0_9], %14 {strides = array<i32>} : memref<75x892xf32, #tpu.memory_space<vmem>>, vector<3x892xf32>,
    %16 = vector.extract_strided_slice %1 {offsets = [0, 34], sizes = [3, 892], strides = [1, 1]} : vector<3x1024xf32> to vector<3x892xf32>
    %c21 = arith.constant 21 : index
    %c0_10 = arith.constant 0 : index
    %17 = vector.load %arg15[%c21, %c0_10] : memref<75x892xf32, #tpu.memory_space<vmem>>, vector<3x892xf32>
    tpu.vector_store %arg15[%c21, %c0_10], %16 {strides = array<i32>} : memref<75x892xf32, #tpu.memory_space<vmem>>, vector<3x892xf32>,
    %18 = vector.extract_strided_slice %1 {offsets = [0, 35], sizes = [3, 892], strides = [1, 1]} : vector<3x1024xf32> to vector<3x892xf32>
    %c24 = arith.constant 24 : index
    %c0_11 = arith.constant 0 : index
    %19 = vector.load %arg15[%c24, %c0_11] : memref<75x892xf32, #tpu.memory_space<vmem>>, vector<3x892xf32>
    tpu.vector_store %arg15[%c24, %c0_11], %18 {strides = array<i32>} : memref<75x892xf32, #tpu.memory_space<vmem>>, vector<3x892xf32>,
    %20 = vector.extract_strided_slice %1 {offsets = [0, 36], sizes = [3, 892], strides = [1, 1]} : vector<3x1024xf32> to vector<3x892xf32>
    %c27 = arith.constant 27 : index
    %c0_12 = arith.constant 0 : index
    %21 = vector.load %arg15[%c27, %c0_12] : memref<75x892xf32, #tpu.memory_space<vmem>>, vector<3x892xf32>
    tpu.vector_store %arg15[%c27, %c0_12], %20 {strides = array<i32>} : memref<75x892xf32, #tpu.memory_space<vmem>>, vector<3x892xf32>,
    %22 = vector.extract_strided_slice %1 {offsets = [0, 64], sizes = [3, 892], strides = [1, 1]} : vector<3x1024xf32> to vector<3x892xf32>
    %c30 = arith.constant 30 : index
    %c0_13 = arith.constant 0 : index
    %23 = vector.load %arg15[%c30, %c0_13] : memref<75x892xf32, #tpu.memory_space<vmem>>, vector<3x892xf32>
    tpu.vector_store %arg15[%c30, %c0_13], %22 {strides = array<i32>} : memref<75x892xf32, #tpu.memory_space<vmem>>, vector<3x892xf32>,
    %24 = vector.extract_strided_slice %1 {offsets = [0, 65], sizes = [3, 892], strides = [1, 1]} : vector<3x1024xf32> to vector<3x892xf32>
    %c33 = arith.constant 33 : index
    %c0_14 = arith.constant 0 : index
    %25 = vector.load %arg15[%c33, %c0_14] : memref<75x892xf32, #tpu.memory_space<vmem>>, vector<3x892xf32>
    tpu.vector_store %arg15[%c33, %c0_14], %24 {strides = array<i32>} : memref<75x892xf32, #tpu.memory_space<vmem>>, vector<3x892xf32>,
    %26 = vector.extract_strided_slice %1 {offsets = [0, 66], sizes = [3, 892], strides = [1, 1]} : vector<3x1024xf32> to vector<3x892xf32>
    %c36 = arith.constant 36 : index
    %c0_15 = arith.constant 0 : index
    %27 = vector.load %arg15[%c36, %c0_15] : memref<75x892xf32, #tpu.memory_space<vmem>>, vector<3x892xf32>
    tpu.vector_store %arg15[%c36, %c0_15], %26 {strides = array<i32>} : memref<75x892xf32, #tpu.memory_space<vmem>>, vector<3x892xf32>,
    %28 = vector.extract_strided_slice %1 {offsets = [0, 67], sizes = [3, 892], strides = [1, 1]} : vector<3x1024xf32> to vector<3x892xf32>
    %c39 = arith.constant 39 : index
    %c0_16 = arith.constant 0 : index
    %29 = vector.load %arg15[%c39, %c0_16] : memref<75x892xf32, #tpu.memory_space<vmem>>, vector<3x892xf32>
    tpu.vector_store %arg15[%c39, %c0_16], %28 {strides = array<i32>} : memref<75x892xf32, #tpu.memory_space<vmem>>, vector<3x892xf32>,
    %30 = vector.extract_strided_slice %1 {offsets = [0, 68], sizes = [3, 892], strides = [1, 1]} : vector<3x1024xf32> to vector<3x892xf32>
    %c42 = arith.constant 42 : index
    %c0_17 = arith.constant 0 : index
    %31 = vector.load %arg15[%c42, %c0_17] : memref<75x892xf32, #tpu.memory_space<vmem>>, vector<3x892xf32>
    tpu.vector_store %arg15[%c42, %c0_17], %30 {strides = array<i32>} : memref<75x892xf32, #tpu.memory_space<vmem>>, vector<3x892xf32>,
    %32 = vector.extract_strided_slice %1 {offsets = [0, 96], sizes = [3, 892], strides = [1, 1]} : vector<3x1024xf32> to vector<3x892xf32>
    %c45 = arith.constant 45 : index
    %c0_18 = arith.constant 0 : index
    %33 = vector.load %arg15[%c45, %c0_18] : memref<75x892xf32, #tpu.memory_space<vmem>>, vector<3x892xf32>
    tpu.vector_store %arg15[%c45, %c0_18], %32 {strides = array<i32>} : memref<75x892xf32, #tpu.memory_space<vmem>>, vector<3x892xf32>,
    %34 = vector.extract_strided_slice %1 {offsets = [0, 97], sizes = [3, 892], strides = [1, 1]} : vector<3x1024xf32> to vector<3x892xf32>
    %c48 = arith.constant 48 : index
    %c0_19 = arith.constant 0 : index
    %35 = vector.load %arg15[%c48, %c0_19] : memref<75x892xf32, #tpu.memory_space<vmem>>, vector<3x892xf32>
    tpu.vector_store %arg15[%c48, %c0_19], %34 {strides = array<i32>} : memref<75x892xf32, #tpu.memory_space<vmem>>, vector<3x892xf32>,
    %36 = vector.extract_strided_slice %1 {offsets = [0, 98], sizes = [3, 892], strides = [1, 1]} : vector<3x1024xf32> to vector<3x892xf32>
    %c51 = arith.constant 51 : index
    %c0_20 = arith.constant 0 : index
    %37 = vector.load %arg15[%c51, %c0_20] : memref<75x892xf32, #tpu.memory_space<vmem>>, vector<3x892xf32>
    tpu.vector_store %arg15[%c51, %c0_20], %36 {strides = array<i32>} : memref<75x892xf32, #tpu.memory_space<vmem>>, vector<3x892xf32>,
    %38 = vector.extract_strided_slice %1 {offsets = [0, 99], sizes = [3, 892], strides = [1, 1]} : vector<3x1024xf32> to vector<3x892xf32>
    %c54 = arith.constant 54 : index
    %c0_21 = arith.constant 0 : index
    %39 = vector.load %arg15[%c54, %c0_21] : memref<75x892xf32, #tpu.memory_space<vmem>>, vector<3x892xf32>
    tpu.vector_store %arg15[%c54, %c0_21], %38 {strides = array<i32>} : memref<75x892xf32, #tpu.memory_space<vmem>>, vector<3x892xf32>,
    %40 = vector.extract_strided_slice %1 {offsets = [0, 100], sizes = [3, 892], strides = [1, 1]} : vector<3x1024xf32> to vector<3x892xf32>
    %c57 = arith.constant 57 : index
    %c0_22 = arith.constant 0 : index
    %41 = vector.load %arg15[%c57, %c0_22] : memref<75x892xf32, #tpu.memory_space<vmem>>, vector<3x892xf32>
    tpu.vector_store %arg15[%c57, %c0_22], %40 {strides = array<i32>} : memref<75x892xf32, #tpu.memory_space<vmem>>, vector<3x892xf32>,
    %42 = vector.extract_strided_slice %1 {offsets = [0, 128], sizes = [3, 892], strides = [1, 1]} : vector<3x1024xf32> to vector<3x892xf32>
    %c60 = arith.constant 60 : index
    %c0_23 = arith.constant 0 : index
    %43 = vector.load %arg15[%c60, %c0_23] : memref<75x892xf32, #tpu.memory_space<vmem>>, vector<3x892xf32>
    tpu.vector_store %arg15[%c60, %c0_23], %42 {strides = array<i32>} : memref<75x892xf32, #tpu.memory_space<vmem>>, vector<3x892xf32>,
    %44 = vector.extract_strided_slice %1 {offsets = [0, 129], sizes = [3, 892], strides = [1, 1]} : vector<3x1024xf32> to vector<3x892xf32>
    %c63 = arith.constant 63 : index
    %c0_24 = arith.constant 0 : index
    %45 = vector.load %arg15[%c63, %c0_24] : memref<75x892xf32, #tpu.memory_space<vmem>>, vector<3x892xf32>
    tpu.vector_store %arg15[%c63, %c0_24], %44 {strides = array<i32>} : memref<75x892xf32, #tpu.memory_space<vmem>>, vector<3x892xf32>,
    %46 = vector.extract_strided_slice %1 {offsets = [0, 130], sizes = [3, 892], strides = [1, 1]} : vector<3x1024xf32> to vector<3x892xf32>
    %c66 = arith.constant 66 : index
    %c0_25 = arith.constant 0 : index
    %47 = vector.load %arg15[%c66, %c0_25] : memref<75x892xf32, #tpu.memory_space<vmem>>, vector<3x892xf32>
    tpu.vector_store %arg15[%c66, %c0_25], %46 {strides = array<i32>} : memref<75x892xf32, #tpu.memory_space<vmem>>, vector<3x892xf32>,
    %48 = vector.extract_strided_slice %1 {offsets = [0, 131], sizes = [3, 892], strides = [1, 1]} : vector<3x1024xf32> to vector<3x892xf32>
    %c69 = arith.constant 69 : index
    %c0_26 = arith.constant 0 : index
    %49 = vector.load %arg15[%c69, %c0_26] : memref<75x892xf32, #tpu.memory_space<vmem>>, vector<3x892xf32>
    tpu.vector_store %arg15[%c69, %c0_26], %48 {strides = array<i32>} : memref<75x892xf32, #tpu.memory_space<vmem>>, vector<3x892xf32>,
    %50 = vector.extract_strided_slice %1 {offsets = [0, 132], sizes = [3, 892], strides = [1, 1]} : vector<3x1024xf32> to vector<3x892xf32>
    %c72 = arith.constant 72 : index
    %c0_27 = arith.constant 0 : index
    %51 = vector.load %arg15[%c72, %c0_27] : memref<75x892xf32, #tpu.memory_space<vmem>>, vector<3x892xf32>
    tpu.vector_store %arg15[%c72, %c0_27], %50 {strides = array<i32>} : memref<75x892xf32, #tpu.memory_space<vmem>>, vector<3x892xf32>,
    %c0_28 = arith.constant 0 : index
    %c0_29 = arith.constant 0 : index
    %52 = vector.load %arg2[%c0_28, %c0_29] : memref<6x75xf32, #tpu.memory_space<vmem>>, vector<6x75xf32>
    %c0_30 = arith.constant 0 : index
    %c0_31 = arith.constant 0 : index
    %53 = vector.load %arg15[%c0_30, %c0_31] : memref<75x892xf32, #tpu.memory_space<vmem>>, vector<75x892xf32>
    %cst = arith.constant dense<0.000000e+00> : vector<6x892xf32>
    %54 = tpu.matmul %52, %53, %cst {dimension_numbers = #tpu.dot_dimension_numbers<[1], [0], [0], [1], [0, 0, 1, 1], [], []>} : vector<6x75xf32>, vector<75x892xf32>, vector<6x892xf32> -> vector<6x892xf32>
    %c0_32 = arith.constant 0 : index
    %c0_33 = arith.constant 0 : index
    %55 = vector.load %arg3[%c0_32, %c0_33] : memref<6x1xf32, #tpu.memory_space<vmem>>, vector<6x1xf32>
    %56 = vector.broadcast %55 : vector<6x1xf32> to vector<6x892xf32>
    %57 = arith.addf %54, %56 : vector<6x892xf32>
    %cst_34 = arith.constant 0.000000e+00 : f32
    %58 = vector.broadcast %cst_34 : f32 to vector<6x892xf32>
    %59 = arith.maximumf %57, %58 : vector<6x892xf32>
    %60 = vector.extract_strided_slice %59 {offsets = [0, 0], sizes = [6, 859], strides = [1, 1]} : vector<6x892xf32> to vector<6x859xf32>
    %61 = vector.extract_strided_slice %59 {offsets = [0, 1], sizes = [6, 859], strides = [1, 1]} : vector<6x892xf32> to vector<6x859xf32>
    %62 = arith.maximumf %60, %61 : vector<6x859xf32>
    %63 = vector.extract_strided_slice %59 {offsets = [0, 32], sizes = [6, 859], strides = [1, 1]} : vector<6x892xf32> to vector<6x859xf32>
    %64 = vector.extract_strided_slice %59 {offsets = [0, 33], sizes = [6, 859], strides = [1, 1]} : vector<6x892xf32> to vector<6x859xf32>
    %65 = arith.maximumf %63, %64 : vector<6x859xf32>
    %66 = arith.maximumf %62, %65 : vector<6x859xf32>
    %c0_35 = arith.constant 0 : index
    %c0_36 = arith.constant 0 : index
    %67 = vector.load %arg4[%c0_35, %c0_36] : memref<859x196xf32, #tpu.memory_space<vmem>>, vector<859x196xf32>
    %cst_37 = arith.constant dense<0.000000e+00> : vector<6x196xf32>
    %68 = tpu.matmul %66, %67, %cst_37 {dimension_numbers = #tpu.dot_dimension_numbers<[1], [0], [0], [1], [0, 0, 1, 1], [], []>} : vector<6x859xf32>, vector<859x196xf32>, vector<6x196xf32> -> vector<6x196xf32>
    %69 = vector.extract_strided_slice %68 {offsets = [0, 0], sizes = [6, 136], strides = [1, 1]} : vector<6x196xf32> to vector<6x136xf32>
    %c0_38 = arith.constant 0 : index
    %c0_39 = arith.constant 0 : index
    %70 = vector.load %arg16[%c0_38, %c0_39] : memref<150x136xf32, #tpu.memory_space<vmem>>, vector<6x136xf32>
    tpu.vector_store %arg16[%c0_38, %c0_39], %69 {strides = array<i32>} : memref<150x136xf32, #tpu.memory_space<vmem>>, vector<6x136xf32>,
    %71 = vector.extract_strided_slice %68 {offsets = [0, 1], sizes = [6, 136], strides = [1, 1]} : vector<6x196xf32> to vector<6x136xf32>
    %c6_40 = arith.constant 6 : index
    %c0_41 = arith.constant 0 : index
    %72 = vector.load %arg16[%c6_40, %c0_41] : memref<150x136xf32, #tpu.memory_space<vmem>>, vector<6x136xf32>
    tpu.vector_store %arg16[%c6_40, %c0_41], %71 {strides = array<i32>} : memref<150x136xf32, #tpu.memory_space<vmem>>, vector<6x136xf32>,
    %73 = vector.extract_strided_slice %68 {offsets = [0, 2], sizes = [6, 136], strides = [1, 1]} : vector<6x196xf32> to vector<6x136xf32>
    %c12_42 = arith.constant 12 : index
    %c0_43 = arith.constant 0 : index
    %74 = vector.load %arg16[%c12_42, %c0_43] : memref<150x136xf32, #tpu.memory_space<vmem>>, vector<6x136xf32>
    tpu.vector_store %arg16[%c12_42, %c0_43], %73 {strides = array<i32>} : memref<150x136xf32, #tpu.memory_space<vmem>>, vector<6x136xf32>,
    %75 = vector.extract_strided_slice %68 {offsets = [0, 3], sizes = [6, 136], strides = [1, 1]} : vector<6x196xf32> to vector<6x136xf32>
    %c18_44 = arith.constant 18 : index
    %c0_45 = arith.constant 0 : index
    %76 = vector.load %arg16[%c18_44, %c0_45] : memref<150x136xf32, #tpu.memory_space<vmem>>, vector<6x136xf32>
    tpu.vector_store %arg16[%c18_44, %c0_45], %75 {strides = array<i32>} : memref<150x136xf32, #tpu.memory_space<vmem>>, vector<6x136xf32>,
    %77 = vector.extract_strided_slice %68 {offsets = [0, 4], sizes = [6, 136], strides = [1, 1]} : vector<6x196xf32> to vector<6x136xf32>
    %c24_46 = arith.constant 24 : index
    %c0_47 = arith.constant 0 : index
    %78 = vector.load %arg16[%c24_46, %c0_47] : memref<150x136xf32, #tpu.memory_space<vmem>>, vector<6x136xf32>
    tpu.vector_store %arg16[%c24_46, %c0_47], %77 {strides = array<i32>} : memref<150x136xf32, #tpu.memory_space<vmem>>, vector<6x136xf32>,
    %79 = vector.extract_strided_slice %68 {offsets = [0, 14], sizes = [6, 136], strides = [1, 1]} : vector<6x196xf32> to vector<6x136xf32>
    %c30_48 = arith.constant 30 : index
    %c0_49 = arith.constant 0 : index
    %80 = vector.load %arg16[%c30_48, %c0_49] : memref<150x136xf32, #tpu.memory_space<vmem>>, vector<6x136xf32>
    tpu.vector_store %arg16[%c30_48, %c0_49], %79 {strides = array<i32>} : memref<150x136xf32, #tpu.memory_space<vmem>>, vector<6x136xf32>,
    %81 = vector.extract_strided_slice %68 {offsets = [0, 15], sizes = [6, 136], strides = [1, 1]} : vector<6x196xf32> to vector<6x136xf32>
    %c36_50 = arith.constant 36 : index
    %c0_51 = arith.constant 0 : index
    %82 = vector.load %arg16[%c36_50, %c0_51] : memref<150x136xf32, #tpu.memory_space<vmem>>, vector<6x136xf32>
    tpu.vector_store %arg16[%c36_50, %c0_51], %81 {strides = array<i32>} : memref<150x136xf32, #tpu.memory_space<vmem>>, vector<6x136xf32>,
    %83 = vector.extract_strided_slice %68 {offsets = [0, 16], sizes = [6, 136], strides = [1, 1]} : vector<6x196xf32> to vector<6x136xf32>
    %c42_52 = arith.constant 42 : index
    %c0_53 = arith.constant 0 : index
    %84 = vector.load %arg16[%c42_52, %c0_53] : memref<150x136xf32, #tpu.memory_space<vmem>>, vector<6x136xf32>
    tpu.vector_store %arg16[%c42_52, %c0_53], %83 {strides = array<i32>} : memref<150x136xf32, #tpu.memory_space<vmem>>, vector<6x136xf32>,
    %85 = vector.extract_strided_slice %68 {offsets = [0, 17], sizes = [6, 136], strides = [1, 1]} : vector<6x196xf32> to vector<6x136xf32>
    %c48_54 = arith.constant 48 : index
    %c0_55 = arith.constant 0 : index
    %86 = vector.load %arg16[%c48_54, %c0_55] : memref<150x136xf32, #tpu.memory_space<vmem>>, vector<6x136xf32>
    tpu.vector_store %arg16[%c48_54, %c0_55], %85 {strides = array<i32>} : memref<150x136xf32, #tpu.memory_space<vmem>>, vector<6x136xf32>,
    %87 = vector.extract_strided_slice %68 {offsets = [0, 18], sizes = [6, 136], strides = [1, 1]} : vector<6x196xf32> to vector<6x136xf32>
    %c54_56 = arith.constant 54 : index
    %c0_57 = arith.constant 0 : index
    %88 = vector.load %arg16[%c54_56, %c0_57] : memref<150x136xf32, #tpu.memory_space<vmem>>, vector<6x136xf32>
    tpu.vector_store %arg16[%c54_56, %c0_57], %87 {strides = array<i32>} : memref<150x136xf32, #tpu.memory_space<vmem>>, vector<6x136xf32>,
    %89 = vector.extract_strided_slice %68 {offsets = [0, 28], sizes = [6, 136], strides = [1, 1]} : vector<6x196xf32> to vector<6x136xf32>
    %c60_58 = arith.constant 60 : index
    %c0_59 = arith.constant 0 : index
    %90 = vector.load %arg16[%c60_58, %c0_59] : memref<150x136xf32, #tpu.memory_space<vmem>>, vector<6x136xf32>
    tpu.vector_store %arg16[%c60_58, %c0_59], %89 {strides = array<i32>} : memref<150x136xf32, #tpu.memory_space<vmem>>, vector<6x136xf32>,
    %91 = vector.extract_strided_slice %68 {offsets = [0, 29], sizes = [6, 136], strides = [1, 1]} : vector<6x196xf32> to vector<6x136xf32>
    %c66_60 = arith.constant 66 : index
    %c0_61 = arith.constant 0 : index
    %92 = vector.load %arg16[%c66_60, %c0_61] : memref<150x136xf32, #tpu.memory_space<vmem>>, vector<6x136xf32>
    tpu.vector_store %arg16[%c66_60, %c0_61], %91 {strides = array<i32>} : memref<150x136xf32, #tpu.memory_space<vmem>>, vector<6x136xf32>,
    %93 = vector.extract_strided_slice %68 {offsets = [0, 30], sizes = [6, 136], strides = [1, 1]} : vector<6x196xf32> to vector<6x136xf32>
    %c72_62 = arith.constant 72 : index
    %c0_63 = arith.constant 0 : index
    %94 = vector.load %arg16[%c72_62, %c0_63] : memref<150x136xf32, #tpu.memory_space<vmem>>, vector<6x136xf32>
    tpu.vector_store %arg16[%c72_62, %c0_63], %93 {strides = array<i32>} : memref<150x136xf32, #tpu.memory_space<vmem>>, vector<6x136xf32>,
    %95 = vector.extract_strided_slice %68 {offsets = [0, 31], sizes = [6, 136], strides = [1, 1]} : vector<6x196xf32> to vector<6x136xf32>
    %c78 = arith.constant 78 : index
    %c0_64 = arith.constant 0 : index
    %96 = vector.load %arg16[%c78, %c0_64] : memref<150x136xf32, #tpu.memory_space<vmem>>, vector<6x136xf32>
    tpu.vector_store %arg16[%c78, %c0_64], %95 {strides = array<i32>} : memref<150x136xf32, #tpu.memory_space<vmem>>, vector<6x136xf32>,
    %97 = vector.extract_strided_slice %68 {offsets = [0, 32], sizes = [6, 136], strides = [1, 1]} : vector<6x196xf32> to vector<6x136xf32>
    %c84 = arith.constant 84 : index
    %c0_65 = arith.constant 0 : index
    %98 = vector.load %arg16[%c84, %c0_65] : memref<150x136xf32, #tpu.memory_space<vmem>>, vector<6x136xf32>
    tpu.vector_store %arg16[%c84, %c0_65], %97 {strides = array<i32>} : memref<150x136xf32, #tpu.memory_space<vmem>>, vector<6x136xf32>,
    %99 = vector.extract_strided_slice %68 {offsets = [0, 42], sizes = [6, 136], strides = [1, 1]} : vector<6x196xf32> to vector<6x136xf32>
    %c90 = arith.constant 90 : index
    %c0_66 = arith.constant 0 : index
    %100 = vector.load %arg16[%c90, %c0_66] : memref<150x136xf32, #tpu.memory_space<vmem>>, vector<6x136xf32>
    tpu.vector_store %arg16[%c90, %c0_66], %99 {strides = array<i32>} : memref<150x136xf32, #tpu.memory_space<vmem>>, vector<6x136xf32>,
    %101 = vector.extract_strided_slice %68 {offsets = [0, 43], sizes = [6, 136], strides = [1, 1]} : vector<6x196xf32> to vector<6x136xf32>
    %c96 = arith.constant 96 : index
    %c0_67 = arith.constant 0 : index
    %102 = vector.load %arg16[%c96, %c0_67] : memref<150x136xf32, #tpu.memory_space<vmem>>, vector<6x136xf32>
    tpu.vector_store %arg16[%c96, %c0_67], %101 {strides = array<i32>} : memref<150x136xf32, #tpu.memory_space<vmem>>, vector<6x136xf32>,
    %103 = vector.extract_strided_slice %68 {offsets = [0, 44], sizes = [6, 136], strides = [1, 1]} : vector<6x196xf32> to vector<6x136xf32>
    %c102 = arith.constant 102 : index
    %c0_68 = arith.constant 0 : index
    %104 = vector.load %arg16[%c102, %c0_68] : memref<150x136xf32, #tpu.memory_space<vmem>>, vector<6x136xf32>
    tpu.vector_store %arg16[%c102, %c0_68], %103 {strides = array<i32>} : memref<150x136xf32, #tpu.memory_space<vmem>>, vector<6x136xf32>,
    %105 = vector.extract_strided_slice %68 {offsets = [0, 45], sizes = [6, 136], strides = [1, 1]} : vector<6x196xf32> to vector<6x136xf32>
    %c108 = arith.constant 108 : index
    %c0_69 = arith.constant 0 : index
    %106 = vector.load %arg16[%c108, %c0_69] : memref<150x136xf32, #tpu.memory_space<vmem>>, vector<6x136xf32>
    tpu.vector_store %arg16[%c108, %c0_69], %105 {strides = array<i32>} : memref<150x136xf32, #tpu.memory_space<vmem>>, vector<6x136xf32>,
    %107 = vector.extract_strided_slice %68 {offsets = [0, 46], sizes = [6, 136], strides = [1, 1]} : vector<6x196xf32> to vector<6x136xf32>
    %c114 = arith.constant 114 : index
    %c0_70 = arith.constant 0 : index
    %108 = vector.load %arg16[%c114, %c0_70] : memref<150x136xf32, #tpu.memory_space<vmem>>, vector<6x136xf32>
    tpu.vector_store %arg16[%c114, %c0_70], %107 {strides = array<i32>} : memref<150x136xf32, #tpu.memory_space<vmem>>, vector<6x136xf32>,
    %109 = vector.extract_strided_slice %68 {offsets = [0, 56], sizes = [6, 136], strides = [1, 1]} : vector<6x196xf32> to vector<6x136xf32>
    %c120 = arith.constant 120 : index
    %c0_71 = arith.constant 0 : index
    %110 = vector.load %arg16[%c120, %c0_71] : memref<150x136xf32, #tpu.memory_space<vmem>>, vector<6x136xf32>
    tpu.vector_store %arg16[%c120, %c0_71], %109 {strides = array<i32>} : memref<150x136xf32, #tpu.memory_space<vmem>>, vector<6x136xf32>,
    %111 = vector.extract_strided_slice %68 {offsets = [0, 57], sizes = [6, 136], strides = [1, 1]} : vector<6x196xf32> to vector<6x136xf32>
    %c126 = arith.constant 126 : index
    %c0_72 = arith.constant 0 : index
    %112 = vector.load %arg16[%c126, %c0_72] : memref<150x136xf32, #tpu.memory_space<vmem>>, vector<6x136xf32>
    tpu.vector_store %arg16[%c126, %c0_72], %111 {strides = array<i32>} : memref<150x136xf32, #tpu.memory_space<vmem>>, vector<6x136xf32>,
    %113 = vector.extract_strided_slice %68 {offsets = [0, 58], sizes = [6, 136], strides = [1, 1]} : vector<6x196xf32> to vector<6x136xf32>
    %c132 = arith.constant 132 : index
    %c0_73 = arith.constant 0 : index
    %114 = vector.load %arg16[%c132, %c0_73] : memref<150x136xf32, #tpu.memory_space<vmem>>, vector<6x136xf32>
    tpu.vector_store %arg16[%c132, %c0_73], %113 {strides = array<i32>} : memref<150x136xf32, #tpu.memory_space<vmem>>, vector<6x136xf32>,
    %115 = vector.extract_strided_slice %68 {offsets = [0, 59], sizes = [6, 136], strides = [1, 1]} : vector<6x196xf32> to vector<6x136xf32>
    %c138 = arith.constant 138 : index
    %c0_74 = arith.constant 0 : index
    %116 = vector.load %arg16[%c138, %c0_74] : memref<150x136xf32, #tpu.memory_space<vmem>>, vector<6x136xf32>
    tpu.vector_store %arg16[%c138, %c0_74], %115 {strides = array<i32>} : memref<150x136xf32, #tpu.memory_space<vmem>>, vector<6x136xf32>,
    %117 = vector.extract_strided_slice %68 {offsets = [0, 60], sizes = [6, 136], strides = [1, 1]} : vector<6x196xf32> to vector<6x136xf32>
    %c144 = arith.constant 144 : index
    %c0_75 = arith.constant 0 : index
    %118 = vector.load %arg16[%c144, %c0_75] : memref<150x136xf32, #tpu.memory_space<vmem>>, vector<6x136xf32>
    tpu.vector_store %arg16[%c144, %c0_75], %117 {strides = array<i32>} : memref<150x136xf32, #tpu.memory_space<vmem>>, vector<6x136xf32>,
    %c0_76 = arith.constant 0 : index
    %c0_77 = arith.constant 0 : index
    %119 = vector.load %arg5[%c0_76, %c0_77] : memref<16x150xf32, #tpu.memory_space<vmem>>, vector<16x150xf32>
    %c0_78 = arith.constant 0 : index
    %c0_79 = arith.constant 0 : index
    %120 = vector.load %arg16[%c0_78, %c0_79] : memref<150x136xf32, #tpu.memory_space<vmem>>, vector<150x136xf32>
    %cst_80 = arith.constant dense<0.000000e+00> : vector<16x136xf32>
    %121 = tpu.matmul %119, %120, %cst_80 {dimension_numbers = #tpu.dot_dimension_numbers<[1], [0], [0], [1], [0, 0, 1, 1], [], []>} : vector<16x150xf32>, vector<150x136xf32>, vector<16x136xf32> -> vector<16x136xf32>
    %c0_81 = arith.constant 0 : index
    %c0_82 = arith.constant 0 : index
    %122 = vector.load %arg6[%c0_81, %c0_82] : memref<16x1xf32, #tpu.memory_space<vmem>>, vector<16x1xf32>
    %123 = vector.broadcast %122 : vector<16x1xf32> to vector<16x136xf32>
    %124 = arith.addf %121, %123 : vector<16x136xf32>
    %cst_83 = arith.constant 0.000000e+00 : f32
    %125 = vector.broadcast %cst_83 : f32 to vector<16x136xf32>
    %126 = arith.maximumf %124, %125 : vector<16x136xf32>
    %127 = vector.extract_strided_slice %126 {offsets = [0, 0], sizes = [16, 121], strides = [1, 1]} : vector<16x136xf32> to vector<16x121xf32>
    %128 = vector.extract_strided_slice %126 {offsets = [0, 1], sizes = [16, 121], strides = [1, 1]} : vector<16x136xf32> to vector<16x121xf32>
    %129 = arith.maximumf %127, %128 : vector<16x121xf32>
    %130 = vector.extract_strided_slice %126 {offsets = [0, 14], sizes = [16, 121], strides = [1, 1]} : vector<16x136xf32> to vector<16x121xf32>
    %131 = vector.extract_strided_slice %126 {offsets = [0, 15], sizes = [16, 121], strides = [1, 1]} : vector<16x136xf32> to vector<16x121xf32>
    %132 = arith.maximumf %130, %131 : vector<16x121xf32>
    %133 = arith.maximumf %129, %132 : vector<16x121xf32>
    %c0_84 = arith.constant 0 : index
    %c0_85 = arith.constant 0 : index
    %134 = vector.load %arg7[%c0_84, %c0_85] : memref<121x25xf32, #tpu.memory_space<vmem>>, vector<121x25xf32>
    %cst_86 = arith.constant dense<0.000000e+00> : vector<16x25xf32>
    %135 = tpu.matmul %133, %134, %cst_86 {dimension_numbers = #tpu.dot_dimension_numbers<[1], [0], [0], [1], [0, 0, 1, 1], [], []>} : vector<16x121xf32>, vector<121x25xf32>, vector<16x25xf32> -> vector<16x25xf32>
    %136 = vector.extract_strided_slice %135 {offsets = [0, 0], sizes = [1, 25], strides = [1, 1]} : vector<16x25xf32> to vector<1x25xf32>
    %c0_87 = arith.constant 0 : index
    %c0_88 = arith.constant 0 : index
    %137 = vector.load %arg17[%c0_87, %c0_88] : memref<1x400xf32, #tpu.memory_space<vmem>>, vector<1x25xf32>
    tpu.vector_store %arg17[%c0_87, %c0_88], %136 {strides = array<i32>} : memref<1x400xf32, #tpu.memory_space<vmem>>, vector<1x25xf32>,
    %138 = vector.extract_strided_slice %135 {offsets = [1, 0], sizes = [1, 25], strides = [1, 1]} : vector<16x25xf32> to vector<1x25xf32>
    %c0_89 = arith.constant 0 : index
    %c25 = arith.constant 25 : index
    %139 = vector.load %arg17[%c0_89, %c25] : memref<1x400xf32, #tpu.memory_space<vmem>>, vector<1x25xf32>
    tpu.vector_store %arg17[%c0_89, %c25], %138 {strides = array<i32>} : memref<1x400xf32, #tpu.memory_space<vmem>>, vector<1x25xf32>,
    %140 = vector.extract_strided_slice %135 {offsets = [2, 0], sizes = [1, 25], strides = [1, 1]} : vector<16x25xf32> to vector<1x25xf32>
    %c0_90 = arith.constant 0 : index
    %c50 = arith.constant 50 : index
    %141 = vector.load %arg17[%c0_90, %c50] : memref<1x400xf32, #tpu.memory_space<vmem>>, vector<1x25xf32>
    tpu.vector_store %arg17[%c0_90, %c50], %140 {strides = array<i32>} : memref<1x400xf32, #tpu.memory_space<vmem>>, vector<1x25xf32>,
    %142 = vector.extract_strided_slice %135 {offsets = [3, 0], sizes = [1, 25], strides = [1, 1]} : vector<16x25xf32> to vector<1x25xf32>
    %c0_91 = arith.constant 0 : index
    %c75 = arith.constant 75 : index
    %143 = vector.load %arg17[%c0_91, %c75] : memref<1x400xf32, #tpu.memory_space<vmem>>, vector<1x25xf32>
    tpu.vector_store %arg17[%c0_91, %c75], %142 {strides = array<i32>} : memref<1x400xf32, #tpu.memory_space<vmem>>, vector<1x25xf32>,
    %144 = vector.extract_strided_slice %135 {offsets = [4, 0], sizes = [1, 25], strides = [1, 1]} : vector<16x25xf32> to vector<1x25xf32>
    %c0_92 = arith.constant 0 : index
    %c100 = arith.constant 100 : index
    %145 = vector.load %arg17[%c0_92, %c100] : memref<1x400xf32, #tpu.memory_space<vmem>>, vector<1x25xf32>
    tpu.vector_store %arg17[%c0_92, %c100], %144 {strides = array<i32>} : memref<1x400xf32, #tpu.memory_space<vmem>>, vector<1x25xf32>,
    %146 = vector.extract_strided_slice %135 {offsets = [5, 0], sizes = [1, 25], strides = [1, 1]} : vector<16x25xf32> to vector<1x25xf32>
    %c0_93 = arith.constant 0 : index
    %c125 = arith.constant 125 : index
    %147 = vector.load %arg17[%c0_93, %c125] : memref<1x400xf32, #tpu.memory_space<vmem>>, vector<1x25xf32>
    tpu.vector_store %arg17[%c0_93, %c125], %146 {strides = array<i32>} : memref<1x400xf32, #tpu.memory_space<vmem>>, vector<1x25xf32>,
    %148 = vector.extract_strided_slice %135 {offsets = [6, 0], sizes = [1, 25], strides = [1, 1]} : vector<16x25xf32> to vector<1x25xf32>
    %c0_94 = arith.constant 0 : index
    %c150 = arith.constant 150 : index
    %149 = vector.load %arg17[%c0_94, %c150] : memref<1x400xf32, #tpu.memory_space<vmem>>, vector<1x25xf32>
    tpu.vector_store %arg17[%c0_94, %c150], %148 {strides = array<i32>} : memref<1x400xf32, #tpu.memory_space<vmem>>, vector<1x25xf32>,
    %150 = vector.extract_strided_slice %135 {offsets = [7, 0], sizes = [1, 25], strides = [1, 1]} : vector<16x25xf32> to vector<1x25xf32>
    %c0_95 = arith.constant 0 : index
    %c175 = arith.constant 175 : index
    %151 = vector.load %arg17[%c0_95, %c175] : memref<1x400xf32, #tpu.memory_space<vmem>>, vector<1x25xf32>
    tpu.vector_store %arg17[%c0_95, %c175], %150 {strides = array<i32>} : memref<1x400xf32, #tpu.memory_space<vmem>>, vector<1x25xf32>,
    %152 = vector.extract_strided_slice %135 {offsets = [8, 0], sizes = [1, 25], strides = [1, 1]} : vector<16x25xf32> to vector<1x25xf32>
    %c0_96 = arith.constant 0 : index
    %c200 = arith.constant 200 : index
    %153 = vector.load %arg17[%c0_96, %c200] : memref<1x400xf32, #tpu.memory_space<vmem>>, vector<1x25xf32>
    tpu.vector_store %arg17[%c0_96, %c200], %152 {strides = array<i32>} : memref<1x400xf32, #tpu.memory_space<vmem>>, vector<1x25xf32>,
    %154 = vector.extract_strided_slice %135 {offsets = [9, 0], sizes = [1, 25], strides = [1, 1]} : vector<16x25xf32> to vector<1x25xf32>
    %c0_97 = arith.constant 0 : index
    %c225 = arith.constant 225 : index
    %155 = vector.load %arg17[%c0_97, %c225] : memref<1x400xf32, #tpu.memory_space<vmem>>, vector<1x25xf32>
    tpu.vector_store %arg17[%c0_97, %c225], %154 {strides = array<i32>} : memref<1x400xf32, #tpu.memory_space<vmem>>, vector<1x25xf32>,
    %156 = vector.extract_strided_slice %135 {offsets = [10, 0], sizes = [1, 25], strides = [1, 1]} : vector<16x25xf32> to vector<1x25xf32>
    %c0_98 = arith.constant 0 : index
    %c250 = arith.constant 250 : index
    %157 = vector.load %arg17[%c0_98, %c250] : memref<1x400xf32, #tpu.memory_space<vmem>>, vector<1x25xf32>
    tpu.vector_store %arg17[%c0_98, %c250], %156 {strides = array<i32>} : memref<1x400xf32, #tpu.memory_space<vmem>>, vector<1x25xf32>,
    %158 = vector.extract_strided_slice %135 {offsets = [11, 0], sizes = [1, 25], strides = [1, 1]} : vector<16x25xf32> to vector<1x25xf32>
    %c0_99 = arith.constant 0 : index
    %c275 = arith.constant 275 : index
    %159 = vector.load %arg17[%c0_99, %c275] : memref<1x400xf32, #tpu.memory_space<vmem>>, vector<1x25xf32>
    tpu.vector_store %arg17[%c0_99, %c275], %158 {strides = array<i32>} : memref<1x400xf32, #tpu.memory_space<vmem>>, vector<1x25xf32>,
    %160 = vector.extract_strided_slice %135 {offsets = [12, 0], sizes = [1, 25], strides = [1, 1]} : vector<16x25xf32> to vector<1x25xf32>
    %c0_100 = arith.constant 0 : index
    %c300 = arith.constant 300 : index
    %161 = vector.load %arg17[%c0_100, %c300] : memref<1x400xf32, #tpu.memory_space<vmem>>, vector<1x25xf32>
    tpu.vector_store %arg17[%c0_100, %c300], %160 {strides = array<i32>} : memref<1x400xf32, #tpu.memory_space<vmem>>, vector<1x25xf32>,
    %162 = vector.extract_strided_slice %135 {offsets = [13, 0], sizes = [1, 25], strides = [1, 1]} : vector<16x25xf32> to vector<1x25xf32>
    %c0_101 = arith.constant 0 : index
    %c325 = arith.constant 325 : index
    %163 = vector.load %arg17[%c0_101, %c325] : memref<1x400xf32, #tpu.memory_space<vmem>>, vector<1x25xf32>
    tpu.vector_store %arg17[%c0_101, %c325], %162 {strides = array<i32>} : memref<1x400xf32, #tpu.memory_space<vmem>>, vector<1x25xf32>,
    %164 = vector.extract_strided_slice %135 {offsets = [14, 0], sizes = [1, 25], strides = [1, 1]} : vector<16x25xf32> to vector<1x25xf32>
    %c0_102 = arith.constant 0 : index
    %c350 = arith.constant 350 : index
    %165 = vector.load %arg17[%c0_102, %c350] : memref<1x400xf32, #tpu.memory_space<vmem>>, vector<1x25xf32>
    tpu.vector_store %arg17[%c0_102, %c350], %164 {strides = array<i32>} : memref<1x400xf32, #tpu.memory_space<vmem>>, vector<1x25xf32>,
    %166 = vector.extract_strided_slice %135 {offsets = [15, 0], sizes = [1, 25], strides = [1, 1]} : vector<16x25xf32> to vector<1x25xf32>
    %c0_103 = arith.constant 0 : index
    %c375 = arith.constant 375 : index
    %167 = vector.load %arg17[%c0_103, %c375] : memref<1x400xf32, #tpu.memory_space<vmem>>, vector<1x25xf32>
    tpu.vector_store %arg17[%c0_103, %c375], %166 {strides = array<i32>} : memref<1x400xf32, #tpu.memory_space<vmem>>, vector<1x25xf32>,
    %c0_104 = arith.constant 0 : index
    %c0_105 = arith.constant 0 : index
    %168 = vector.load %arg17[%c0_104, %c0_105] : memref<1x400xf32, #tpu.memory_space<vmem>>, vector<1x400xf32>
    %c0_106 = arith.constant 0 : index
    %c0_107 = arith.constant 0 : index
    %169 = vector.load %arg8[%c0_106, %c0_107] : memref<400x128xf32, #tpu.memory_space<vmem>>, vector<400x128xf32>
    %cst_108 = arith.constant dense<0.000000e+00> : vector<1x128xf32>
    %170 = tpu.matmul %168, %169, %cst_108 {dimension_numbers = #tpu.dot_dimension_numbers<[1], [0], [0], [1], [0, 0, 1, 1], [], []>} : vector<1x400xf32>, vector<400x128xf32>, vector<1x128xf32> -> vector<1x128xf32>
    %c0_109 = arith.constant 0 : index
    %c0_110 = arith.constant 0 : index
    %171 = vector.load %arg9[%c0_109, %c0_110] : memref<1x128xf32, #tpu.memory_space<vmem>>, vector<1x128xf32>
    %172 = arith.addf %170, %171 : vector<1x128xf32>
    %cst_111 = arith.constant 0.000000e+00 : f32
    %173 = vector.broadcast %cst_111 : f32 to vector<1x128xf32>
    %174 = arith.maximumf %172, %173 : vector<1x128xf32>
    %c0_112 = arith.constant 0 : index
    %c0_113 = arith.constant 0 : index
    %175 = vector.load %arg10[%c0_112, %c0_113] : memref<128x128xf32, #tpu.memory_space<vmem>>, vector<128x128xf32>
    %cst_114 = arith.constant dense<0.000000e+00> : vector<1x128xf32>
    %176 = tpu.matmul %174, %175, %cst_114 {dimension_numbers = #tpu.dot_dimension_numbers<[1], [0], [0], [1], [0, 0, 1, 1], [], []>} : vector<1x128xf32>, vector<128x128xf32>, vector<1x128xf32> -> vector<1x128xf32>
    %c0_115 = arith.constant 0 : index
    %c0_116 = arith.constant 0 : index
    %177 = vector.load %arg11[%c0_115, %c0_116] : memref<1x128xf32, #tpu.memory_space<vmem>>, vector<1x128xf32>
    %178 = arith.addf %176, %177 : vector<1x128xf32>
    %cst_117 = arith.constant 0.000000e+00 : f32
    %179 = vector.broadcast %cst_117 : f32 to vector<1x128xf32>
    %180 = arith.maximumf %178, %179 : vector<1x128xf32>
    %c0_118 = arith.constant 0 : index
    %c0_119 = arith.constant 0 : index
    %181 = vector.load %arg12[%c0_118, %c0_119] : memref<128x128xf32, #tpu.memory_space<vmem>>, vector<128x128xf32>
    %cst_120 = arith.constant dense<0.000000e+00> : vector<1x128xf32>
    %182 = tpu.matmul %180, %181, %cst_120 {dimension_numbers = #tpu.dot_dimension_numbers<[1], [0], [0], [1], [0, 0, 1, 1], [], []>} : vector<1x128xf32>, vector<128x128xf32>, vector<1x128xf32> -> vector<1x128xf32>
    %c0_121 = arith.constant 0 : index
    %c0_122 = arith.constant 0 : index
    %183 = vector.load %arg13[%c0_121, %c0_122] : memref<1x128xf32, #tpu.memory_space<vmem>>, vector<1x128xf32>
    %184 = arith.addf %182, %183 : vector<1x128xf32>
    %c0_123 = arith.constant 0 : index
    %c0_124 = arith.constant 0 : index
    %c0_125 = arith.constant 0 : index
    %185 = vector.load %arg14[%c0_123, %c0_124, %c0_125] : memref<1x1x128xf32, #tpu.memory_space<vmem>>, vector<1x1x128xf32>
    %186 = vector.shape_cast %185 : vector<1x1x128xf32> to vector<1x128xf32>
    %187 = vector.shape_cast %184 : vector<1x128xf32> to vector<1x1x128xf32>
    tpu.vector_store %arg14[%c0_123, %c0_124, %c0_125], %187 {strides = array<i32>} : memref<1x1x128xf32, #tpu.memory_space<vmem>>, vector<1x1x128xf32>,
    return
  }
  func.func @transform_0(%arg0: i32) -> (i32, i32, i32) {
    %c0_i32 = arith.constant 0 : i32
    %c0_i32_0 = arith.constant 0 : i32
    %c0_i32_1 = arith.constant 0 : i32
    return %arg0, %c0_i32, %c0_i32_0 : i32, i32, i32
  }
  func.func @transform_1(%arg0: i32) -> (i32, i32) {
    %c0_i32 = arith.constant 0 : i32
    %c0_i32_0 = arith.constant 0 : i32
    %c0_i32_1 = arith.constant 0 : i32
    return %c0_i32, %c0_i32_0 : i32, i32
  }
  func.func @transform_2(%arg0: i32) -> (i32, i32) {
    %c0_i32 = arith.constant 0 : i32
    %c0_i32_0 = arith.constant 0 : i32
    %c0_i32_1 = arith.constant 0 : i32
    return %c0_i32, %c0_i32_0 : i32, i32
  }
  func.func @transform_3(%arg0: i32) -> (i32, i32) {
    %c0_i32 = arith.constant 0 : i32
    %c0_i32_0 = arith.constant 0 : i32
    %c0_i32_1 = arith.constant 0 : i32
    return %c0_i32, %c0_i32_0 : i32, i32
  }
  func.func @transform_4(%arg0: i32) -> (i32, i32) {
    %c0_i32 = arith.constant 0 : i32
    %c0_i32_0 = arith.constant 0 : i32
    %c0_i32_1 = arith.constant 0 : i32
    return %c0_i32, %c0_i32_0 : i32, i32
  }
  func.func @transform_5(%arg0: i32) -> (i32, i32) {
    %c0_i32 = arith.constant 0 : i32
    %c0_i32_0 = arith.constant 0 : i32
    %c0_i32_1 = arith.constant 0 : i32
    return %c0_i32, %c0_i32_0 : i32, i32
  }
  func.func @transform_6(%arg0: i32) -> (i32, i32) {
    %c0_i32 = arith.constant 0 : i32
    %c0_i32_0 = arith.constant 0 : i32
    %c0_i32_1 = arith.constant 0 : i32
    return %c0_i32, %c0_i32_0 : i32, i32
  }
  func.func @transform_7(%arg0: i32) -> (i32, i32) {
    %c0_i32 = arith.constant 0 : i32
    %c0_i32_0 = arith.constant 0 : i32
    %c0_i32_1 = arith.constant 0 : i32
    return %c0_i32, %c0_i32_0 : i32, i32
  }
  func.func @transform_8(%arg0: i32) -> (i32, i32) {
    %c0_i32 = arith.constant 0 : i32
    %c0_i32_0 = arith.constant 0 : i32
    %c0_i32_1 = arith.constant 0 : i32
    return %c0_i32, %c0_i32_0 : i32, i32
  }
  func.func @transform_9(%arg0: i32) -> (i32, i32) {
    %c0_i32 = arith.constant 0 : i32
    %c0_i32_0 = arith.constant 0 : i32
    %c0_i32_1 = arith.constant 0 : i32
    return %c0_i32, %c0_i32_0 : i32, i32
  }
  func.func @transform_10(%arg0: i32) -> (i32, i32) {
    %c0_i32 = arith.constant 0 : i32
    %c0_i32_0 = arith.constant 0 : i32
    %c0_i32_1 = arith.constant 0 : i32
    return %c0_i32, %c0_i32_0 : i32, i32
  }
  func.func @transform_11(%arg0: i32) -> (i32, i32) {
    %c0_i32 = arith.constant 0 : i32
    %c0_i32_0 = arith.constant 0 : i32
    %c0_i32_1 = arith.constant 0 : i32
    return %c0_i32, %c0_i32_0 : i32, i32
  }
  func.func @transform_12(%arg0: i32) -> (i32, i32) {
    %c0_i32 = arith.constant 0 : i32
    %c0_i32_0 = arith.constant 0 : i32
    %c0_i32_1 = arith.constant 0 : i32
    return %c0_i32, %c0_i32_0 : i32, i32
  }
  func.func @transform_13(%arg0: i32) -> (i32, i32, i32) {
    %c0_i32 = arith.constant 0 : i32
    %c0_i32_0 = arith.constant 0 : i32
    %c0_i32_1 = arith.constant 0 : i32
    return %arg0, %c0_i32, %c0_i32_0 : i32, i32, i32
  }
}

</mosaic_0001>

<bundles_post_ra>
// kernel: lenet_forward.1
= control target key start
LH: loop header
LB: loop body
LE: loop exit
PB: predicated region body
PF: predicated region fallthrough
CT: control target
= control target key end

     0   :  { %s7179_s0 = inlined_call_operand.vmem [shape: f32[2,3,1024], index: 0, kind: input, shape index: {}]   ;;  %s7180_s1 = inlined_call_operand.vmem [shape: f32[6,75], index: 1, kind: input, shape index: {}]   ;;  %s7181_s2 = inlined_call_operand.vmem [shape: f32[6,1], index: 2, kind: input, shape index: {}]   ;;  %s7182_s3 = inlined_call_operand.vmem [shape: f32[859,196], index: 3, kind: input, shape index: {}]   ;;  %s7183_s4 = inlined_call_operand.vmem [shape: f32[16,150], index: 4, kind: input, shape index: {}]   ;;  %s7184_s5 = inlined_call_operand.vmem [shape: f32[16,1], index: 5, kind: input, shape index: {}]   ;;  %s7185_s6 = inlined_call_operand.vmem [shape: f32[121,25], index: 6, kind: input, shape index: {}]   ;;  %s7186_s7 = inlined_call_operand.vmem [shape: f32[400,128], index: 7, kind: input, shape index: {}]   ;;  %s7187_s8 = inlined_call_operand.vmem [shape: f32[1,128], index: 8, kind: input, shape index: {}]   ;;  %s7188_s9 = inlined_call_operand.vmem [shape: f32[128,128], index: 9, kind: input, shape index: {}]   ;;  %s7189_s10 = inlined_call_operand.vmem [shape: f32[1,128], index: 10, kind: input, shape index: {}]   ;;  %s7190_s11 = inlined_call_operand.vmem [shape: f32[128,128], index: 11, kind: input, shape index: {}]   ;;  %s7191_s12 = inlined_call_operand.vmem [shape: f32[1,128], index: 12, kind: input, shape index: {}]   ;;  %s7192_s13 = inlined_call_operand.hbm [shape: f32[2,1,128], index: 13, kind: output, shape index: {}]  }
   0x1   :  { %7257 = sst [smem:[#allocation15_spill]] %s7179_s0 }
   0x2   :  { %7258 = sst [smem:[#allocation16_spill]] %s7191_s12 }
   0x3   :  { %7259 = sst [smem:[#allocation17_spill]] %s7192_s13 }
   0x4   :  { %18 = vsyncpa [#allocation6], 0 }
   0x5   :  { %20 = vsyncpa [#allocation6 + $0x1], 0  ;;  %s4705_s25 = smov 0   ;;  %s4707_s26 = smov 0  }
   0x6   :  { %s4709_s27 = smov 0   ;;  %s4711_s28 = smov 0  }
   0x7 LB: > { %7260 = sst [smem:[#allocation8_spill]] %s4567_s25  ;;  %s4726_s29 = sadd.s32 4294967295, %s4579_s28   ;;  %s4579_s28 = sphi %s4711_s28, %s7379_s28   ;;  %s4575_s27 = sphi %s4709_s27, %s7381_s27   ;;  %s4571_s26 = sphi %s4707_s26, %s7383_s26   ;;  %s4567_s25 = sphi %s4705_s25, %s7382_s25  }
   0x8   : > { %7261 = sst [smem:[#allocation9_spill]] %s4575_s27  ;;  %s3649_s30 = sadd.s32 4294967294, %s4579_s28  }
   0x9   : > { %7262 = sst [smem:[#allocation10_spill]] %s4579_s28  ;;  %s4730_s14 = sadd.s32 1, %s4579_s28  }
   0xa   : > { %7263 = sst [smem:[#allocation11_spill]] %s4730_s14  ;;  %s311_s15 = sadd.s32 1, %s4575_s27 }
   0xb   : > { %s308_s16 = ssub.s32 %s4579_s28, %s4730_s14  ;;  %p321_p0 = scmp.ne.s32.totalorder %s4575_s27, %s4571_s26 }
   0xc   : > { %p309_p1 = scmp.eq.s32.totalorder %s308_s16, 0  ;;  %p322_p2 = scmp.eq.s32.totalorder %s4726_s29, 1 }
   0xd   : > { %p327_p3 = scmp.ne.s32.totalorder %s4571_s26, %s4567_s25  ;;  %p328_p4 = scmp.eq.s32.totalorder %s3649_s30, 1 }
   0xe   : > { %s4741_s17 = scalar_select %p309_p1, %s4575_s27, %s311_s15  }
   0xf   : > { %p4743_p5 = por %p322_p2, %p321_p0  ;;  %p4747_p6 = por %p328_p4, %p327_p3 }
  0x10   : > { %7264 = sst [smem:[#allocation12_spill]] %s4741_s17  ;;  %p3652_p7 = scmp.ge.s32.totalorder %s4579_s28, 1 }
  0x11   : > { %s7265_s18 = scalar_select %p4743_p5, 1, 0 }
  0x12   : > { %s7267_s19 = scalar_select %p4747_p6, 1, 0 }
  0x13   : > { %7266 = sst [smem:[#allocation13_spill]] %s7265_s18  ;;  %p390_p8 = scmp.lt.s32.totalorder %s4579_s28, 3 }
  0x14   : > { %7268 = sst [smem:[#allocation14_spill]] %s7267_s19 }
  0x15   : > { %p391_p9 = pnand %p3652_p7, %p390_p8 }
  0x16   : > { %p433_p10 = scmp.lt.s32.totalorder (!%p391_p9), %s4726_s29, 1  ;;  %s7269_s0 = sld [smem:[#allocation15_spill]] (!%p391_p9)  ;;  %vm481_vm0 = vcmask (!%p391_p9), 1039360   ;;  %vm7256_vm1 = vcmask (!%p391_p9), 1031168   ;;  %vm575_vm2 = vcmask (!%p391_p9), 1022976   ;;  %vm615_vm3 = vcmask (!%p391_p9), 1014784  }
  0x17   : > { %394 = sbr.rel (%p391_p9) target bundleno = 3026 (0xbd2), region = 72  ;;  %s7221_s30 = smov (!%p391_p9), 127   ;;  %vm662_vm4 = vcmask (!%p391_p9), 785408   ;;  %vm717_vm5 = vcmask (!%p391_p9), 777216   ;;  %vm764_vm6 = vcmask (!%p391_p9), 769024   ;;  %vm803_vm7 = vcmask (!%p391_p9), 760832  }
  0x18   : > { %s7199_s15 = smov (!%p391_p9), 126   ;;  %s7195_s16 = smov (!%p391_p9), 125   ;;  %vm842_vm8 = vcmask (!%p391_p9), 752640   ;;  %vm7225_vm9 = vcmask (!%p391_p9), 523264   ;;  %vm927_vm10 = vcmask (!%p391_p9), 515072   ;;  %vm7255_vm11 = vcmask (!%p391_p9), 506880  }
  0x19   : > { %s7226_s22 = smov (!%p391_p9), 95   ;;  %s7227_s23 = smov (!%p391_p9), 94   ;;  %vm7237_vm12 = vcmask (!%p391_p9), 498688   ;;  %vm7253_vm13 = vcmask (!%p391_p9), 1013764   ;;  %vm7233_vm14 = vcmask (!%p391_p9), 490496   ;;  %vm7230_vm15 = vcmask (!%p391_p9), 261120  }
  0x1a   : > { %s7278_s17 = smov (!%p391_p9), 61   ;;  %s7280_s27 = smov (!%p391_p9), 32  }
  0x1b   : > { %s7281_s14 = smov (!%p391_p9), 31   ;;  %s7282_s19 = smov (!%p391_p9), 30  }
  0x1c   : > { %s7283_s25 = smov (!%p391_p9), 29   ;;  %s7284_s28 = smov (!%p391_p9), 28  }
  0x1d   : > { %s7285_s13 = smov (!%p391_p9), 127   ;;  %s7286_s12 = smov (!%p391_p9), 94  }
  0x1e   : > { %s434_s20 = scalar_select %p433_p10, %s4726_s29, 1 }
  0x1f   : > { %s7287_s18 = smov 95  }
  0x20   : > { %s3680_s21 = sshll.u32 %s434_s20, 5  ;;  %s7197_s20 = smov 124  }
  0x21   : > { %s4758_s24 = scalar_lea.vmem %s7269_s0, %s3680_s21  ;;  %s7193_s21 = smov 96  }
  0x22   : > { %v4761_v0 = vld [vmem:[%s4758_s24 + $0x10] sm:$0x77]  ;;  %v4764_v1 = vld [vmem:[%s4758_s24] sm:$0x77]  ;;  %v4767_v2 = vld [vmem:[%s4758_s24 + $0x8] sm:$0x77] }
  0x23   : > { %v4770_v3 = vrot.slane %v4761_v0, 5  ;;  %452 = vst [vmem:[#allocation2] sm:$0x7] %v4764_v1  ;;  %456 = vst [vmem:[#allocation2 + $0x20] sm:$0x7] %v4761_v0  ;;  %v4777_v4 = vrot.slane %v4767_v2, 5  ;;  %v4783_v5 = vcombine.high %v4764_v1, %v4764_v1  ;;  %v4787_v6 = vcombine.high %v4767_v2, %v4767_v2 }
  0x24   : > { %1270 = vst [vmem:[#allocation2 + $0x188] sm:$0x70] %v4764_v1  ;;  %1274 = vst [vmem:[#allocation2 + $0x1a8] sm:$0x70] %v4761_v0  ;;  %v4794_v7 = vrot.slane %v4767_v2, 2  ;;  %v4802_v9 = vcombine.low %v4767_v2, %v4767_v2  ;;  %v4807_v10 = vcombine.low %v4761_v0, %v4761_v0  ;;  %v4826_v13 = vrot.slane %v4761_v0, 2 }
  0x25   : > { %454 = vst [vmem:[#allocation2 + $0x10] sm:$0x7] %v4767_v2  ;;  %1272 = vst [vmem:[#allocation2 + $0x198] sm:$0x70] %v4767_v2  ;;  %475 = vrot.lane.b32.xlu1 %v4770_v3, %s7221_s30  ;;  %471 = vrot.lane.b32.xlu0 %v4777_v4, %s7221_s30  ;;  %v4797_v8 = vrot.slane %v4783_v5, 5  ;;  %v4816_v11 = vrot.slane %v4787_v6, 5  ;;  %v4895_v25 = vcombine.low %v4764_v1, %v4764_v1 }
  0x26   : > { %453 = vst [vmem:[#allocation2 + $0x8] sm:$0x7] %v4783_v5  ;;  %455 = vst [vmem:[#allocation2 + $0x18] sm:$0x7] %v4787_v6  ;;  %v4819_v12 = vrot.slane %v4783_v5, 2  ;;  %v4829_v14 = vrot.slane %v4787_v6, 2  ;;  %v4941_v35 = vcombine.high %v4761_v0, %v4761_v0 }
  0x27   : > { %1271 = vst [vmem:[#allocation2 + $0x190] sm:$0x70] %v4802_v9  ;;  %1273 = vst [vmem:[#allocation2 + $0x1a0] sm:$0x70] %v4807_v10  ;;  %v4836_v15 = vrot.slane %v4767_v2, 7  ;;  %v4839_v16 = vrot.slane %v4783_v5, 7 }
  0x28   : > { %v4846_v17 = vrot.slane %v4761_v0, 7  ;;  %v4849_v18 = vrot.slane %v4787_v6, 7  ;;  %v4864_v19 = vrot.slane %v4767_v2, 1  ;;  %v4867_v20 = vrot.slane %v4783_v5, 1  ;;  %457 = vst [vmem:[#allocation2 + $0x28] sm:$0x7] %v4941_v35 }
  0x29   : > { %514 = vrot.lane.b32.xlu1 %v4794_v7, %s7199_s15  ;;  %469 = vrot.lane.b32.xlu0 %v4797_v8, %s7221_s30  ;;  %v4874_v21 = vrot.slane %v4761_v0, 1  ;;  %v4877_v22 = vrot.slane %v4787_v6, 1  ;;  %v4884_v23 = vrot.slane %v4764_v1, 2  ;;  %v4887_v24 = vrot.slane %v4764_v1, 5  ;;  %v5004_v39 = vld [vmem:[%s4758_s24 + $0x18] sm:$0x77] }
  0x2a   : > { %v4898_v26 = vrot.slane %v4764_v1, 7  ;;  %v4905_v27 = vrot.slane %v4783_v5, 6  ;;  %v638_v28 = vrot.slane %v4764_v1, 1  ;;  %v4914_v29 = vrot.slane %v4787_v6, 6  ;;  %s7211_s24 = smov 60   ;;  %s7277_s0 = smov 62  }
  0x2b   : > { %v4917_v30 = vrot.slane %v4767_v2, 6  ;;  %v4924_v31 = vrot.slane %v4783_v5, 3  ;;  %v4927_v32 = vrot.slane %v4761_v0, 6  ;;  %v4934_v33 = vrot.slane %v4787_v6, 3  ;;  %1276 = vst.msk [vmem:[#allocation2 + $0x1b8] sm:$0x70] %vm7253_vm13, %v5004_v39 }
  0x2c   : > { %v4937_v34 = vrot.slane %v4767_v2, 3  ;;  %v4949_v36 = vrot.slane %v4761_v0, 3  ;;  %v693_v37 = vrot.slane %v4764_v1, 6  ;;  %v740_v38 = vrot.slane %v4764_v1, 3 }
  0x2d   : > { %473 = vrot.lane.b32.xlu1 %v4816_v11, %s7221_s30  ;;  %512 = vrot.lane.b32.xlu0 %v4819_v12, %s7199_s15  ;;  %v5008_v40 = vcombine.low %v5004_v39, %v5004_v39 }
  0x2f   : > { %1275 = vst [vmem:[#allocation2 + $0x1b0] sm:$0x70] %v5008_v40 }
  0x31   : > { %518 = vrot.lane.b32.xlu1 %v4826_v13, %s7199_s15  ;;  %516 = vrot.lane.b32.xlu0 %v4829_v14, %s7199_s15 }
  0x35   : > { %565 = vrot.lane.b32.xlu1 %v4836_v15, %s7195_s16  ;;  %563 = vrot.lane.b32.xlu0 %v4839_v16, %s7195_s16 }
  0x39   : > { %569 = vrot.lane.b32.xlu1 %v4846_v17, %s7195_s16  ;;  %567 = vrot.lane.b32.xlu0 %v4849_v18, %s7195_s16 }
  0x3d   : > { %605 = vrot.lane.b32.xlu1 %v4802_v9, %s7197_s20  ;;  %603 = vrot.lane.b32.xlu0 %v4764_v1, %s7197_s20 }
  0x41   : > { %609 = vrot.lane.b32.xlu1 %v4807_v10, %s7197_s20  ;;  %607 = vrot.lane.b32.xlu0 %v4767_v2, %s7197_s20 }
  0x45   : > { %650 = vrot.lane.b32.xlu1 %v4864_v19, %s7193_s21  ;;  %648 = vrot.lane.b32.xlu0 %v4867_v20, %s7193_s21 }
  0x49   : > { %654 = vrot.lane.b32.xlu1 %v4874_v21, %s7193_s21  ;;  %652 = vrot.lane.b32.xlu0 %v4877_v22, %s7193_s21 }
  0x4d   : > { %510 = vrot.lane.b32.xlu1 %v4884_v23, %s7199_s15  ;;  %467 = vrot.lane.b32.xlu0 %v4887_v24, %s7221_s30  ;;  %s7231_s15 = smov 63  }
  0x51   : > { %601 = vrot.lane.b32.xlu1 %v4895_v25, %s7197_s20  ;;  %561 = vrot.lane.b32.xlu0 %v4898_v26, %s7195_s16  ;;  %s7205_s16 = smov 92   ;;  %s7203_s20 = smov 64  }
  0x55   : > { %703 = vrot.lane.b32.xlu1 %v4905_v27, %s7226_s22  ;;  %646 = vrot.lane.b32.xlu0 %v638_v28, %s7193_s21  ;;  %s7201_s21 = smov 93  }
  0x59   : > { %707 = vrot.lane.b32.xlu1 %v4914_v29, %s7226_s22  ;;  %705 = vrot.lane.b32.xlu0 %v4917_v30, %s7226_s22 }
  0x5d   : > { %750 = vrot.lane.b32.xlu1 %v4924_v31, %s7227_s23  ;;  %709 = vrot.lane.b32.xlu0 %v4927_v32, %s7226_s22 }
  0x61   : > { %754 = vrot.lane.b32.xlu1 %v4934_v33, %s7227_s23  ;;  %752 = vrot.lane.b32.xlu0 %v4937_v34, %s7227_s23 }
  0x65   : > { %789 = vrot.lane.b32.xlu1 %v4783_v5, %s7201_s21  ;;  %756 = vrot.lane.b32.xlu0 %v4949_v36, %s7227_s23 }
  0x69   : > { %793 = vrot.lane.b32.xlu1 %v4787_v6, %s7201_s21  ;;  %791 = vrot.lane.b32.xlu0 %v4767_v2, %s7201_s21 }
  0x6d   : > { %828 = vrot.lane.b32.xlu1 %v4797_v8, %s7205_s16  ;;  %795 = vrot.lane.b32.xlu0 %v4761_v0, %s7201_s21 }
  0x71   : > { %832 = vrot.lane.b32.xlu1 %v4816_v11, %s7205_s16  ;;  %830 = vrot.lane.b32.xlu0 %v4777_v4, %s7205_s16 }
  0x75   : > { %867 = vrot.lane.b32.xlu1 %v4819_v12, %s7203_s20  ;;  %834 = vrot.lane.b32.xlu0 %v4770_v3, %s7205_s16 }
  0x79   : > { %871 = vrot.lane.b32.xlu1 %v4829_v14, %s7203_s20  ;;  %869 = vrot.lane.b32.xlu0 %v4794_v7, %s7203_s20 }
  0x7d   : > { %701 = vrot.lane.b32.xlu1 %v693_v37, %s7226_s22  ;;  %873 = vrot.lane.b32.xlu0 %v4826_v13, %s7203_s20 }
  0x81   : > { %787 = vrot.lane.b32.xlu1 %v4764_v1, %s7201_s21  ;;  %748 = vrot.lane.b32.xlu0 %v740_v38, %s7227_s23  ;;  %s7207_s21 = smov 62  }
  0x85   : > { %865 = vrot.lane.b32.xlu1 %v4884_v23, %s7203_s20  ;;  %826 = vrot.lane.b32.xlu0 %v4887_v24, %s7205_s16  ;;  %s7213_s20 = smov 61   ;;  %s7209_s16 = smov 32  }
  0x89   : > { %915 = vrot.lane.b32.xlu1 %v4836_v15, %s7231_s15  ;;  %913 = vrot.lane.b32.xlu0 %v4839_v16, %s7231_s15 }
  0x8d   : > { %919 = vrot.lane.b32.xlu1 %v4846_v17, %s7231_s15  ;;  %917 = vrot.lane.b32.xlu0 %v4849_v18, %s7231_s15 }
  0x91   : > { %953 = vrot.lane.b32.xlu1 %v4802_v9, %s7207_s21  ;;  %951 = vrot.lane.b32.xlu0 %v4764_v1, %s7207_s21 }
  0x95   : > { %957 = vrot.lane.b32.xlu1 %v4807_v10, %s7207_s21  ;;  %955 = vrot.lane.b32.xlu0 %v4767_v2, %s7207_s21 }
  0x97   : > { %v5015_v41 = vpop.permute.xlu1 %475  ;;  %v472_v42 = vpop.permute.xlu0 %471 }
  0x99   : > { %991 = vrot.lane.b32.xlu1 %v4864_v19, %s7213_s20  ;;  %989 = vrot.lane.b32.xlu0 %v4867_v20, %s7213_s20 }
  0x9b   : > { %v515_v43 = vpop.permute.xlu1 %514  ;;  %v5021_v44 = vpop.permute.xlu0 %469 }
  0x9c   : > { %v483_v45 = vsel %vm481_vm0, %v5021_v44, %v472_v42 }
  0x9d   : > { %496 = vst [vmem:[#allocation2 + $0x8] sm:$0x38] %v483_v45  ;;  %995 = vrot.lane.b32.xlu1 %v4874_v21, %s7213_s20  ;;  %993 = vrot.lane.b32.xlu0 %v4877_v22, %s7213_s20 }
  0x9f   : > { %v474_v46 = vpop.permute.xlu1 %473  ;;  %v5029_v47 = vpop.permute.xlu0 %512 }
  0xa0   : > { %v484_v48 = vsel %vm481_vm0, %v472_v42, %v474_v46  ;;  %v485_v49 = vsel %vm481_vm0, %v474_v46, %v5015_v41  ;;  %v526_v50 = vsel %vm7256_vm1, %v5029_v47, %v515_v43 }
  0xa1   : > { %497 = vst [vmem:[#allocation2 + $0x10] sm:$0x38] %v484_v48  ;;  %498 = vst [vmem:[#allocation2 + $0x18] sm:$0x38] %v485_v49  ;;  %1036 = vrot.lane.b32.xlu1 %v4917_v30, %s7211_s24  ;;  %1034 = vrot.lane.b32.xlu0 %v4905_v27, %s7211_s24 }
  0xa2   : > { %539 = vst [vmem:[#allocation2 + $0x40] ss:$-52 sps:$4 sm:$0xc1] %v526_v50  }
  0xa3   : > { %v5040_v51 = vpop.permute.xlu1 %518  ;;  %v517_v52 = vpop.permute.xlu0 %516 }
  0xa4   : > { %v527_v53 = vsel %vm7256_vm1, %v515_v43, %v517_v52  ;;  %v528_v54 = vsel %vm7256_vm1, %v517_v52, %v5040_v51 }
  0xa5   : > { %540 = vst [vmem:[#allocation2 + $0x48] ss:$-52 sps:$4 sm:$0xc1] %v527_v53   ;;  %541 = vst [vmem:[#allocation2 + $0x50] ss:$-52 sps:$4 sm:$0xc1] %v528_v54   ;;  %1040 = vrot.lane.b32.xlu1 %v4927_v32, %s7211_s24  ;;  %1038 = vrot.lane.b32.xlu0 %v4914_v29, %s7211_s24 }
  0xa7   : > { %v566_v55 = vpop.permute.xlu1 %565  ;;  %v5049_v56 = vpop.permute.xlu0 %563 }
  0xa8   : > { %v577_v57 = vsel %vm575_vm2, %v5049_v56, %v566_v55 }
  0xa9   : > { %590 = vst [vmem:[#allocation2 + $0x40] sm:$0xe] %v577_v57  ;;  %1074 = vrot.lane.b32.xlu1 %v4937_v34, %s7209_s16  ;;  %1072 = vrot.lane.b32.xlu0 %v4924_v31, %s7209_s16 }
  0xab   : > { %v5057_v58 = vpop.permute.xlu1 %569  ;;  %v568_v59 = vpop.permute.xlu0 %567 }
  0xac   : > { %v578_v60 = vsel %vm575_vm2, %v566_v55, %v568_v59  ;;  %v579_v61 = vsel %vm575_vm2, %v568_v59, %v5057_v58  ;;  %v1418_v55 = vld [vmem:[#allocation2 + $0x8] sm:$0xff] }
  0xad   : > { %591 = vst [vmem:[#allocation2 + $0x48] sm:$0xe] %v578_v60  ;;  %592 = vst [vmem:[#allocation2 + $0x50] sm:$0xe] %v579_v61  ;;  %1078 = vrot.lane.b32.xlu1 %v4949_v36, %s7209_s16  ;;  %1076 = vrot.lane.b32.xlu0 %v4934_v33, %s7209_s16  ;;  %v1420_v61 = vld [vmem:[#allocation2 + $0x18] sm:$0xff] }
  0xaf   : > { %v606_v62 = vpop.permute.xlu1 %605  ;;  %v604_v63 = vpop.permute.xlu0 %603 }
  0xb0   : > { %v617_v9 = vsel %vm615_vm3, %v604_v63, %v606_v62 }
  0xb1   : > { %630 = vst [vmem:[#allocation2 + $0x40] sm:$0x70] %v617_v9  ;;  %949 = vrot.lane.b32.xlu1 %v4895_v25, %s7207_s21  ;;  %911 = vrot.lane.b32.xlu0 %v4898_v26, %s7231_s15  ;;  %s7223_s21 = smov 31   ;;  %v1419_v9 = vld [vmem:[#allocation2 + $0x10] sm:$0xff] }
  0xb3   : > { %v5071_v10 = vpop.permute.xlu1 %609  ;;  %v5073_v42 = vpop.permute.xlu0 %607 }
  0xb4   : > { %v618_v43 = vsel %vm615_vm3, %v606_v62, %v5073_v42  ;;  %v619_v45 = vsel %vm615_vm3, %v5073_v42, %v5071_v10 }
  0xb5   : > { %631 = vst [vmem:[#allocation2 + $0x48] sm:$0x70] %v618_v43  ;;  %632 = vst [vmem:[#allocation2 + $0x50] sm:$0x70] %v619_v45  ;;  %1032 = vrot.lane.b32.xlu1 %v693_v37, %s7211_s24  ;;  %987 = vrot.lane.b32.xlu0 %v638_v28, %s7213_s20  ;;  %s7215_s24 = smov 29   ;;  %s7219_s20 = smov 28  }
  0xb7   : > { %v651_v25 = vpop.permute.xlu1 %650  ;;  %v649_v46 = vpop.permute.xlu0 %648 }
  0xb8   : > { %v664_v48 = vsel %vm662_vm4, %v649_v46, %v651_v25 }
  0xb9   : > { %678 = vst [vmem:[#allocation2 + $0x78] ss:$-52 sps:$4 sm:$0x83] %v664_v48   ;;  %1110 = vrot.lane.b32.xlu1 %v4783_v5, %s7223_s21  ;;  %1070 = vrot.lane.b32.xlu0 %v740_v38, %s7209_s16  ;;  %s7217_s16 = smov 30  }
  0xbb   : > { %v5092_v49 = vpop.permute.xlu1 %654  ;;  %v653_v37 = vpop.permute.xlu0 %652 }
  0xbc   : > { %v665_v50 = vsel %vm662_vm4, %v651_v25, %v653_v37  ;;  %v666_v28 = vsel %vm662_vm4, %v653_v37, %v5092_v49 }
  0xbd   : > { %679 = vst [vmem:[#allocation2 + $0x80] ss:$-52 sps:$4 sm:$0x83] %v665_v50   ;;  %680 = vst [vmem:[#allocation2 + $0x88] ss:$-52 sps:$4 sm:$0x83] %v666_v28   ;;  %1114 = vrot.lane.b32.xlu1 %v4787_v6, %s7223_s21  ;;  %1112 = vrot.lane.b32.xlu0 %v4767_v2, %s7223_s21 }
  0xbf   : > { %v511_v52 = vpop.permute.xlu1 %510  ;;  %v468_v53 = vpop.permute.xlu0 %467 }
  0xc0   : > { %v525_v38 = vsel %vm7256_vm1, %v511_v52, %v5029_v47  ;;  %v482_v54 = vsel %vm481_vm0, %v468_v53, %v5021_v44  ;;  %v1425_v57 = vld [vmem:[#allocation2 + $0x40] sm:$0xff] }
  0xc1   : > { %538 = vst [vmem:[#allocation2 + $0x38] ss:$-52 sps:$4 sm:$0xc1] %v525_v38   ;;  %495 = vst [vmem:[#allocation2] sm:$0x38] %v482_v54  ;;  %1148 = vrot.lane.b32.xlu1 %v4797_v8, %s7217_s16  ;;  %1116 = vrot.lane.b32.xlu0 %v4761_v0, %s7223_s21  ;;  %v3907_v2 = vpack.c.bf16 %v1425_v57, %v1418_v55 }
  0xc3   : > { %v602_v59 = vpop.permute.xlu1 %601  ;;  %v562_v60 = vpop.permute.xlu0 %561  ;;  %3908 = vmatprep.subr.bf16.mxu0 %v3907_v2 }
  0xc4   : > { %v616_v47 = vsel %vm615_vm3, %v602_v59, %v604_v63  ;;  %v576_v44 = vsel %vm575_vm2, %v562_v60, %v5049_v56  ;;  %v1427_v62 = vld [vmem:[#allocation2 + $0x50] sm:$0xff]  ;;  %v1426_v43 = vld [vmem:[#allocation2 + $0x48] sm:$0xff] }
  0xc5   : > { %629 = vst [vmem:[#allocation2 + $0x38] sm:$0x70] %v616_v47  ;;  %589 = vst [vmem:[#allocation2 + $0x38] sm:$0xe] %v576_v44  ;;  %1152 = vrot.lane.b32.xlu1 %v4816_v11, %s7217_s16  ;;  %1150 = vrot.lane.b32.xlu0 %v4777_v4, %s7217_s16  ;;  %v3929_v8 = vpack.c.bf16 %v1427_v62, %v1420_v61  ;;  %v3931_v45 = vpack.c.bf16 %v1426_v43, %v1419_v9 }
  0xc7   : > { %v5116_v25 = vpop.permute.xlu1 %703  ;;  %3930 = vmatprep.subr.bf16.mxu1 %v3929_v8  ;;  %v647_v63 = vpop.permute.xlu0 %646 }
  0xc8   : > { %v663_v48 = vsel %vm662_vm4, %v647_v63, %v649_v46  ;;  %3932 = vmatpush1.bf16.msra.mxu1 %v3931_v45  ;;  %v1417_v50 = vld [vmem:[#allocation2] sm:$0xff] }
  0xc9   : > { %677 = vst [vmem:[#allocation2 + $0x70] ss:$-52 sps:$4 sm:$0x83] %v663_v48   ;;  %1186 = vrot.lane.b32.xlu1 %v4819_v12, %s7215_s24  ;;  %1154 = vrot.lane.b32.xlu0 %v4770_v3, %s7217_s16 }
  0xcb   : > { %v708_v11 = vpop.permute.xlu1 %707  ;;  %v706_v4 = vpop.permute.xlu0 %705 }
  0xcc   : > { %v719_v56 = vsel %vm717_vm5, %v5116_v25, %v706_v4  ;;  %v720_v37 = vsel %vm717_vm5, %v706_v4, %v708_v11 }
  0xcd   : > { %733 = vst [vmem:[#allocation2 + $0x78] sm:$0x1c] %v719_v56  ;;  %734 = vst [vmem:[#allocation2 + $0x80] sm:$0x1c] %v720_v37  ;;  %1190 = vrot.lane.b32.xlu1 %v4829_v14, %s7215_s24  ;;  %1188 = vrot.lane.b32.xlu0 %v4794_v7, %s7215_s24 }
  0xcf   : > { %v5130_v12 = vpop.permute.xlu1 %750  ;;  %v5132_v46 = vpop.permute.xlu0 %709 }
  0xd0   : > { %v721_v3 = vsel %vm717_vm5, %v708_v11, %v5132_v46  ;;  %v1424_v28 = vld [vmem:[#allocation2 + $0x38] sm:$0xff] }
  0xd1   : > { %735 = vst [vmem:[#allocation2 + $0x88] sm:$0x1c] %v721_v3  ;;  %1231 = vrot.lane.b32.xlu1 %v4839_v16, %s7219_s20  ;;  %1192 = vrot.lane.b32.xlu0 %v4826_v13, %s7215_s24  ;;  %v3909_v14 = vpack.c.bf16 %v1424_v28, %v1417_v50 }
  0xd3   : > { %v755_v7 = vpop.permute.xlu1 %754  ;;  %v753_v52 = vpop.permute.xlu0 %752  ;;  %3910 = vmatpush1.bf16.msra.mxu0 %v3909_v14 }
  0xd4   : > { %v766_v53 = vsel %vm764_vm6, %v5130_v12, %v753_v52  ;;  %v767_v38 = vsel %vm764_vm6, %v753_v52, %v755_v7 }
  0xd5   : > { %780 = vst [vmem:[#allocation2 + $0x78] sm:$0xe0] %v766_v53  ;;  %781 = vst [vmem:[#allocation2 + $0x80] sm:$0xe0] %v767_v38  ;;  %1235 = vrot.lane.b32.xlu1 %v4849_v18, %s7219_s20  ;;  %1233 = vrot.lane.b32.xlu0 %v4836_v15, %s7219_s20 }
  0xd7   : > { %v790_v16 = vpop.permute.xlu1 %789  ;;  %v5147_v13 = vpop.permute.xlu0 %756 }
  0xd8   : > { %v768_v54 = vsel %vm764_vm6, %v755_v7, %v5147_v13  ;;  %v5219_v7 = vrot.slane %v4941_v35, 3 }
  0xd9   : > { %782 = vst [vmem:[#allocation2 + $0x88] sm:$0xe0] %v768_v54  ;;  %1279 = vrot.lane.b32.xlu1 %v4864_v19, %s7221_s30  ;;  %1237 = vrot.lane.b32.xlu0 %v4846_v17, %s7219_s20  ;;  %v5162_v19 = vrot.slane %v4941_v35, 1 }
  0xdb   : > { %v794_v55 = vpop.permute.xlu1 %793  ;;  %v792_v57 = vpop.permute.xlu0 %791 }
  0xdc   : > { %v805_v18 = vsel %vm803_vm7, %v790_v16, %v792_v57  ;;  %v806_v15 = vsel %vm803_vm7, %v792_v57, %v794_v55  ;;  %v1432_v11 = vld [vmem:[#allocation2 + $0x78] sm:$0xff]  ;;  %v1433_v14 = vld [vmem:[#allocation2 + $0x80] sm:$0xff] }
  0xdd   : > { %819 = vst [vmem:[#allocation2 + $0xb0] sm:$0x7] %v805_v18  ;;  %820 = vst [vmem:[#allocation2 + $0xb8] sm:$0x7] %v806_v15  ;;  %1283 = vrot.lane.b32.xlu1 %v4874_v21, %s7221_s30  ;;  %1281 = vrot.lane.b32.xlu0 %v4877_v22, %s7221_s30 }
  0xdf   : > { %v829_v2 = vpop.permute.xlu1 %828  ;;  %v5164_v17 = vpop.permute.xlu0 %795 }
  0xe0   : > { %v807_v59 = vsel %vm803_vm7, %v794_v55, %v5164_v17 }
  0xe1   : > { %821 = vst [vmem:[#allocation2 + $0xc0] sm:$0x7] %v807_v59  ;;  %1108 = vrot.lane.b32.xlu1 %v4764_v1, %s7223_s21  ;;  %1285 = vrot.lane.b32.xlu0 %v5162_v19, %s7221_s30  ;;  %s7274_s21 = smov 93  }
  0xe3   : > { %v833_v21 = vpop.permute.xlu1 %832  ;;  %v831_v60 = vpop.permute.xlu0 %830 }
  0xe4   : > { %v844_v22 = vsel %vm842_vm8, %v829_v2, %v831_v60  ;;  %v845_v61 = vsel %vm842_vm8, %v831_v60, %v833_v21  ;;  %v5252_v60 = vrot.slane %v4941_v35, 5 }
  0xe5   : > { %858 = vst [vmem:[#allocation2 + $0xb0] sm:$0x38] %v844_v22  ;;  %859 = vst [vmem:[#allocation2 + $0xb8] sm:$0x38] %v845_v61  ;;  %1184 = vrot.lane.b32.xlu1 %v4884_v23, %s7215_s24  ;;  %1146 = vrot.lane.b32.xlu0 %v4887_v24, %s7217_s16  ;;  %s7270_s24 = smov 126   ;;  %s7271_s16 = smov 124  }
  0xe7   : > { %v868_v47 = vpop.permute.xlu1 %867  ;;  %v5178_v1 = vpop.permute.xlu0 %834 }
  0xe8   : > { %v846_v44 = vsel %vm842_vm8, %v833_v21, %v5178_v1  ;;  %v4600_v21 = vmov 0.0  }
  0xe9   : > { %860 = vst [vmem:[#allocation2 + $0xc0] sm:$0x38] %v846_v44  ;;  %1277 = vrot.lane.b32.xlu1 %v4867_v20, %s7221_s30  ;;  %1229 = vrot.lane.b32.xlu0 %v4898_v26, %s7219_s20  ;;  %s7272_s20 = smov 125  }
  0xea   : > { %1654 = vmatprep.mubr.f32.mxu1 %v4600_v21  ;;  %1583 = vmatprep.mubr.f32.mxu0 %v4600_v21 }
  0xeb   : > { %v872_v62 = vpop.permute.xlu1 %871  ;;  %v870_v9 = vpop.permute.xlu0 %869 }
  0xec   : > { %v883_v23 = vsel %vm7225_vm9, %v868_v47, %v870_v9  ;;  %v884_v24 = vsel %vm7225_vm9, %v870_v9, %v872_v62 }
  0xed   : > { %897 = vst [vmem:[#allocation2 + $0xe8] ss:$-52 sps:$4 sm:$0xc1] %v883_v23   ;;  %898 = vst [vmem:[#allocation2 + $0xf0] ss:$-52 sps:$4 sm:$0xc1] %v884_v24   ;;  %1320 = vrot.lane.b32.xlu1 %v4917_v30, %s7270_s24  ;;  %611 = vrot.lane.b32.xlu0 %v4761_v0, %s7271_s16 }
  0xee   : > { %v5203_v30 = vrot.slane %v4941_v35, 6  ;;  %v5280_v24 = vrot.slane %v5004_v39, 7 }
  0xef   : > { %v702_v43 = vpop.permute.xlu1 %701  ;;  %v5192_v20 = vpop.permute.xlu0 %873 }
  0xf0   : > { %v718_v26 = vsel %vm717_vm5, %v702_v43, %v5116_v25  ;;  %v885_v8 = vsel %vm7225_vm9, %v872_v62, %v5192_v20  ;;  %v5283_v43 = vrot.slane %v4941_v35, 7 }
  0xf1   : > { %732 = vst [vmem:[#allocation2 + $0x70] sm:$0x1c] %v718_v26  ;;  %899 = vst [vmem:[#allocation2 + $0xf8] ss:$-52 sps:$4 sm:$0xc1] %v885_v8   ;;  %1324 = vrot.lane.b32.xlu1 %v4927_v32, %s7270_s24  ;;  %1322 = vrot.lane.b32.xlu0 %v4914_v29, %s7270_s24 }
  0xf3   : > { %v788_v45 = vpop.permute.xlu1 %787  ;;  %v749_v63 = vpop.permute.xlu0 %748 }
  0xf4   : > { %v804_v48 = vsel %vm803_vm7, %v788_v45, %v790_v16  ;;  %v765_v25 = vsel %vm764_vm6, %v749_v63, %v5130_v12  ;;  %v1439_v4 = vld [vmem:[#allocation2 + $0xb0] sm:$0xff]  ;;  %v1440_v37 = vld [vmem:[#allocation2 + $0xb8] sm:$0xff]  ;;  %v1434_v12 = vld [vmem:[#allocation2 + $0x88] sm:$0xff] }
  0xf5   : > { %818 = vst [vmem:[#allocation2 + $0xa8] sm:$0x7] %v804_v48  ;;  %779 = vst [vmem:[#allocation2 + $0x70] sm:$0xe0] %v765_v25  ;;  %1354 = vrot.lane.b32.xlu1 %v4937_v34, %s7272_s20  ;;  %1326 = vrot.lane.b32.xlu0 %v5203_v30, %s7270_s24  ;;  %v3911_v29 = vpack.c.bf16 %v1439_v4, %v1432_v11  ;;  %v3935_v52 = vpack.c.bf16 %v1440_v37, %v1433_v14  ;;  %v5300_v4 = vrot.slane %v5004_v39, 1 }
  0xf7   : > { %v866_v32 = vpop.permute.xlu1 %865  ;;  %v827_v56 = vpop.permute.xlu0 %826  ;;  %3912 = vmatprep.subr.bf16.mxu0 %v3911_v29 }
  0xf8   : > { %v882_v3 = vsel %vm7225_vm9, %v866_v32, %v868_v47  ;;  %v843_v50 = vsel %vm842_vm8, %v827_v56, %v829_v2  ;;  %v1441_v28 = vld [vmem:[#allocation2 + $0xc0] sm:$0xff]  ;;  %vm7229_vm9 = vcmask 1009664  }
  0xf9   : > { %896 = vst [vmem:[#allocation2 + $0xe0] ss:$-52 sps:$4 sm:$0xc1] %v882_v3   ;;  %857 = vst [vmem:[#allocation2 + $0xa8] sm:$0x38] %v843_v50  ;;  %1358 = vrot.lane.b32.xlu1 %v4949_v36, %s7272_s20  ;;  %1356 = vrot.lane.b32.xlu0 %v4934_v33, %s7272_s20  ;;  %v3933_v34 = vpack.c.bf16 %v1441_v28, %v1434_v12  ;;  %v5312_v3 = vrot.slane %v5004_v39, 6 }
  0xfa   : > { %459 = vst.msk [vmem:[#allocation2 + $0x30] sm:$0x7] %vm7229_vm9, %v5004_v39  ;;  %vm7246_vm9 = vcmask 252928  }
  0xfb   : > { %v916_v53 = vpop.permute.xlu1 %915  ;;  %3934 = vmatprep.subr.bf16.mxu1 %v3933_v34  ;;  %v5221_v38 = vpop.permute.xlu0 %913  ;;  %v5320_v34 = vrot.slane %v5004_v39, 3 }
  0xfc   : > { %v929_v16 = vsel %vm927_vm10, %v5221_v38, %v916_v53  ;;  %3936 = vmatpush1.bf16.msra.mxu1 %v3935_v52  ;;  %v1431_v57 = vld [vmem:[#allocation2 + $0x70] sm:$0xff] }
  0xfd   : > { %943 = vst [vmem:[#allocation2 + $0xe8] sm:$0xe] %v929_v16  ;;  %1388 = vrot.lane.b32.xlu1 %v4787_v6, %s7271_s16  ;;  %1360 = vrot.lane.b32.xlu0 %v5219_v7, %s7272_s20 }
  0xff   : > { %v5229_v33 = vpop.permute.xlu1 %919  ;;  %v918_v36 = vpop.permute.xlu0 %917 }
 0x100   : > { %v930_v54 = vsel %vm927_vm10, %v916_v53, %v918_v36  ;;  %v931_v55 = vsel %vm927_vm10, %v918_v36, %v5229_v33  ;;  %v1438_v18 = vld [vmem:[#allocation2 + $0xa8] sm:$0xff] }
 0x101   : > { %944 = vst [vmem:[#allocation2 + $0xf0] sm:$0xe] %v930_v54  ;;  %945 = vst [vmem:[#allocation2 + $0xf8] sm:$0xe] %v931_v55  ;;  %1318 = vrot.lane.b32.xlu1 %v4905_v27, %s7270_s24  ;;  %1390 = vrot.lane.b32.xlu0 %v4941_v35, %s7271_s16  ;;  %v3913_v6 = vpack.c.bf16 %v1438_v18, %v1431_v57  ;;  %v5249_v27 = vrot.slane %v5004_v39, 5 }
 0x103   : > { %v954_v15 = vpop.permute.xlu1 %953  ;;  %v5238_v2 = vpop.permute.xlu0 %951  ;;  %3914 = vmatpush1.bf16.msra.mxu0 %v3913_v6 }
 0x104   : > { %v967_v59 = vsel %vm7255_vm11, %v5238_v2, %v954_v15 }
 0x105   : > { %981 = vst [vmem:[#allocation2 + $0xe8] sm:$0x70] %v967_v59  ;;  %1386 = vrot.lane.b32.xlu1 %v4783_v5, %s7271_s16  ;;  %1352 = vrot.lane.b32.xlu0 %v4924_v31, %s7272_s20  ;;  %v5264_v5 = vrot.slane %v5004_v39, 2  ;;  %v5267_v31 = vrot.slane %v4941_v35, 2 }
 0x107   : > { %v5254_v22 = vpop.permute.xlu1 %957  ;;  %v956_v61 = vpop.permute.xlu0 %955 }
 0x108   : > { %v968_v47 = vsel %vm7255_vm11, %v954_v15, %v956_v61  ;;  %v969_v44 = vsel %vm7255_vm11, %v956_v61, %v5254_v22 }
 0x109   : > { %982 = vst [vmem:[#allocation2 + $0xf0] sm:$0x70] %v968_v47  ;;  %983 = vst [vmem:[#allocation2 + $0xf8] sm:$0x70] %v969_v44  ;;  %479 = vrot.lane.b32.xlu1 %v5249_v27, %s7221_s30  ;;  %477 = vrot.lane.b32.xlu0 %v5252_v60, %s7221_s30  ;;  %s7273_s30 = smov 96  }
 0x10b   : > { %v992_v62 = vpop.permute.xlu1 %991  ;;  %v5271_v9 = vpop.permute.xlu0 %989 }
 0x10c   : > { %v1005_v23 = vsel %vm7237_vm12, %v5271_v9, %v992_v62 }
 0x10d   : > { %1019 = vst [vmem:[#allocation2 + $0x120] ss:$-52 sps:$4 sm:$0x83] %v1005_v23   ;;  %522 = vrot.lane.b32.xlu1 %v5264_v5, %s7270_s24  ;;  %520 = vrot.lane.b32.xlu0 %v5267_v31, %s7270_s24 }
 0x10f   : > { %v5285_v26 = vpop.permute.xlu1 %995  ;;  %v994_v8 = vpop.permute.xlu0 %993 }
 0x110   : > { %v1006_v45 = vsel %vm7237_vm12, %v992_v62, %v994_v8  ;;  %v1007_v63 = vsel %vm7237_vm12, %v994_v8, %v5285_v26 }
 0x111   : > { %1020 = vst [vmem:[#allocation2 + $0x128] ss:$-52 sps:$4 sm:$0x83] %v1006_v45   ;;  %1021 = vst [vmem:[#allocation2 + $0x130] ss:$-52 sps:$4 sm:$0x83] %v1007_v63   ;;  %573 = vrot.lane.b32.xlu1 %v5280_v24, %s7272_s20  ;;  %571 = vrot.lane.b32.xlu0 %v5283_v43, %s7272_s20 }
 0x113   : > { %v1037_v48 = vpop.permute.xlu1 %1036  ;;  %v1035_v25 = vpop.permute.xlu0 %1034 }
 0x114   : > { %v1050_v11 = vsel %vm7233_vm14, %v1035_v25, %v1037_v48  ;;  %v1446_v18 = vld [vmem:[#allocation2 + $0xe8] sm:$0xff] }
 0x115   : > { %1064 = vst [vmem:[#allocation2 + $0x120] sm:$0x1c] %v1050_v11  ;;  %656 = vrot.lane.b32.xlu1 %v5162_v19, %s7273_s30  ;;  %613 = vrot.lane.b32.xlu0 %v5008_v40, %s7271_s16 }
 0x117   : > { %v5302_v29 = vpop.permute.xlu1 %1040  ;;  %v1039_v32 = vpop.permute.xlu0 %1038 }
 0x118   : > { %v1051_v56 = vsel %vm7233_vm14, %v1037_v48, %v1039_v32  ;;  %v1052_v37 = vsel %vm7233_vm14, %v1039_v32, %v5302_v29  ;;  %v1448_v61 = vld [vmem:[#allocation2 + $0xf8] sm:$0xff]  ;;  %v1447_v62 = vld [vmem:[#allocation2 + $0xf0] sm:$0xff] }
 0x119   : > { %1065 = vst [vmem:[#allocation2 + $0x128] sm:$0x1c] %v1051_v56  ;;  %1066 = vst [vmem:[#allocation2 + $0x130] sm:$0x1c] %v1052_v37  ;;  %711 = vrot.lane.b32.xlu1 %v5203_v30, %s7226_s22  ;;  %658 = vrot.lane.b32.xlu0 %v5300_v4, %s7273_s30 }
 0x11b   : > { %v1075_v50 = vpop.permute.xlu1 %1074  ;;  %v1073_v12 = vpop.permute.xlu0 %1072 }
 0x11c   : > { %v1088_v28 = vsel %vm7230_vm15, %v1073_v12, %v1075_v50 }
 0x11d   : > { %1102 = vst [vmem:[#allocation2 + $0x120] sm:$0xe0] %v1088_v28  ;;  %758 = vrot.lane.b32.xlu1 %v5219_v7, %s7227_s23  ;;  %713 = vrot.lane.b32.xlu0 %v5312_v3, %s7226_s22  ;;  %s7275_s22 = smov 92  }
 0x11f   : > { %v5322_v14 = vpop.permute.xlu1 %1078  ;;  %v1077_v52 = vpop.permute.xlu0 %1076 }
 0x120   : > { %v1089_v53 = vsel %vm7230_vm15, %v1075_v50, %v1077_v52  ;;  %v1090_v16 = vsel %vm7230_vm15, %v1077_v52, %v5322_v14 }
 0x121   : > { %1103 = vst [vmem:[#allocation2 + $0x128] sm:$0xe0] %v1089_v53  ;;  %1104 = vst [vmem:[#allocation2 + $0x130] sm:$0xe0] %v1090_v16  ;;  %797 = vrot.lane.b32.xlu1 %v4941_v35, %s7274_s21  ;;  %760 = vrot.lane.b32.xlu0 %v5320_v34, %s7227_s23  ;;  %s7276_s23 = smov 64  }
 0x123   : > { %v950_v36 = vpop.permute.xlu1 %949  ;;  %v912_v54 = vpop.permute.xlu0 %911 }
 0x124   : > { %v966_v55 = vsel %vm7255_vm11, %v950_v36, %v5238_v2  ;;  %v928_v57 = vsel %vm927_vm10, %v912_v54, %v5221_v38  ;;  %v1453_v6 = vld [vmem:[#allocation2 + $0x120] sm:$0xff] }
 0x125   : > { %980 = vst [vmem:[#allocation2 + $0xe0] sm:$0x70] %v966_v55  ;;  %942 = vst [vmem:[#allocation2 + $0xe0] sm:$0xe] %v928_v57  ;;  %836 = vrot.lane.b32.xlu1 %v5252_v60, %s7275_s22  ;;  %799 = vrot.lane.b32.xlu0 %v5004_v39, %s7274_s21  ;;  %v3915_v15 = vpack.c.bf16 %v1453_v6, %v1446_v18 }
 0x127   : > { %v1033_v59 = vpop.permute.xlu1 %1032  ;;  %v988_v2 = vpop.permute.xlu0 %987  ;;  %3916 = vmatprep.subr.bf16.mxu0 %v3915_v15 }
 0x128   : > { %v1049_v38 = vsel %vm7233_vm14, %v1033_v59, %v1035_v25  ;;  %v1004_v47 = vsel %vm7237_vm12, %v988_v2, %v5271_v9  ;;  %v1455_v44 = vld [vmem:[#allocation2 + $0x130] sm:$0xff]  ;;  %v1454_v23 = vld [vmem:[#allocation2 + $0x128] sm:$0xff]  ;;  %vm7244_vm14 = vcmask 236544   ;;  %vm7243_vm12 = vcmask 228352  }
 0x129   : > { %1063 = vst [vmem:[#allocation2 + $0x118] sm:$0x1c] %v1049_v38  ;;  %1018 = vst [vmem:[#allocation2 + $0x118] ss:$-52 sps:$4 sm:$0x83] %v1004_v47   ;;  %875 = vrot.lane.b32.xlu1 %v5267_v31, %s7276_s23  ;;  %838 = vrot.lane.b32.xlu0 %v5249_v27, %s7275_s22  ;;  %v3937_v8 = vpack.c.bf16 %v1455_v44, %v1448_v61  ;;  %v3939_v45 = vpack.c.bf16 %v1454_v23, %v1447_v62 }
 0x12a   : > { %v5417_v62 = vcombine.high %v5004_v39, %v5004_v39 }
 0x12b   : > { %v5348_v63 = vpop.permute.xlu1 %1110  ;;  %3938 = vmatprep.subr.bf16.mxu1 %v3937_v8  ;;  %v1071_v48 = vpop.permute.xlu0 %1070 }
 0x12c   : > { %v1087_v25 = vsel %vm7230_vm15, %v1071_v48, %v1073_v12  ;;  %3940 = vmatpush1.bf16.msra.mxu1 %v3939_v45  ;;  %vm7245_vm15 = vcmask 244736  }
 0x12d   : > { %1101 = vst [vmem:[#allocation2 + $0x118] sm:$0xe0] %v1087_v25  ;;  %921 = vrot.lane.b32.xlu1 %v5283_v43, %s7231_s15  ;;  %877 = vrot.lane.b32.xlu0 %v5264_v5, %s7276_s23 }
 0x12f   : > { %v1115_v9 = vpop.permute.xlu1 %1114  ;;  %v1113_v11 = vpop.permute.xlu0 %1112 }
 0x130   : > { %v1126_v32 = vsel %vm7246_vm9, %v5348_v63, %v1113_v11  ;;  %v1127_v56 = vsel %vm7246_vm9, %v1113_v11, %v1115_v9  ;;  %v1445_v28 = vld [vmem:[#allocation2 + $0xe0] sm:$0xff] }
 0x131   : > { %1140 = vst [vmem:[#allocation2 + $0x158] sm:$0x7] %v1126_v32  ;;  %1141 = vst [vmem:[#allocation2 + $0x160] sm:$0x7] %v1127_v56  ;;  %959 = vrot.lane.b32.xlu1 %v4761_v0, %s7277_s0  ;;  %923 = vrot.lane.b32.xlu0 %v5280_v24, %s7231_s15  ;;  %s7279_s15 = smov 60  }
 0x133   : > { %v5362_v37 = vpop.permute.xlu1 %1148  ;;  %v5364_v50 = vpop.permute.xlu0 %1116 }
 0x134   : > { %v1128_v12 = vsel %vm7246_vm9, %v1115_v9, %v5364_v50  ;;  %v1452_v52 = vld [vmem:[#allocation2 + $0x118] sm:$0xff] }
 0x135   : > { %1142 = vst [vmem:[#allocation2 + $0x168] sm:$0x7] %v1128_v12  ;;  %997 = vrot.lane.b32.xlu1 %v5162_v19, %s7278_s17  ;;  %961 = vrot.lane.b32.xlu0 %v5008_v40, %s7277_s0  ;;  %v3917_v0 = vpack.c.bf16 %v1452_v52, %v1445_v28  ;;  %v5449_v12 = vrot.slane %v5417_v62, 3  ;;  %v4601_v28 = vmov 0  }
 0x136   : > { %4482 = vset.pattern.permute.xlu0 %v4601_v28  ;;  %4508 = vset.pattern.permute.xlu1 %v4601_v28 }
 0x137   : > { %v1153_v53 = vpop.permute.xlu1 %1152  ;;  %v1151_v16 = vpop.permute.xlu0 %1150  ;;  %3918 = vmatpush1.bf16.msra.mxu0 %v3917_v0 }
 0x138   : > { %v1164_v36 = vsel %vm7245_vm15, %v5362_v37, %v1151_v16  ;;  %v1165_v54 = vsel %vm7245_vm15, %v1151_v16, %v1153_v53 }
 0x139   : > { %1178 = vst [vmem:[#allocation2 + $0x158] sm:$0x38] %v1164_v36  ;;  %1179 = vst [vmem:[#allocation2 + $0x160] sm:$0x38] %v1165_v54  ;;  %1042 = vrot.lane.b32.xlu1 %v5203_v30, %s7279_s15  ;;  %999 = vrot.lane.b32.xlu0 %v5300_v4, %s7278_s17 }
 0x13b   : > { %v1187_v19 = vpop.permute.xlu1 %1186  ;;  %v5379_v40 = vpop.permute.xlu0 %1154 }
 0x13c   : > { %v1166_v55 = vsel %vm7245_vm15, %v1153_v53, %v5379_v40 }
 0x13d   : > { %1180 = vst [vmem:[#allocation2 + $0x168] sm:$0x38] %v1166_v55  ;;  %1080 = vrot.lane.b32.xlu1 %v5219_v7, %s7280_s27  ;;  %1044 = vrot.lane.b32.xlu0 %v5312_v3, %s7279_s15 }
 0x13f   : > { %v1191_v57 = vpop.permute.xlu1 %1190  ;;  %v1189_v18 = vpop.permute.xlu0 %1188 }
 0x140   : > { %v1202_v30 = vsel %vm7244_vm14, %v1187_v19, %v1189_v18  ;;  %v1203_v6 = vsel %vm7244_vm14, %v1189_v18, %v1191_v57 }
 0x141   : > { %1216 = vst [vmem:[#allocation2 + $0x190] ss:$-52 sps:$4 sm:$0xc1] %v1202_v30   ;;  %1217 = vst [vmem:[#allocation2 + $0x198] ss:$-52 sps:$4 sm:$0xc1] %v1203_v6   ;;  %1118 = vrot.lane.b32.xlu1 %v4941_v35, %s7281_s14  ;;  %1082 = vrot.lane.b32.xlu0 %v5320_v34, %s7280_s27 }
 0x143   : > { %v1232_v15 = vpop.permute.xlu1 %1231  ;;  %v5393_v7 = vpop.permute.xlu0 %1192 }
 0x144   : > { %v1204_v59 = vsel %vm7244_vm14, %v1191_v57, %v5393_v7 }
 0x145   : > { %1218 = vst [vmem:[#allocation2 + $0x1a0] ss:$-52 sps:$4 sm:$0xc1] %v1204_v59   ;;  %1156 = vrot.lane.b32.xlu1 %v5252_v60, %s7282_s19  ;;  %1120 = vrot.lane.b32.xlu0 %v5004_v39, %s7281_s14 }
 0x147   : > { %v1236_v2 = vpop.permute.xlu1 %1235  ;;  %v1234_v61 = vpop.permute.xlu0 %1233 }
 0x148   : > { %v1247_v35 = vsel %vm7243_vm12, %v1232_v15, %v1234_v61  ;;  %v1248_v38 = vsel %vm7243_vm12, %v1234_v61, %v1236_v2  ;;  %v1460_v32 = vld [vmem:[#allocation2 + $0x158] sm:$0xff] }
 0x149   : > { %1261 = vst [vmem:[#allocation2 + $0x190] sm:$0xe] %v1247_v35  ;;  %1262 = vst [vmem:[#allocation2 + $0x198] sm:$0xe] %v1248_v38  ;;  %1194 = vrot.lane.b32.xlu1 %v5267_v31, %s7283_s25  ;;  %1158 = vrot.lane.b32.xlu0 %v5249_v27, %s7282_s19  ;;  %v825_v38 = vrot.slane %v5417_v62, 5 }
 0x14b   : > { %v1280_v47 = vpop.permute.xlu1 %1279  ;;  %v5407_v60 = vpop.permute.xlu0 %1237 }
 0x14c   : > { %v1249_v44 = vsel %vm7243_vm12, %v1236_v2, %v5407_v60  ;;  %v1462_v36 = vld [vmem:[#allocation2 + $0x168] sm:$0xff] }
 0x14d   : > { %1263 = vst [vmem:[#allocation2 + $0x1a0] sm:$0xe] %v1249_v44  ;;  %1239 = vrot.lane.b32.xlu1 %v5283_v43, %s7284_s28  ;;  %1196 = vrot.lane.b32.xlu0 %v5264_v5, %s7283_s25  ;;  %v5426_v5 = vrot.slane %v5417_v62, 1 }
 0x14f   : > { %v1284_v31 = vpop.permute.xlu1 %1283  ;;  %v1282_v23 = vpop.permute.xlu0 %1281 }
 0x150   : > { %v1292_v27 = vsel %vm481_vm0, %v1280_v47, %v1282_v23  ;;  %v1293_v8 = vsel %vm481_vm0, %v1282_v23, %v1284_v31  ;;  %v910_v23 = vrot.slane %v5417_v62, 7 }
 0x151   : > { %1305 = vst [vmem:[#allocation2 + $0x1c8] ss:$-52 sps:$4 sm:$0x83] %v1292_v27   ;;  %1306 = vst [vmem:[#allocation2 + $0x1d0] ss:$-52 sps:$4 sm:$0x83] %v1293_v8   ;;  %1287 = vrot.lane.b32.xlu1 %v5300_v4, %s7285_s13  ;;  %1241 = vrot.lane.b32.xlu0 %v5280_v24, %s7284_s28 }
 0x152   : > { %v5439_v24 = vrot.slane %v5417_v62, 6  ;;  %v864_v27 = vrot.slane %v5417_v62, 2 }
 0x153   : > { %v1109_v43 = vpop.permute.xlu1 %1108  ;;  %v5428_v45 = vpop.permute.xlu0 %1285 }
 0x154   : > { %v1125_v48 = vsel %vm7246_vm9, %v1109_v43, %v5348_v63  ;;  %v1294_v25 = vsel %vm481_vm0, %v1284_v31, %v5428_v45  ;;  %vm7248_vm9 = vcmask 1012739  }
 0x155   : > { %1139 = vst [vmem:[#allocation2 + $0x150] sm:$0x7] %v1125_v48  ;;  %1307 = vst [vmem:[#allocation2 + $0x1d8] ss:$-52 sps:$4 sm:$0x83] %v1294_v25   ;;  %1328 = vrot.lane.b32.xlu1 %v5312_v3, %s7270_s24  ;;  %1289 = vrot.lane.b32.xlu0 %v5426_v5, %s7285_s13 }
 0x157   : > { %v1185_v4 = vpop.permute.xlu1 %1184  ;;  %v1147_v9 = vpop.permute.xlu0 %1146 }
 0x158   : > { %v1201_v11 = vsel %vm7244_vm14, %v1185_v4, %v1187_v19  ;;  %v1163_v63 = vsel %vm7245_vm15, %v1147_v9, %v5362_v37  ;;  %v1467_v56 = vld [vmem:[#allocation2 + $0x190] sm:$0xff]  ;;  %v1468_v37 = vld [vmem:[#allocation2 + $0x198] sm:$0xff]  ;;  %v1461_v19 = vld [vmem:[#allocation2 + $0x160] sm:$0xff]  ;;  %vm7247_vm14 = vmmov 1  }
 0x159   : > { %1215 = vst [vmem:[#allocation2 + $0x188] ss:$-52 sps:$4 sm:$0xc1] %v1201_v11   ;;  %1177 = vst [vmem:[#allocation2 + $0x150] sm:$0x38] %v1163_v63  ;;  %1362 = vrot.lane.b32.xlu1 %v5320_v34, %s7272_s20  ;;  %1330 = vrot.lane.b32.xlu0 %v5439_v24, %s7270_s24  ;;  %v3919_v3 = vpack.c.bf16 %v1467_v56, %v1460_v32  ;;  %v3943_v55 = vpack.c.bf16 %v1468_v37, %v1461_v19 }
 0x15b   : > { %v1278_v52 = vpop.permute.xlu1 %1277  ;;  %v1230_v0 = vpop.permute.xlu0 %1229  ;;  %3920 = vmatprep.subr.bf16.mxu0 %v3919_v3 }
 0x15c   : > { %v1291_v53 = vsel %vm481_vm0, %v1278_v52, %v1280_v47  ;;  %v1246_v16 = vsel %vm7243_vm12, %v1230_v0, %v1232_v15  ;;  %v1469_v34 = vld [vmem:[#allocation2 + $0x1a0] sm:$0xff]  ;;  %vm1497_vm12 = vcmask 1042432  }
 0x15d   : > { %1304 = vst [vmem:[#allocation2 + $0x1c0] ss:$-52 sps:$4 sm:$0x83] %v1291_v53   ;;  %1260 = vst [vmem:[#allocation2 + $0x188] sm:$0xe] %v1246_v16  ;;  %1392 = vrot.lane.b32.xlu1 %v5004_v39, %s7271_s16  ;;  %1364 = vrot.lane.b32.xlu0 %v5449_v12, %s7272_s20  ;;  %v3941_v54 = vpack.c.bf16 %v1469_v34, %v1462_v36 }
 0x15e   : > { %vm5512_vm15 = vmpackc.low %vm1497_vm12, %vm7247_vm14  ;;  %vm7249_vm12 = vcmask 1014790   ;;  %vm7250_vm14 = vcmask 1007616  }
 0x15f   : > { %v1321_v57 = vpop.permute.xlu1 %1320  ;;  %3942 = vmatprep.subr.bf16.mxu1 %v3941_v54  ;;  %v5457_v18 = vpop.permute.xlu0 %611 }
 0x160   : > { %v620_v30 = vsel %vm615_vm3, %v5071_v10, %v5457_v18  ;;  %3944 = vmatpush1.bf16.msra.mxu1 %v3943_v55  ;;  %v1459_v61 = vld [vmem:[#allocation2 + $0x150] sm:$0xff] }
 0x161   : > { %633 = vst [vmem:[#allocation2 + $0x58] sm:$0x70] %v620_v30  ;;  %660 = vrot.lane.b32.xlu1 %v5426_v5, %s7273_s30  ;;  %1394 = vrot.lane.b32.xlu0 %v5417_v62, %s7271_s16 }
 0x163   : > { %v1325_v6 = vpop.permute.xlu1 %1324  ;;  %v1323_v15 = vpop.permute.xlu0 %1322 }
 0x164   : > { %v1333_v59 = vsel %vm7256_vm1, %v1321_v57, %v1323_v15  ;;  %v1334_v2 = vsel %vm7256_vm1, %v1323_v15, %v1325_v6  ;;  %v1466_v35 = vld [vmem:[#allocation2 + $0x188] sm:$0xff]  ;;  %v1487_v15 = vld [vmem:[%s7181_s2] sm:$0x3f] }
 0x165   : > { %1346 = vst [vmem:[#allocation2 + $0x1c8] sm:$0x1c] %v1333_v59  ;;  %1347 = vst [vmem:[#allocation2 + $0x1d0] sm:$0x1c] %v1334_v2  ;;  %762 = vrot.lane.b32.xlu1 %v5449_v12, %s7286_s12  ;;  %715 = vrot.lane.b32.xlu0 %v5439_v24, %s7287_s18  ;;  %v3921_v10 = vpack.c.bf16 %v1466_v35, %v1459_v61  ;;  %s7288_s18 = smov 63  }
 0x167   : > { %v1355_v47 = vpop.permute.xlu1 %1354  ;;  %v5473_v44 = vpop.permute.xlu0 %1326  ;;  %3922 = vmatpush1.bf16.msra.mxu0 %v3921_v10 }
 0x168   : > { %v1335_v31 = vsel %vm7256_vm1, %v1325_v6, %v5473_v44 }
 0x169   : > { %1348 = vst [vmem:[#allocation2 + $0x1d8] sm:$0x1c] %v1335_v31  ;;  %840 = vrot.lane.b32.xlu1 %v825_v38, %s7275_s22  ;;  %801 = vrot.lane.b32.xlu0 %v5417_v62, %s7274_s21  ;;  %v4603_v31 = vmov 0.0|0.0   ;;  %s4610_s21 = smov 113   ;;  %s4611_s22 = smov 112  }
 0x16b   : > { %v1359_v8 = vpop.permute.xlu1 %1358  ;;  %v1357_v43 = vpop.permute.xlu0 %1356 }
 0x16c   : > { %v1367_v48 = vsel %vm575_vm2, %v1355_v47, %v1357_v43  ;;  %v1368_v25 = vsel %vm575_vm2, %v1357_v43, %v1359_v8 }
 0x16d   : > { %1380 = vst [vmem:[#allocation2 + $0x1c8] sm:$0xe0] %v1367_v48  ;;  %1381 = vst [vmem:[#allocation2 + $0x1d0] sm:$0xe0] %v1368_v25  ;;  %925 = vrot.lane.b32.xlu1 %v910_v23, %s7288_s18  ;;  %879 = vrot.lane.b32.xlu0 %v864_v27, %s7276_s23  ;;  %s4613_s23 = smov 100   ;;  %s4614_s18 = smov 99  }
 0x16f   : > { %v1389_v4 = vpop.permute.xlu1 %1388  ;;  %v5486_v9 = vpop.permute.xlu0 %1360 }
 0x170   : > { %v1397_v11 = vsel %vm615_vm3, %v5073_v42, %v1389_v4  ;;  %v1398_v63 = vsel %vm615_vm3, %v1389_v4, %v5457_v18  ;;  %v1369_v32 = vsel %vm575_vm2, %v1359_v8, %v5486_v9 }
 0x171   : > { %1410 = vst [vmem:[#allocation2 + $0x200] sm:$0x7] %v1397_v11  ;;  %1411 = vst [vmem:[#allocation2 + $0x208] sm:$0x7] %v1398_v63  ;;  %1001 = vrot.lane.b32.xlu1 %v5426_v5, %s7278_s17  ;;  %963 = vrot.lane.b32.xlu0 %v5004_v39, %s7277_s0  ;;  %s4606_s17 = smov 98   ;;  %s4615_s0 = smov 97  }
 0x172   : > { %1382 = vst [vmem:[#allocation2 + $0x1d8] sm:$0xe0] %v1369_v32 }
 0x173   : > { %v1319_v56 = vpop.permute.xlu1 %1318  ;;  %v5498_v3 = vpop.permute.xlu0 %1390 }
 0x174   : > { %v1332_v28 = vsel %vm7256_vm1, %v1319_v56, %v1321_v57  ;;  %v1399_v52 = vsel %vm615_vm3, %v5457_v18, %v5498_v3  ;;  %v1474_v53 = vld [vmem:[#allocation2 + $0x1c8] sm:$0xff]  ;;  %v1475_v30 = vld [vmem:[#allocation2 + $0x1d0] sm:$0xff] }
 0x175   : > { %1345 = vst [vmem:[#allocation2 + $0x1c0] sm:$0x1c] %v1332_v28  ;;  %1412 = vst [vmem:[#allocation2 + $0x210] sm:$0x7] %v1399_v52  ;;  %1084 = vrot.lane.b32.xlu1 %v5449_v12, %s7280_s27  ;;  %1046 = vrot.lane.b32.xlu0 %v5439_v24, %s7279_s15  ;;  %s4608_s15 = smov 72   ;;  %s4616_s27 = smov 86  }
 0x177   : > { %v1387_v5 = vpop.permute.xlu1 %1386  ;;  %v1353_v39 = vpop.permute.xlu0 %1352 }
 0x178   : > { %v1396_v0 = vsel %vm615_vm3, %v1387_v5, %v5073_v42  ;;  %v1366_v37 = vsel %vm575_vm2, %v1353_v39, %v1355_v47  ;;  %v1481_v16 = vld [vmem:[#allocation2 + $0x200] sm:$0x7]  ;;  %v1482_v34 = vld [vmem:[#allocation2 + $0x208] sm:$0x7] }
 0x179   : > { %1409 = vst [vmem:[#allocation2 + $0x1f8] sm:$0x7] %v1396_v0  ;;  %1379 = vst [vmem:[#allocation2 + $0x1c0] sm:$0xe0] %v1366_v37  ;;  %1160 = vrot.lane.b32.xlu1 %v825_v38, %s7282_s19  ;;  %1122 = vrot.lane.b32.xlu0 %v5417_v62, %s7281_s14  ;;  %v3923_v24 = vpack.c.bf16 %v1481_v16, %v1474_v53  ;;  %v1476_v55 = vld [vmem:[#allocation2 + $0x1d8] sm:$0xff]  ;;  %v3948_v6 = vpack.c.bf16 %v1482_v34, %v1475_v30  ;;  %s4605_s14 = smov 111  }
 0x17a   : > { %v5542_v38 = vld [vmem:[%s7180_s1] sm:$0x3f]  ;;  %s4607_s19 = smov 85  }
 0x17b   : > { %v480_v42 = vpop.permute.xlu1 %479  ;;  %v478_v12 = vpop.permute.xlu0 %477  ;;  %3925 = vmatprep.subr.msk.bf16.mxu0 %vm5512_vm15, %v3923_v24 }
 0x17c   : > { %502 = vst.msk [vmem:[#allocation2 + $0x30] sm:$0x38] %vm7248_vm9, %v480_v42  ;;  %v486_v54 = vsel %vm481_vm0, %v5015_v41, %v478_v12  ;;  %v487_v19 = vsel %vm481_vm0, %v478_v12, %v480_v42  ;;  %v1483_v57 = vld [vmem:[#allocation2 + $0x210] sm:$0x7]  ;;  %vm7254_vm9 = vcmask 613376  }
 0x17d   : > { %499 = vst [vmem:[#allocation2 + $0x20] sm:$0x38] %v486_v54  ;;  %500 = vst [vmem:[#allocation2 + $0x28] sm:$0x38] %v487_v19  ;;  %1243 = vrot.lane.b32.xlu1 %v910_v23, %s7284_s28  ;;  %1198 = vrot.lane.b32.xlu0 %v864_v27, %s7283_s25  ;;  %v3945_v62 = vpack.c.bf16 %v1483_v57, %v1476_v55  ;;  %s4617_s25 = smov 84   ;;  %s4618_s28 = smov 83  }
 0x17f   : > { %v523_v41 = vpop.permute.xlu1 %522  ;;  %3947 = vmatprep.subr.msk.bf16.mxu1 %vm5512_vm15, %v3945_v62  ;;  %v521_v59 = vpop.permute.xlu0 %520 }
 0x180   : > { %545 = vst.msk [vmem:[#allocation2 + $0x30] sm:$0xc0] %vm7249_vm12, %v523_v41  ;;  %v529_v2 = vsel %vm7256_vm1, %v5040_v51, %v521_v59  ;;  %v530_v61 = vsel %vm7256_vm1, %v521_v59, %v523_v41  ;;  %3950 = vmatpush1.bf16.msk.msra.mxu1 %vm5512_vm15, %v3948_v6  ;;  %v1473_v35 = vld [vmem:[#allocation2 + $0x1c0] sm:$0xff]  ;;  %v1480_v10 = vld [vmem:[#allocation2 + $0x1f8] sm:$0x7]  ;;  %vm595_vm12 = vcmask 1010689  }
 0x181   : > { %553 = vst.msk [vmem:[#allocation2 + $0x68] sm:$0x1] %vm7250_vm14, %v523_v41  ;;  %542 = vst [vmem:[#allocation2 + $0x58] ss:$-52 sps:$4 sm:$0xc1] %v529_v2   ;;  %v3926_v47 = vpack.c.bf16 %v1480_v10, %v1473_v35  ;;  %1490 = vperm.xlu0 %4482, %v1487_v15   ;;  %3973 = vmatprep.subr.bf16.mxu1 %v4603_v31  ;;  %vm7251_vm14 = vmmov 0  }
 0x182   : > { %543 = vst [vmem:[#allocation2 + $0x60] ss:$-52 sps:$4 sm:$0xc1] %v530_v61  }
 0x183   : > { %v574_v51 = vpop.permute.xlu1 %573  ;;  %v572_v23 = vpop.permute.xlu0 %571  ;;  %3928 = vmatpush1.bf16.msk.msra.mxu0 %vm5512_vm15, %v3926_v47  ;;  %3660 = vmatmul.mubr.msk.f32.vlgmr.msra.gmra.mrb[0].mxu1 %vm7254_vm9, %v5542_v38 }
 0x184   : > { %596 = vst.msk [vmem:[#allocation2 + $0x68] sm:$0xe] %vm595_vm12, %v574_v51  ;;  %v580_v27 = vsel %vm575_vm2, %v5057_v58, %v572_v23  ;;  %v581_v8 = vsel %vm575_vm2, %v572_v23, %v574_v51  ;;  %3799 = vmatprep.mubr.msk.f32.mxu1 %vm7251_vm14, %v4600_v21  ;;  %vm7291_vm14 = vcmask 523264  }
 0x185   : > { %593 = vst [vmem:[#allocation2 + $0x58] sm:$0xe] %v580_v27  ;;  %594 = vst [vmem:[#allocation2 + $0x60] sm:$0xe] %v581_v8 }
 0x186   : > { %3657 = vmatmul.mubr.msk.f32.vlgmr.msra.gmra.mrb[0].mxu0 %vm7254_vm9, %v5542_v38 }
 0x187   : > { %v657_v43 = vpop.permute.xlu1 %656  ;;  %v614_v48 = vpop.permute.xlu0 %613  ;;  %1725 = vmatprep.mubr.f32.mxu0 %v4600_v21 }
 0x188   : > { %v667_v25 = vsel %vm662_vm4, %v5092_v49, %v657_v43  ;;  %v621_v58 = vsel %vm615_vm3, %v5457_v18, %v614_v48  ;;  %636 = vst.msk [vmem:[#allocation2 + $0x68] sm:$0x70] %vm7253_vm13, %v614_v48  ;;  %v1421_v16 = vld [vmem:[#allocation2 + $0x20] sm:$0xff]  ;;  %vm7292_vm13 = vmmov %vm7291_vm14 }
 0x189   : > { %681 = vst [vmem:[#allocation2 + $0x90] ss:$-52 sps:$4 sm:$0x83] %v667_v25   ;;  %634 = vst [vmem:[#allocation2 + $0x60] sm:$0x70] %v621_v58  ;;  %v1422_v52 = vld [vmem:[#allocation2 + $0x28] sm:$0xff] }
 0x18b   : > { %v712_v4 = vpop.permute.xlu1 %711  ;;  %v5563_v11 = vpop.permute.xlu0 %658 }
 0x18c   : > { %v722_v63 = vsel %vm717_vm5, %v5132_v46, %v712_v4  ;;  %v668_v32 = vsel %vm662_vm4, %v657_v43, %v5563_v11 }
 0x18d   : > { %736 = vst [vmem:[#allocation2 + $0x90] sm:$0x1c] %v722_v63  ;;  %682 = vst [vmem:[#allocation2 + $0x98] ss:$-52 sps:$4 sm:$0x83] %v668_v32  }
 0x18f   : > { %v759_v56 = vpop.permute.xlu1 %758  ;;  %v5569_v49 = vpop.permute.xlu0 %713 }
 0x190   : > { %v769_v18 = vsel %vm764_vm6, %v5147_v13, %v759_v56  ;;  %v723_v28 = vsel %vm717_vm5, %v712_v4, %v5569_v49  ;;  %v1428_v46 = vld [vmem:[#allocation2 + $0x58] sm:$0xff] }
 0x191   : > { %783 = vst [vmem:[#allocation2 + $0x90] sm:$0xe0] %v769_v18  ;;  %737 = vst [vmem:[#allocation2 + $0x98] sm:$0x1c] %v723_v28  ;;  %v3953_v24 = vpack.c.bf16 %v1428_v46, %v1421_v16 }
 0x193   : > { %v798_v5 = vpop.permute.xlu1 %797  ;;  %v5575_v39 = vpop.permute.xlu0 %760 }
 0x194   : > { %v808_v0 = vsel %vm803_vm7, %v5164_v17, %v798_v5  ;;  %v770_v37 = vsel %vm764_vm6, %v759_v56, %v5575_v39  ;;  %v1429_v53 = vld [vmem:[#allocation2 + $0x60] sm:$0xff] }
 0x195   : > { %822 = vst [vmem:[#allocation2 + $0xc8] sm:$0x7] %v808_v0  ;;  %784 = vst [vmem:[#allocation2 + $0x98] sm:$0xe0] %v770_v37  ;;  %v3951_v13 = vpack.c.bf16 %v1429_v53, %v1422_v52 }
 0x197   : > { %v837_v42 = vpop.permute.xlu1 %836  ;;  %v5581_v12 = vpop.permute.xlu0 %799  ;;  %3952 = vmatprep.subr.bf16.mxu0 %v3951_v13 }
 0x198   : > { %v847_v34 = vsel %vm842_vm8, %v5178_v1, %v837_v42  ;;  %v809_v54 = vsel %vm803_vm7, %v798_v5, %v5581_v12  ;;  %3954 = vmatpush1.bf16.msra.mxu0 %v3953_v24  ;;  %v1435_v23 = vld [vmem:[#allocation2 + $0x90] sm:$0xff] }
 0x199   : > { %861 = vst [vmem:[#allocation2 + $0xc8] sm:$0x38] %v847_v34  ;;  %823 = vst [vmem:[#allocation2 + $0xd0] sm:$0x7] %v809_v54 }
 0x19b   : > { %v876_v17 = vpop.permute.xlu1 %875  ;;  %v5587_v19 = vpop.permute.xlu0 %838 }
 0x19c   : > { %v886_v55 = vsel %vm7291_vm14, %v5192_v20, %v876_v17  ;;  %v848_v57 = vsel %vm842_vm8, %v837_v42, %v5587_v19  ;;  %v1436_v2 = vld [vmem:[#allocation2 + $0x98] sm:$0xff]  ;;  %vm7294_vm14 = vcmask 490496  }
 0x19d   : > { %900 = vst [vmem:[#allocation2 + $0x100] ss:$-52 sps:$4 sm:$0xc1] %v886_v55   ;;  %862 = vst [vmem:[#allocation2 + $0xd0] sm:$0x38] %v848_v57 }
 0x19f   : > { %v922_v62 = vpop.permute.xlu1 %921  ;;  %v5593_v30 = vpop.permute.xlu0 %877 }
 0x1a0   : > { %v932_v1 = vsel %vm927_vm10, %v5229_v33, %v922_v62  ;;  %v887_v6 = vsel %vm7292_vm13, %v876_v17, %v5593_v30  ;;  %vm7293_vm13 = vcmask 498688  }
 0x1a1   : > { %946 = vst [vmem:[#allocation2 + $0x100] sm:$0xe] %v932_v1  ;;  %901 = vst [vmem:[#allocation2 + $0x108] ss:$-52 sps:$4 sm:$0xc1] %v887_v6  }
 0x1a2   : > { %vm7295_vm9 = vmmov %vm7293_vm13 }
 0x1a3   : > { %v960_v15 = vpop.permute.xlu1 %959  ;;  %v5599_v41 = vpop.permute.xlu0 %923 }
 0x1a4   : > { %v970_v20 = vsel %vm7255_vm11, %v5254_v22, %v960_v15  ;;  %v933_v59 = vsel %vm927_vm10, %v922_v62, %v5599_v41  ;;  %v1442_v33 = vld [vmem:[#allocation2 + $0xc8] sm:$0xff] }
 0x1a5   : > { %984 = vst [vmem:[#allocation2 + $0x100] sm:$0x70] %v970_v20  ;;  %947 = vst [vmem:[#allocation2 + $0x108] sm:$0xe] %v933_v59  ;;  %v3957_v27 = vpack.c.bf16 %v1442_v33, %v1435_v23 }
 0x1a7   : > { %v998_v61 = vpop.permute.xlu1 %997  ;;  %v5605_v35 = vpop.permute.xlu0 %961 }
 0x1a8   : > { %v1008_v10 = vsel %vm7293_vm13, %v5285_v26, %v998_v61  ;;  %v971_v47 = vsel %vm7255_vm11, %v960_v15, %v5605_v35  ;;  %v1443_v51 = vld [vmem:[#allocation2 + $0xd0] sm:$0xff]  ;;  %vm7296_vm13 = vcmask 261120   ;;  %vm7297_vm11 = vmmov %vm7294_vm14 }
 0x1a9   : > { %1022 = vst [vmem:[#allocation2 + $0x138] ss:$-52 sps:$4 sm:$0x83] %v1008_v10   ;;  %985 = vst [vmem:[#allocation2 + $0x108] sm:$0x70] %v971_v47  ;;  %v3955_v22 = vpack.c.bf16 %v1443_v51, %v1436_v2 }
 0x1ab   : > { %v1043_v8 = vpop.permute.xlu1 %1042  ;;  %v5611_v43 = vpop.permute.xlu0 %999  ;;  %3956 = vmatprep.subr.bf16.mxu0 %v3955_v22 }
 0x1ac   : > { %v1053_v48 = vsel %vm7294_vm14, %v5302_v29, %v1043_v8  ;;  %v1009_v25 = vsel %vm7295_vm9, %v998_v61, %v5611_v43  ;;  %3958 = vmatpush1.bf16.msra.mxu0 %v3957_v27  ;;  %vm7298_vm14 = vcmask 252928   ;;  %vm7299_vm9 = vmmov %vm7296_vm13 }
 0x1ad   : > { %1067 = vst [vmem:[#allocation2 + $0x138] sm:$0x1c] %v1053_v48  ;;  %1023 = vst [vmem:[#allocation2 + $0x140] ss:$-52 sps:$4 sm:$0x83] %v1009_v25  }
 0x1af   : > { %v1081_v26 = vpop.permute.xlu1 %1080  ;;  %v5617_v58 = vpop.permute.xlu0 %1044 }
 0x1b0   : > { %v1091_v4 = vsel %vm7296_vm13, %v5322_v14, %v1081_v26  ;;  %v1054_v63 = vsel %vm7297_vm11, %v1043_v8, %v5617_v58  ;;  %vm7300_vm13 = vcmask 244736   ;;  %vm7301_vm11 = vmmov %vm7298_vm14  ;;  %v1449_v24 = vld [vmem:[#allocation2 + $0x100] sm:$0xff] }
 0x1b1   : > { %1105 = vst [vmem:[#allocation2 + $0x138] sm:$0xe0] %v1091_v4  ;;  %1068 = vst [vmem:[#allocation2 + $0x140] sm:$0x1c] %v1054_v63 }
 0x1b3   : > { %v1119_v32 = vpop.permute.xlu1 %1118  ;;  %v5623_v56 = vpop.permute.xlu0 %1082 }
 0x1b4   : > { %v1129_v29 = vsel %vm7298_vm14, %v5364_v50, %v1119_v32  ;;  %v1092_v18 = vsel %vm7299_vm9, %v1081_v26, %v5623_v56  ;;  %v1450_v46 = vld [vmem:[#allocation2 + $0x108] sm:$0xff]  ;;  %vm7302_vm14 = vcmask 236544   ;;  %vm7303_vm9 = vmmov %vm7300_vm13 }
 0x1b5   : > { %1143 = vst [vmem:[#allocation2 + $0x170] sm:$0x7] %v1129_v29  ;;  %1106 = vst [vmem:[#allocation2 + $0x140] sm:$0xe0] %v1092_v18 }
 0x1b7   : > { %v1157_v28 = vpop.permute.xlu1 %1156  ;;  %v5629_v52 = vpop.permute.xlu0 %1120 }
 0x1b8   : > { %v1167_v14 = vsel %vm7300_vm13, %v5379_v40, %v1157_v28  ;;  %v1130_v5 = vsel %vm7301_vm11, %v1119_v32, %v5629_v52  ;;  %v1456_v50 = vld [vmem:[#allocation2 + $0x138] sm:$0xff]  ;;  %vm7304_vm13 = vcmask 228352   ;;  %vm7305_vm11 = vmmov %vm7302_vm14 }
 0x1b9   : > { %1181 = vst [vmem:[#allocation2 + $0x170] sm:$0x38] %v1167_v14  ;;  %1144 = vst [vmem:[#allocation2 + $0x178] sm:$0x7] %v1130_v5  ;;  %v3961_v42 = vpack.c.bf16 %v1456_v50, %v1449_v24 }
 0x1bb   : > { %v1195_v0 = vpop.permute.xlu1 %1194  ;;  %v5635_v37 = vpop.permute.xlu0 %1158 }
 0x1bc   : > { %v1205_v53 = vsel %vm7302_vm14, %v5393_v7, %v1195_v0  ;;  %v1168_v13 = vsel %vm7303_vm9, %v1157_v28, %v5635_v37  ;;  %v1457_v16 = vld [vmem:[#allocation2 + $0x140] sm:$0xff]  ;;  %vm7306_vm14 = vmmov %vm7304_vm13  ;;  %vm683_vm9 = vcmask 1014791  }
 0x1bd   : > { %1219 = vst [vmem:[#allocation2 + $0x1a8] ss:$-52 sps:$4 sm:$0xc1] %v1205_v53   ;;  %1182 = vst [vmem:[#allocation2 + $0x178] sm:$0x38] %v1168_v13  ;;  %v3959_v40 = vpack.c.bf16 %v1457_v16, %v1450_v46 }
 0x1bf   : > { %v1240_v34 = vpop.permute.xlu1 %1239  ;;  %v5641_v54 = vpop.permute.xlu0 %1196  ;;  %3960 = vmatprep.subr.bf16.mxu0 %v3959_v40 }
 0x1c0   : > { %v1250_v17 = vsel %vm7304_vm13, %v5407_v60, %v1240_v34  ;;  %v1206_v55 = vsel %vm7305_vm11, %v1195_v0, %v5641_v54  ;;  %3962 = vmatpush1.bf16.msra.mxu0 %v3961_v42  ;;  %vm691_vm13 = vcmask 1008640   ;;  %vm738_vm11 = vcmask 1011714   ;;  %v1423_v0 = vld [vmem:[#allocation2 + $0x30] sm:$0xff] }
 0x1c1   : > { %1264 = vst [vmem:[#allocation2 + $0x1a8] sm:$0xe] %v1250_v17  ;;  %1220 = vst [vmem:[#allocation2 + $0x1b0] ss:$-52 sps:$4 sm:$0xc1] %v1206_v55  }
 0x1c3   : > { %v1288_v7 = vpop.permute.xlu1 %1287  ;;  %v5647_v57 = vpop.permute.xlu0 %1241 }
 0x1c4   : > { %v1295_v62 = vsel %vm481_vm0, %v5428_v45, %v1288_v7  ;;  %v1251_v1 = vsel %vm7306_vm14, %v1240_v34, %v5647_v57  ;;  %vm785_vm14 = vcmask 1014789   ;;  %v1463_v27 = vld [vmem:[#allocation2 + $0x170] sm:$0xff] }
 0x1c5   : > { %1308 = vst [vmem:[#allocation2 + $0x1e0] ss:$-52 sps:$4 sm:$0x83] %v1295_v62   ;;  %1265 = vst [vmem:[#allocation2 + $0x1b0] sm:$0xe] %v1251_v1 }
 0x1c7   : > { %v1329_v6 = vpop.permute.xlu1 %1328  ;;  %v1290_v15 = vpop.permute.xlu0 %1289 }
 0x1c8   : > { %v1336_v60 = vsel %vm7256_vm1, %v5473_v44, %v1329_v6  ;;  %v1296_v20 = vsel %vm481_vm0, %v1288_v7, %v1290_v15  ;;  %1310 = vst.msk [vmem:[#allocation2 + $0x1b8] sm:$0x80] %vm683_vm9, %v1290_v15  ;;  %v1464_v44 = vld [vmem:[#allocation2 + $0x178] sm:$0xff] }
 0x1c9   : > { %1317 = vst.msk [vmem:[#allocation2 + $0x1f0] sm:$0x3] %vm691_vm13, %v1290_v15  ;;  %1349 = vst [vmem:[#allocation2 + $0x1e0] sm:$0x1c] %v1336_v60 }
 0x1ca   : > { %1309 = vst [vmem:[#allocation2 + $0x1e8] ss:$-52 sps:$4 sm:$0x83] %v1296_v20  }
 0x1cb   : > { %v1363_v45 = vpop.permute.xlu1 %1362  ;;  %v1331_v59 = vpop.permute.xlu0 %1330 }
 0x1cc   : > { %v1370_v2 = vsel %vm575_vm2, %v5486_v9, %v1363_v45  ;;  %v1337_v61 = vsel %vm7256_vm1, %v1329_v6, %v1331_v59  ;;  %1351 = vst.msk [vmem:[#allocation2 + $0x1f0] sm:$0x1c] %vm738_vm11, %v1331_v59  ;;  %v1470_v47 = vld [vmem:[#allocation2 + $0x1a8] sm:$0xff]  ;;  %vm7307_vm1 = vcmask 1009664  }
 0x1cd   : > { %1383 = vst [vmem:[#allocation2 + $0x1e0] sm:$0xe0] %v1370_v2  ;;  %1350 = vst [vmem:[#allocation2 + $0x1e8] sm:$0x1c] %v1337_v61  ;;  %v3965_v8 = vpack.c.bf16 %v1470_v47, %v1463_v27 }
 0x1cf   : > { %v1393_v33 = vpop.permute.xlu1 %1392  ;;  %v1365_v10 = vpop.permute.xlu0 %1364 }
 0x1d0   : > { %v1400_v51 = vsel %vm615_vm3, %v5498_v3, %v1393_v33  ;;  %v1371_v22 = vsel %vm575_vm2, %v1363_v45, %v1365_v10  ;;  %1385 = vst.msk [vmem:[#allocation2 + $0x1f0] sm:$0xe0] %vm785_vm14, %v1365_v10 }
 0x1d1   : > { %v1471_v23 = vld [vmem:[#allocation2 + $0x1b0] sm:$0xff]  ;;  %1413 = vst [vmem:[#allocation2 + $0x218] sm:$0x7] %v1400_v51  ;;  %1384 = vst [vmem:[#allocation2 + $0x1e8] sm:$0xe0] %v1371_v22 }
 0x1d2   : > { %v3963_v9 = vpack.c.bf16 %v1471_v23, %v1464_v44 }
 0x1d3   : > { %v661_v48 = vpop.permute.xlu1 %660  ;;  %v1395_v25 = vpop.permute.xlu0 %1394 }
 0x1d4   : > { %3964 = vmatprep.subr.bf16.mxu0 %v3963_v9  ;;  %v669_v26 = vsel %vm662_vm4, %v5563_v11, %v661_v48  ;;  %v1401_v4 = vsel %vm615_vm3, %v1393_v33, %v1395_v25  ;;  %1415 = vst.msk [vmem:[#allocation2 + $0x228] sm:$0x7] %vm7307_vm1, %v1395_v25  ;;  %vm7308_vm1 = vcmask 1012739   ;;  %v1477_v13 = vld [vmem:[#allocation2 + $0x1e0] sm:$0xff] }
 0x1d5   : > { %3966 = vmatpush1.bf16.msra.mxu0 %v3965_v8  ;;  %684 = vst.msk [vmem:[#allocation2 + $0x68] sm:$0x80] %vm683_vm9, %v669_v26  ;;  %1414 = vst [vmem:[#allocation2 + $0x220] sm:$0x7] %v1401_v4 }
 0x1d6   : > { %692 = vst.msk [vmem:[#allocation2 + $0xa0] sm:$0x3] %vm691_vm13, %v669_v26 }
 0x1d7   : > { %v763_v3 = vpop.permute.xlu1 %762  ;;  %v716_v63 = vpop.permute.xlu0 %715  ;;  %v1479_v10 = vld [vmem:[#allocation2 + $0x1f0] sm:$0xff] }
 0x1d8   : > { %v771_v32 = vsel %vm764_vm6, %v5575_v39, %v763_v3  ;;  %v724_v29 = vsel %vm717_vm5, %v5569_v49, %v716_v63  ;;  %v1478_v11 = vld [vmem:[#allocation2 + $0x1e8] sm:$0xff]  ;;  %v1484_v14 = vld [vmem:[#allocation2 + $0x218] sm:$0x7]  ;;  %vm7309_vm5 = vcmask 1009664   ;;  %vm7310_vm6 = vcmask 523264  }
 0x1d9   : > { %786 = vst.msk [vmem:[#allocation2 + $0xa0] sm:$0xe0] %vm785_vm14, %v771_v32  ;;  %v3970_v16 = vpack.c.bf16 %v1484_v14, %v1477_v13  ;;  %v1893_v14 = vld [vmem:[%s7182_s3 + $0x10] sm:$0xff]  ;;  %v1902_v13 = vld [vmem:[%s7182_s3 + $0x58] sm:$0xff] }
 0x1da   : > { %739 = vst.msk [vmem:[#allocation2 + $0xa0] sm:$0x1c] %vm738_vm11, %v724_v29  ;;  %v1892_v29 = vld [vmem:[%s7182_s3 + $0x8] sm:$0xff] }
 0x1db   : > { %v841_v18 = vpop.permute.xlu1 %840  ;;  %v802_v28 = vpop.permute.xlu0 %801 }
 0x1dc   : > { %v849_v5 = vsel %vm842_vm8, %v5587_v19, %v841_v18  ;;  %v810_v46 = vsel %vm803_vm7, %v5581_v12, %v802_v28  ;;  %v1430_v50 = vld [vmem:[#allocation2 + $0x68] sm:$0xff]  ;;  %v1485_v39 = vld [vmem:[#allocation2 + $0x220] sm:$0x7]  ;;  %vm7311_vm7 = vcmask 1014790   ;;  %vm7312_vm8 = vcmask 1007616  }
 0x1dd   : > { %863 = vst.msk [vmem:[#allocation2 + $0xd8] sm:$0x38] %vm7308_vm1, %v849_v5  ;;  %v3974_v49 = vpack.c.bf16 %v1430_v50, %v1423_v0  ;;  %v3967_v53 = vpack.c.bf16 %v1485_v39, %v1478_v11  ;;  %vm7313_vm1 = vcmask 613376   ;;  %v1894_v11 = vld [vmem:[%s7182_s3 + $0x18] sm:$0xff]  ;;  %v1891_v18 = vld [vmem:[%s7182_s3] sm:$0xff]  ;;  %v1896_v5 = vld [vmem:[%s7182_s3 + $0x28] sm:$0xff] }
 0x1de   : > { %824 = vst.msk [vmem:[#allocation2 + $0xd8] sm:$0x7] %vm7309_vm5, %v810_v46  ;;  %vm7315_vm5 = vcmask 506880   ;;  %v3989_v28 = vpack.c.bf16 %v1894_v11, %v1892_v29  ;;  %v1898_v46 = vld [vmem:[%s7182_s3 + $0x38] sm:$0xff]  ;;  %v3991_v0 = vpack.c.bf16 %v1893_v14, %v1891_v18  ;;  %v1895_v39 = vld [vmem:[%s7182_s3 + $0x20] sm:$0xff]  ;;  %v1925_v29 = vld [vmem:[%s7182_s3 + $0x110] sm:$0xff] }
 0x1df   : > { %v926_v40 = vpop.permute.xlu1 %925  ;;  %3975 = vmatpush3.bf16.msra.mxu1 %v3974_v49  ;;  %v880_v24 = vpop.permute.xlu0 %879  ;;  %3969 = vmatprep.subr.msk.bf16.mxu0 %vm5512_vm15, %v3967_v53  ;;  %v3993_v50 = vpack.c.bf16 %v1898_v46, %v1896_v5  ;;  %v1897_v49 = vld [vmem:[%s7182_s3 + $0x30] sm:$0xff]  ;;  %v1900_v53 = vld [vmem:[%s7182_s3 + $0x48] sm:$0xff]  ;;  %v1930_v18 = vld [vmem:[%s7182_s3 + $0x138] sm:$0xff] }
 0x1e0   : > { %v934_v12 = vsel %vm927_vm10, %v5599_v41, %v926_v40  ;;  %v888_v19 = vsel %vm7310_vm6, %v5593_v30, %v880_v24  ;;  %3972 = vmatpush1.bf16.msk.msra.mxu0 %vm5512_vm15, %v3970_v16  ;;  %3976 = vmatprep.subr.bf16.mxu1 %v4603_v31  ;;  %vm7314_vm10 = vcmask 498688   ;;  %vm7316_vm6 = vcmask 1013764   ;;  %v1899_v24 = vld [vmem:[%s7182_s3 + $0x40] sm:$0xff]  ;;  %v1928_v11 = vld [vmem:[%s7182_s3 + $0x128] sm:$0xff]  ;;  %v1929_v46 = vld [vmem:[%s7182_s3 + $0x130] sm:$0xff] }
 0x1e1   : > { %948 = vst.msk [vmem:[#allocation2 + $0x110] sm:$0xe] %vm595_vm12, %v934_v12  ;;  %v1437_v1 = vld [vmem:[#allocation2 + $0xa0] sm:$0xff]  ;;  %3990 = vmatprep.subr.bf16.mxu0 %v3989_v28  ;;  %v3995_v16 = vpack.c.bf16 %v1897_v49, %v1895_v39  ;;  %v3997_v40 = vpack.c.bf16 %v1902_v13, %v1900_v53  ;;  %v1901_v12 = vld [vmem:[%s7182_s3 + $0x50] sm:$0xff]  ;;  %v4025_v14 = vpack.c.bf16 %v1930_v18, %v1928_v11 }
 0x1e2   : > { %902 = vst.msk [vmem:[#allocation2 + $0xd8] sm:$0xc0] %vm7311_vm7, %v888_v19  ;;  %vm7317_vm7 = vcmask 261120   ;;  %v1927_v5 = vld [vmem:[%s7182_s3 + $0x120] sm:$0xff]  ;;  %v1933_v13 = vld [vmem:[%s7182_s3 + $0x150] sm:$0xff] }
 0x1e3   : > { %909 = vst.msk [vmem:[#allocation2 + $0x110] sm:$0x1] %vm7312_vm8, %v888_v19  ;;  %v1002_v42 = vpop.permute.xlu1 %1001  ;;  %v964_v34 = vpop.permute.xlu0 %963  ;;  %3663 = vmatmul.mubr.msk.f32.vlgmr.msra.gmra.mrb[2].mxu0 %vm7313_vm1, %v5542_v38  ;;  %vm7318_vm8 = vcmask 490496   ;;  %vm7321_vm1 = vcmask 1012739   ;;  %v1904_v19 = vld [vmem:[%s7182_s3 + $0x68] sm:$0xff]  ;;  %v4027_v39 = vpack.c.bf16 %v1929_v46, %v1927_v5  ;;  %v1931_v53 = vld [vmem:[%s7182_s3 + $0x140] sm:$0xff] }
 0x1e4   : > { %v1010_v41 = vsel %vm7314_vm10, %v5611_v43, %v1002_v42  ;;  %v972_v30 = vsel %vm7315_vm5, %v5605_v35, %v964_v34  ;;  %vm7322_vm10 = vcmask 1009664   ;;  %vm7325_vm5 = vcmask 1014790   ;;  %3992 = vmatpush1.bf16.msra.mxu0 %v3991_v0  ;;  %v1906_v42 = vld [vmem:[%s7182_s3 + $0x78] sm:$0xff]  ;;  %v1932_v0 = vld [vmem:[%s7182_s3 + $0x148] sm:$0xff] }
 0x1e5   : > { %1024 = vst.msk [vmem:[#allocation2 + $0x110] sm:$0x80] %vm683_vm9, %v1010_v41  ;;  %vm7319_vm9 = vcmask 244736   ;;  %3994 = vmatprep.subr.bf16.mxu0 %v3993_v50  ;;  %v3999_v34 = vpack.c.bf16 %v1901_v12, %v1899_v24  ;;  %v1934_v50 = vld [vmem:[%s7182_s3 + $0x158] sm:$0xff]  ;;  %v4031_v24 = vpack.c.bf16 %v1933_v13, %v1931_v53 }
 0x1e6   : > { %1031 = vst.msk [vmem:[#allocation2 + $0x148] sm:$0x3] %vm691_vm13, %v1010_v41  ;;  %vm7320_vm13 = vcmask 252928   ;;  %v4001_v41 = vpack.c.bf16 %v1906_v42, %v1904_v19  ;;  %v4029_v49 = vpack.c.bf16 %v1934_v50, %v1932_v0  ;;  %v1935_v19 = vld [vmem:[%s7182_s3 + $0x160] sm:$0xff]  ;;  %v1937_v42 = vld [vmem:[%s7182_s3 + $0x170] sm:$0xff] }
 0x1e7   : > { %986 = vst.msk [vmem:[#allocation2 + $0x110] sm:$0x70] %vm7316_vm6, %v972_v30  ;;  %v1085_v17 = vpop.permute.xlu1 %1084  ;;  %v1047_v55 = vpop.permute.xlu0 %1046  ;;  %vm7326_vm6 = vcmask 1007616   ;;  %v1903_v30 = vld [vmem:[%s7182_s3 + $0x60] sm:$0xff] }
 0x1e8   : > { %v1093_v7 = vsel %vm7317_vm7, %v5623_v56, %v1085_v17  ;;  %v1055_v62 = vsel %vm7318_vm8, %v5617_v58, %v1047_v55  ;;  %3996 = vmatpush1.bf16.msra.mxu0 %v3995_v16  ;;  %v1905_v17 = vld [vmem:[%s7182_s3 + $0x70] sm:$0xff]  ;;  %v1908_v55 = vld [vmem:[%s7182_s3 + $0x88] sm:$0xff]  ;;  %vm2107_vm7 = vcmask 744448   ;;  %vm2402_vm8 = vcmask 62464  }
 0x1e9   : > { %v1444_v6 = vld [vmem:[#allocation2 + $0xd8] sm:$0xff]  ;;  %1107 = vst.msk [vmem:[#allocation2 + $0x148] sm:$0xe0] %vm785_vm14, %v1093_v7  ;;  %vm7324_vm14 = vcmask 236544   ;;  %3998 = vmatprep.subr.bf16.mxu0 %v3997_v40  ;;  %v1936_v16 = vld [vmem:[%s7182_s3 + $0x168] sm:$0xff] }
 0x1ea   : > { %1069 = vst.msk [vmem:[#allocation2 + $0x148] sm:$0x1c] %vm738_vm11, %v1055_v62  ;;  %v3977_v35 = vpack.c.bf16 %v1444_v6, %v1437_v1  ;;  %vm7323_vm11 = vcmask 228352   ;;  %v1910_v7 = vld [vmem:[%s7182_s3 + $0x98] sm:$0xff]  ;;  %v4003_v62 = vpack.c.bf16 %v1905_v17, %v1903_v30  ;;  %v1907_v6 = vld [vmem:[%s7182_s3 + $0x80] sm:$0xff]  ;;  %v4035_v30 = vpack.c.bf16 %v1937_v42, %v1935_v19  ;;  %v1960_v42 = vld [vmem:[%s7182_s3 + $0x228] sm:$0xff] }
 0x1eb   : > { %v1161_v43 = vpop.permute.xlu1 %1160  ;;  %v1123_v15 = vpop.permute.xlu0 %1122  ;;  %v4005_v1 = vpack.c.bf16 %v1910_v7, %v1908_v55  ;;  %v1938_v40 = vld [vmem:[%s7182_s3 + $0x178] sm:$0xff]  ;;  %v1939_v55 = vld [vmem:[%s7182_s3 + $0x180] sm:$0xff]  ;;  %v1941_v7 = vld [vmem:[%s7182_s3 + $0x190] sm:$0xff] }
 0x1ec   : > { %3978 = vmatpush3.bf16.msra.mxu1 %v3977_v35  ;;  %v1169_v60 = vsel %vm7319_vm9, %v5635_v37, %v1161_v43  ;;  %v1131_v20 = vsel %vm7320_vm13, %v5629_v52, %v1123_v15  ;;  %4000 = vmatpush1.bf16.msra.mxu0 %v3999_v34  ;;  %v1909_v35 = vld [vmem:[%s7182_s3 + $0x90] sm:$0xff]  ;;  %v1912_v43 = vld [vmem:[%s7182_s3 + $0xa8] sm:$0xff]  ;;  %v1914_v15 = vld [vmem:[%s7182_s3 + $0xb8] sm:$0xff]  ;;  %v4033_v12 = vpack.c.bf16 %v1938_v40, %v1936_v16  ;;  %vm2495_vm9 = vcmask 908288  }
 0x1ed   : > { %3979 = vmatprep.subr.bf16.mxu1 %v4603_v31  ;;  %1183 = vst.msk [vmem:[#allocation2 + $0x180] sm:$0x38] %vm7321_vm1, %v1169_v60  ;;  %4002 = vmatprep.subr.bf16.mxu0 %v4001_v41  ;;  %v4007_v60 = vpack.c.bf16 %v1909_v35, %v1907_v6  ;;  %v1940_v34 = vld [vmem:[%s7182_s3 + $0x188] sm:$0xff]  ;;  %v1942_v41 = vld [vmem:[%s7182_s3 + $0x198] sm:$0xff]  ;;  %v4039_v6 = vpack.c.bf16 %v1941_v7, %v1939_v55  ;;  %vm2539_vm13 = vcmask 801792   ;;  %vm2582_vm1 = vcmask 695296  }
 0x1ee   : > { %1145 = vst.msk [vmem:[#allocation2 + $0x180] sm:$0x7] %vm7322_vm10, %v1131_v20  ;;  %v1451_v2 = vld [vmem:[#allocation2 + $0x110] sm:$0xff]  ;;  %v4009_v20 = vpack.c.bf16 %v1914_v15, %v1912_v43  ;;  %v4037_v17 = vpack.c.bf16 %v1942_v41, %v1940_v34  ;;  %v1943_v43 = vld [vmem:[%s7182_s3 + $0x1a0] sm:$0xff]  ;;  %v1962_v34 = vld [vmem:[%s7182_s3 + $0x238] sm:$0xff]  ;;  %vm2416_vm10 = vcmask 64518  }
 0x1ef   : > { %v1244_v58 = vpop.permute.xlu1 %1243  ;;  %v1199_v56 = vpop.permute.xlu0 %1198  ;;  %v1945_v15 = vld [vmem:[%s7182_s3 + $0x1b0] sm:$0xff] }
 0x1f0   : > { %v1252_v45 = vsel %vm7323_vm11, %v5647_v57, %v1244_v58  ;;  %v1207_v59 = vsel %vm7324_vm14, %v5641_v54, %v1199_v56  ;;  %v1486_v57 = vld [vmem:[#allocation2 + $0x228] sm:$0x7]  ;;  %4004 = vmatpush1.bf16.msra.mxu0 %v4003_v62  ;;  %v1911_v58 = vld [vmem:[%s7182_s3 + $0xa0] sm:$0xff]  ;;  %v1913_v56 = vld [vmem:[%s7182_s3 + $0xb0] sm:$0xff]  ;;  %vm2419_vm11 = vcmask 60416   ;;  %vm2431_vm14 = vcmask 64516  }
 0x1f1   : > { %v1458_v61 = vld [vmem:[#allocation2 + $0x148] sm:$0xff]  ;;  %1266 = vst.msk [vmem:[#allocation2 + $0x1b8] sm:$0xe] %vm595_vm12, %v1252_v45  ;;  %v3986_v54 = vpack.c.bf16 %v1486_v57, %v1479_v10  ;;  %vm7327_vm12 = vcmask 613376   ;;  %4006 = vmatprep.subr.bf16.mxu0 %v4005_v1  ;;  %v1946_v1 = vld [vmem:[%s7182_s3 + $0x1b8] sm:$0xff] }
 0x1f2   : > { %1221 = vst.msk [vmem:[#allocation2 + $0x180] sm:$0xc0] %vm7325_vm5, %v1207_v59  ;;  %v3980_v52 = vpack.c.bf16 %v1458_v61, %v1451_v2  ;;  %v1916_v45 = vld [vmem:[%s7182_s3 + $0xc8] sm:$0xff]  ;;  %v4011_v2 = vpack.c.bf16 %v1913_v56, %v1911_v58  ;;  %vm2434_vm5 = vcmask 58368  }
 0x1f3   : > { %1228 = vst.msk [vmem:[#allocation2 + $0x1b8] sm:$0x1] %vm7326_vm6, %v1207_v59  ;;  %v1918_v59 = vld [vmem:[%s7182_s3 + $0xd8] sm:$0xff]  ;;  %v1944_v62 = vld [vmem:[%s7182_s3 + $0x1a8] sm:$0xff]  ;;  %vm7328_vm6 = vcmask 1031168  }
 0x1f4   : > { %3981 = vmatpush3.bf16.msra.mxu1 %v3980_v52  ;;  %4008 = vmatpush1.bf16.msra.mxu0 %v4007_v60  ;;  %v4013_v61 = vpack.c.bf16 %v1918_v59, %v1916_v45  ;;  %v1915_v52 = vld [vmem:[%s7182_s3 + $0xc0] sm:$0xff]  ;;  %v4041_v35 = vpack.c.bf16 %v1946_v1, %v1944_v62  ;;  %v4043_v60 = vpack.c.bf16 %v1945_v15, %v1943_v43  ;;  %v1948_v56 = vld [vmem:[%s7182_s3 + $0x1c8] sm:$0xff]  ;;  %v1950_v45 = vld [vmem:[%s7182_s3 + $0x1d8] sm:$0xff] }
 0x1f5   : > { %3982 = vmatprep.subr.bf16.mxu1 %v4603_v31  ;;  %4010 = vmatprep.subr.bf16.mxu0 %v4009_v20  ;;  %v4045_v59 = vpack.c.bf16 %v1950_v45, %v1948_v56  ;;  %v1959_v43 = vld [vmem:[%s7182_s3 + $0x220] sm:$0xff]  ;;  %v1961_v15 = vld [vmem:[%s7182_s3 + $0x230] sm:$0xff] }
 0x1f8   : > { %4012 = vmatpush1.bf16.msra.mxu0 %v4011_v2  ;;  %v1947_v2 = vld [vmem:[%s7182_s3 + $0x1c0] sm:$0xff] }
 0x1f9   : > { %v1465_v37 = vld [vmem:[#allocation2 + $0x180] sm:$0xff]  ;;  %4014 = vmatprep.subr.bf16.mxu0 %v4013_v61  ;;  %v1949_v61 = vld [vmem:[%s7182_s3 + $0x1d0] sm:$0xff] }
 0x1fa   : > { %v1472_v44 = vld [vmem:[#allocation2 + $0x1b8] sm:$0xff] }
 0x1fb   : > { %v3983_v33 = vpack.c.bf16 %v1472_v44, %v1465_v37  ;;  %v1917_v37 = vld [vmem:[%s7182_s3 + $0xd0] sm:$0xff]  ;;  %v1920_v44 = vld [vmem:[%s7182_s3 + $0xe8] sm:$0xff] }
 0x1fc   : > { %v4015_v10 = vpack.c.bf16 %v1917_v37, %v1915_v52  ;;  %v4047_v52 = vpack.c.bf16 %v1949_v61, %v1947_v2  ;;  %v1952_v37 = vld [vmem:[%s7182_s3 + $0x1e8] sm:$0xff]  ;;  %v4059_v61 = vpack.c.bf16 %v1961_v15, %v1959_v43  ;;  %v1993_v43 = vld [vmem:[%s7182_s3 + $0x330] sm:$0xff] }
 0x1fd   : > { %3984 = vmatpush3.bf16.msra.mxu1 %v3983_v33  ;;  %v1922_v33 = vld [vmem:[%s7182_s3 + $0xf8] sm:$0xff]  ;;  %v1996_v15 = vld [vmem:[%s7182_s3 + $0x348] sm:$0xff] }
 0x1fe   : > { %3985 = vmatprep.subr.bf16.mxu1 %v4603_v31  ;;  %v4017_v57 = vpack.c.bf16 %v1922_v33, %v1920_v44  ;;  %4016 = vmatpush1.bf16.msra.mxu0 %v4015_v10  ;;  %v1954_v44 = vld [vmem:[%s7182_s3 + $0x1f8] sm:$0xff]  ;;  %v1951_v10 = vld [vmem:[%s7182_s3 + $0x1e0] sm:$0xff] }
 0x1ff   : > { %v4049_v33 = vpack.c.bf16 %v1954_v44, %v1952_v37  ;;  %v1963_v44 = vld [vmem:[%s7182_s3 + $0x240] sm:$0xff] }
 0x200   : > { %v5731_v47 = vpop.permute.xlu0 %1490  ;;  %4018 = vmatprep.subr.bf16.mxu0 %v4017_v57  ;;  %v1953_v57 = vld [vmem:[%s7182_s3 + $0x1f0] sm:$0xff] }
 0x201   : > { %3988 = vmatpush3.bf16.msk.msra.mxu1 %vm5512_vm15, %v3986_v54  ;;  %v1919_v54 = vld [vmem:[%s7182_s3 + $0xe0] sm:$0xff] }
 0x204   : > { %3800 = vmatmul.mubr.msk.f32.vlgmr.msra.gmra.mrb[2].mxu1 %vm7327_vm12, %v5542_v38  ;;  %vm2446_vm12 = vcmask 64514  }
 0x256   : > { %v1656_v51 = vpop.f32.mrb[0].mxu1 }
 0x257   : > { %v1658_v22 = vpop.f32.mrb[1].mxu1  ;;  %v5734_v23 = vadd.f32 %v1656_v51, %v5731_v47  ;;  %v1921_v51 = vld [vmem:[%s7182_s3 + $0xf0] sm:$0xff] }
 0x258   : > { %v5740_v48 = vadd.f32 %v1658_v22, %v5731_v47  ;;  %v1924_v22 = vld [vmem:[%s7182_s3 + $0x108] sm:$0xff] }
 0x259   : > { %v1585_v9 = vpop.f32.mrb[0].mxu0  ;;  %v1804_v38 = vmax.f32 %v5734_v23, 0.0  ;;  %v1958_v23 = vld [vmem:[%s7182_s3 + $0x218] sm:$0xff] }
 0x25a   : > { %v1587_v27 = vpop.f32.mrb[1].mxu0  ;;  %v5737_v8 = vadd.f32 %v1585_v9, %v5731_v47  ;;  %v1805_v3 = vmax.f32 %v5740_v48, 0.0  ;;  %v1926_v9 = vld [vmem:[%s7182_s3 + $0x118] sm:$0xff] }
 0x25b   : > { %v5743_v25 = vadd.f32 %v1587_v27, %v5731_v47  ;;  %v4019_v27 = vpack.c.bf16 %v1921_v51, %v1919_v54  ;;  %v4051_v51 = vpack.c.bf16 %v1953_v57, %v1951_v10  ;;  %v1970_v10 = vld [vmem:[%s7182_s3 + $0x278] sm:$0xff] }
 0x25c   : > { %v1802_v4 = vmax.f32 %v5737_v8, 0.0  ;;  %v1956_v8 = vld [vmem:[%s7182_s3 + $0x208] sm:$0xff] }
 0x25d   : > { %v1803_v26 = vmax.f32 %v5743_v25, 0.0  ;;  %4020 = vmatpush1.bf16.msra.mxu0 %v4019_v27 }
 0x25e   : > { %v4488_v32 = vpack.i.bf16 %v1802_v4, %v1805_v3 }
 0x25f   : > { %v4483_v63 = vpack.i.bf16 %v1804_v38, %v1803_v26 }
 0x261   : > { %4484 = vrot.lane.b32.xlu1 %v4483_v63, %s7285_s13  ;;  %v4021_v63 = vpack.c.bf16 %v1926_v9, %v1924_v22 }
 0x263   : > { %4022 = vmatprep.subr.bf16.mxu0 %v4021_v63 }
 0x265   : > { %4489 = vrot.lane.b32.xlu1 %v4488_v32, %s7285_s13  ;;  %v1923_v32 = vld [vmem:[%s7182_s3 + $0x100] sm:$0xff] }
 0x266   : > { %v4023_v28 = vpack.c.bf16 %v1925_v29, %v1923_v32 }
 0x268   : > { %4024 = vmatpush1.bf16.msra.mxu0 %v4023_v28 }
 0x269   : > { %4026 = vmatprep.subr.bf16.mxu0 %v4025_v14 }
 0x26c   : > { %4028 = vmatpush1.bf16.msra.mxu0 %v4027_v39 }
 0x26d   : > { %4030 = vmatprep.subr.bf16.mxu0 %v4029_v49 }
 0x270   : > { %4032 = vmatpush1.bf16.msra.mxu0 %v4031_v24  ;;  %v1955_v24 = vld [vmem:[%s7182_s3 + $0x200] sm:$0xff] }
 0x271   : > { %4034 = vmatprep.subr.bf16.mxu0 %v4033_v12  ;;  %v1957_v12 = vld [vmem:[%s7182_s3 + $0x210] sm:$0xff] }
 0x272   : > { %v4055_v62 = vpack.c.bf16 %v1957_v12, %v1955_v24  ;;  %v1983_v12 = vld [vmem:[%s7182_s3 + $0x2e0] sm:$0xff] }
 0x274   : > { %4036 = vmatpush1.bf16.msra.mxu0 %v4035_v30 }
 0x275   : > { %4038 = vmatprep.subr.bf16.mxu0 %v4037_v17 }
 0x278   : > { %4040 = vmatpush1.bf16.msra.mxu0 %v4039_v6 }
 0x279   : > { %4042 = vmatprep.subr.bf16.mxu0 %v4041_v35  ;;  %v4057_v35 = vpack.c.bf16 %v1962_v34, %v1960_v42  ;;  %v1988_v42 = vld [vmem:[%s7182_s3 + $0x308] sm:$0xff]  ;;  %v1990_v34 = vld [vmem:[%s7182_s3 + $0x318] sm:$0xff] }
 0x27c   : > { %4044 = vmatpush1.bf16.msra.mxu0 %v4043_v60  ;;  %v1964_v60 = vld [vmem:[%s7182_s3 + $0x248] sm:$0xff] }
 0x27d   : > { %4046 = vmatprep.subr.bf16.mxu0 %v4045_v59 }
 0x280   : > { %4048 = vmatpush1.bf16.msra.mxu0 %v4047_v52 }
 0x281   : > { %4050 = vmatprep.subr.bf16.mxu0 %v4049_v33  ;;  %v1965_v33 = vld [vmem:[%s7182_s3 + $0x250] sm:$0xff] }
 0x284   : > { %4052 = vmatpush1.bf16.msra.mxu0 %v4051_v51 }
 0x2b6   : > { %v1727_v20 = vpop.f32.mrb[2].mxu0 }
 0x2b7   : > { %v1729_v58 = vpop.f32.mrb[3].mxu0  ;;  %v1728_v28 = vadd.f32 %v1727_v20, %v5731_v47  ;;  %v1966_v20 = vld [vmem:[%s7182_s3 + $0x258] sm:$0xff] }
 0x2b8   : > { %v5954_v14 = vadd.f32 %v1729_v58, %v5731_v47  ;;  %v4061_v37 = vpack.c.bf16 %v1966_v20, %v1964_v60  ;;  %v1998_v60 = vld [vmem:[%s7182_s3 + $0x358] sm:$0xff] }
 0x2b9   : > { %v1806_v49 = vmax.f32 %v1728_v28, 0.0  ;;  %v1973_v28 = vld [vmem:[%s7182_s3 + $0x290] sm:$0xff] }
 0x2ba   : > { %v1807_v53 = vmax.f32 %v5954_v14, 0.0  ;;  %v1976_v14 = vld [vmem:[%s7182_s3 + $0x2a8] sm:$0xff] }
 0x2bc   : > { %v4498_v16 = vpack.i.bf16 %v1807_v53, %v1806_v49 }
 0x2d3   : > { %v4485_v54 = vpop.permute.xlu1 %4484 }
 0x2d4   : > { %v4487_v22 = vunpack.i.h.bf16 %v4485_v54  ;;  %v4486_v9 = vunpack.i.l.bf16 %v4485_v54  ;;  %v4063_v54 = vpack.c.bf16 %v1965_v33, %v1963_v44 }
 0x2d6   : > { %v1831_v29 = vsel %vm481_vm0, %v4486_v9, %v4487_v22 }
 0x2d7   : > { %v1798_v27 = vpop.f32.mrb[2].mxu1  ;;  %v4490_v32 = vpop.permute.xlu1 %4489  ;;  %v1844_v0 = vmax.f32 %v1803_v26, %v1831_v29 }
 0x2d8   : > { %v3801_v63 = vpop.f32.mrb[3].mxu1  ;;  %v4492_v11 = vunpack.i.h.bf16 %v4490_v32  ;;  %v4491_v18 = vunpack.i.l.bf16 %v4490_v32  ;;  %v1799_v25 = vadd.f32 %v1798_v27, %v5731_v47  ;;  %v1974_v32 = vld [vmem:[%s7182_s3 + $0x298] sm:$0xff] }
 0x2d9   : > { %v1972_v63 = vld [vmem:[%s7182_s3 + $0x288] sm:$0xff] }
 0x2da   : > { %v1830_v5 = vsel %vm481_vm0, %v4492_v11, %v4486_v9  ;;  %v1832_v46 = vsel %vm481_vm0, %v4487_v22, %v4491_v18  ;;  %v1808_v26 = vmax.f32 %v1799_v25, 0.0  ;;  %v1967_v22 = vld [vmem:[%s7182_s3 + $0x260] sm:$0xff]  ;;  %v1969_v9 = vld [vmem:[%s7182_s3 + $0x270] sm:$0xff]  ;;  %v4069_v11 = vpack.c.bf16 %v1974_v32, %v1972_v63  ;;  %v2008_v63 = vld [vmem:[%s7182_s3 + $0x3a8] sm:$0xff] }
 0x2db   : > { %v1843_v50 = vmax.f32 %v1802_v4, %v1830_v5  ;;  %v5964_v39 = vmax.f32 %v1804_v38, %v1832_v46  ;;  %v4053_v38 = vpack.c.bf16 %v1958_v23, %v1956_v8  ;;  %v4067_v29 = vpack.c.bf16 %v1969_v9, %v1967_v22  ;;  %v1978_v5 = vld [vmem:[%s7182_s3 + $0x2b8] sm:$0xff]  ;;  %v1979_v8 = vld [vmem:[%s7182_s3 + $0x2c0] sm:$0xff]  ;;  %v1981_v23 = vld [vmem:[%s7182_s3 + $0x2d0] sm:$0xff] }
 0x2dc   : > { %v2003_v22 = vld [vmem:[%s7182_s3 + $0x380] sm:$0xff]  ;;  %v2005_v9 = vld [vmem:[%s7182_s3 + $0x390] sm:$0xff]  ;;  %v2010_v32 = vld [vmem:[%s7182_s3 + $0x3b8] sm:$0xff] }
 0x2dd   : > { %1857 = vrot.lane.b32.xlu1 %v1843_v50, %s7273_s30  ;;  %v4493_v13 = vpack.i.bf16 %v5964_v39, %v1844_v0  ;;  %4054 = vmatprep.subr.bf16.mxu0 %v4053_v38  ;;  %v1984_v38 = vld [vmem:[%s7182_s3 + $0x2e8] sm:$0xff] }
 0x2df   : > { %4494 = vrot.lane.b32.xlu0 %v4493_v13, %s7273_s30  ;;  %v1982_v13 = vld [vmem:[%s7182_s3 + $0x2d8] sm:$0xff] }
 0x2e3   : > { %4499 = vrot.lane.b32.xlu0 %v4498_v16, %s7285_s13 }
 0x2e7   : > { %1828 = vrot.lane.b32.xlu0 %v1808_v26, %s7285_s13 }
 0x34f   : > { %v1858_v19 = vpop.permute.xlu1 %1857 }
 0x351   : > { %v5979_v4 = vpop.permute.xlu0 %4494 }
 0x352   : > { %v4497_v40 = vunpack.i.h.bf16 %v5979_v4  ;;  %v4496_v47 = vunpack.i.l.bf16 %v5979_v4 }
 0x354   : > { %v1871_v41 = vsel %vm662_vm4, %v1858_v19, %v4496_v47  ;;  %v1872_v30 = vsel %vm662_vm4, %v4496_v47, %v4497_v40  ;;  %v4079_v47 = vpack.c.bf16 %v1981_v23, %v1979_v8  ;;  %v1985_v19 = vld [vmem:[%s7182_s3 + $0x2f0] sm:$0xff]  ;;  %v2015_v8 = vld [vmem:[%s7182_s3 + $0x3e0] sm:$0xff] }
 0x355   : > { %v1884_v17 = vmax.f32 %v1843_v50, %v1871_v41  ;;  %v4500_v55 = vpop.permute.xlu0 %4499  ;;  %v1885_v7 = vmax.f32 %v1844_v0, %v1872_v30  ;;  %v4073_v0 = vpack.c.bf16 %v1978_v5, %v1976_v14  ;;  %v1975_v50 = vld [vmem:[%s7182_s3 + $0x2a0] sm:$0xff]  ;;  %v4083_v41 = vpack.c.bf16 %v1985_v19, %v1983_v12  ;;  %v2012_v14 = vld [vmem:[%s7182_s3 + $0x3c8] sm:$0xff]  ;;  %v2014_v5 = vld [vmem:[%s7182_s3 + $0x3d8] sm:$0xff] }
 0x356   : > { %v4502_v1 = vunpack.i.h.bf16 %v4500_v55  ;;  %v4501_v6 = vunpack.i.l.bf16 %v4500_v55  ;;  %v4085_v30 = vpack.c.bf16 %v1990_v34, %v1988_v42  ;;  %v1989_v55 = vld [vmem:[%s7182_s3 + $0x310] sm:$0xff]  ;;  %v2019_v34 = vld [vmem:[%s7182_s3 + $0x400] sm:$0xff] }
 0x357   : > { %2181 = vmatprep.mubr.f32.mxu0 %v1885_v7  ;;  %v1992_v7 = vld [vmem:[%s7182_s3 + $0x328] sm:$0xff]  ;;  %v2017_v23 = vld [vmem:[%s7182_s3 + $0x3f0] sm:$0xff] }
 0x358   : > { %v1833_v58 = vsel %vm481_vm0, %v4491_v18, %v4501_v6  ;;  %v1834_v56 = vsel %vm481_vm0, %v4501_v6, %v4502_v1  ;;  %2182 = vmatmul.mubr.f32.vlgmr.msra.gmra.mrb[4].mxu0 %v1884_v17  ;;  %v1971_v18 = vld [vmem:[%s7182_s3 + $0x280] sm:$0xff] }
 0x359   : > { %v6015_v45 = vmax.f32 %v1805_v3, %v1833_v58  ;;  %v6017_v59 = vmax.f32 %v1806_v49, %v1834_v56  ;;  %v1829_v2 = vpop.permute.xlu0 %1828  ;;  %4056 = vmatpush1.bf16.msra.mxu0 %v4055_v62  ;;  %v1968_v3 = vld [vmem:[%s7182_s3 + $0x268] sm:$0xff]  ;;  %v4071_v46 = vpack.c.bf16 %v1973_v28, %v1971_v18  ;;  %v1977_v49 = vld [vmem:[%s7182_s3 + $0x2b0] sm:$0xff]  ;;  %v1987_v17 = vld [vmem:[%s7182_s3 + $0x300] sm:$0xff]  ;;  %v4093_v58 = vpack.c.bf16 %v1998_v60, %v1996_v15 }
 0x35a   : > { %v6019_v52 = vmax.f32 %v1808_v26, %v1829_v2  ;;  %4058 = vmatprep.subr.bf16.mxu0 %v4057_v35  ;;  %v1835_v57 = vsel %vm481_vm0, %v4502_v1, %v1829_v2  ;;  %v4065_v51 = vpack.c.bf16 %v1970_v10, %v1968_v3  ;;  %v4075_v16 = vpack.c.bf16 %v1977_v49, %v1975_v50  ;;  %v1986_v26 = vld [vmem:[%s7182_s3 + $0x2f8] sm:$0xff]  ;;  %v1991_v35 = vld [vmem:[%s7182_s3 + $0x320] sm:$0xff]  ;;  %v1997_v2 = vld [vmem:[%s7182_s3 + $0x350] sm:$0xff] }
 0x35b   : > { %v4503_v48 = vpack.i.bf16 %v6017_v59, %v6015_v45  ;;  %v6045_v27 = vmax.f32 %v1807_v53, %v1835_v57  ;;  %v1980_v53 = vld [vmem:[%s7182_s3 + $0x2c8] sm:$0xff]  ;;  %v4081_v24 = vpack.c.bf16 %v1986_v26, %v1984_v38  ;;  %v1994_v62 = vld [vmem:[%s7182_s3 + $0x338] sm:$0xff]  ;;  %v4087_v1 = vpack.c.bf16 %v1989_v55, %v1987_v17  ;;  %v1995_v56 = vld [vmem:[%s7182_s3 + $0x340] sm:$0xff] }
 0x35c   : > { %1869 = vrot.lane.b32.xlu0 %v6019_v52, %s7273_s30  ;;  %v4077_v25 = vpack.c.bf16 %v1982_v13, %v1980_v53  ;;  %v4089_v6 = vpack.c.bf16 %v1994_v62, %v1992_v7  ;;  %v4091_v20 = vpack.c.bf16 %v1993_v43, %v1991_v35  ;;  %v4095_v44 = vpack.c.bf16 %v1997_v2, %v1995_v56  ;;  %v2001_v3 = vld [vmem:[%s7182_s3 + $0x370] sm:$0xff]  ;;  %v2004_v10 = vld [vmem:[%s7182_s3 + $0x388] sm:$0xff]  ;;  %v2006_v57 = vld [vmem:[%s7182_s3 + $0x398] sm:$0xff] }
 0x35d   : > { %4504 = vrot.lane.b32.xlu1 %v4503_v48, %s7273_s30  ;;  %4060 = vmatpush1.bf16.msra.mxu0 %v4059_v61  ;;  %v2000_v61 = vld [vmem:[%s7182_s3 + $0x368] sm:$0xff]  ;;  %v1999_v48 = vld [vmem:[%s7182_s3 + $0x360] sm:$0xff]  ;;  %v2009_v28 = vld [vmem:[%s7182_s3 + $0x3b0] sm:$0xff] }
 0x35e   : > { %4062 = vmatprep.subr.bf16.mxu0 %v4061_v37  ;;  %v2002_v37 = vld [vmem:[%s7182_s3 + $0x378] sm:$0xff]  ;;  %v2007_v18 = vld [vmem:[%s7182_s3 + $0x3a0] sm:$0xff]  ;;  %v2013_v49 = vld [vmem:[%s7182_s3 + $0x3d0] sm:$0xff] }
 0x35f   : > { %v4097_v33 = vpack.c.bf16 %v2002_v37, %v2000_v61  ;;  %v2011_v50 = vld [vmem:[%s7182_s3 + $0x3c0] sm:$0xff]  ;;  %v2016_v53 = vld [vmem:[%s7182_s3 + $0x3e8] sm:$0xff]  ;;  %v2018_v13 = vld [vmem:[%s7182_s3 + $0x3f8] sm:$0xff] }
 0x360   : > { %v2020_v38 = vld [vmem:[%s7182_s3 + $0x408] sm:$0xff]  ;;  %v2022_v26 = vld [vmem:[%s7182_s3 + $0x418] sm:$0xff]  ;;  %v2025_v60 = vld [vmem:[%s7182_s3 + $0x430] sm:$0xff] }
 0x361   : > { %1867 = vrot.lane.b32.xlu1 %v6045_v27, %s7273_s30  ;;  %4064 = vmatpush1.bf16.msra.mxu0 %v4063_v54  ;;  %v4099_v54 = vpack.c.bf16 %v2001_v3, %v1999_v48  ;;  %v2026_v17 = vld [vmem:[%s7182_s3 + $0x438] sm:$0xff]  ;;  %v2027_v2 = vld [vmem:[%s7182_s3 + $0x440] sm:$0xff]  ;;  %v2032_v61 = vld [vmem:[%s7182_s3 + $0x468] sm:$0xff] }
 0x362   : > { %4066 = vmatprep.subr.bf16.mxu0 %v4065_v51  ;;  %v4101_v51 = vpack.c.bf16 %v2006_v57, %v2004_v10  ;;  %v2034_v37 = vld [vmem:[%s7182_s3 + $0x478] sm:$0xff]  ;;  %v2031_v48 = vld [vmem:[%s7182_s3 + $0x460] sm:$0xff]  ;;  %v2033_v3 = vld [vmem:[%s7182_s3 + $0x470] sm:$0xff] }
 0x363   : > { %v2036_v10 = vld [vmem:[%s7182_s3 + $0x488] sm:$0xff]  ;;  %v2038_v57 = vld [vmem:[%s7182_s3 + $0x498] sm:$0xff] }
 0x365   : > { %4068 = vmatpush1.bf16.msra.mxu0 %v4067_v29  ;;  %v4103_v29 = vpack.c.bf16 %v2005_v9, %v2003_v22  ;;  %v2035_v22 = vld [vmem:[%s7182_s3 + $0x480] sm:$0xff]  ;;  %v2037_v9 = vld [vmem:[%s7182_s3 + $0x490] sm:$0xff] }
 0x366   : > { %4070 = vmatprep.subr.bf16.mxu0 %v4069_v11  ;;  %v4105_v11 = vpack.c.bf16 %v2010_v32, %v2008_v63  ;;  %v2040_v63 = vld [vmem:[%s7182_s3 + $0x4a8] sm:$0xff]  ;;  %v2042_v32 = vld [vmem:[%s7182_s3 + $0x4b8] sm:$0xff] }
 0x369   : > { %4072 = vmatpush1.bf16.msra.mxu0 %v4071_v46  ;;  %v4107_v46 = vpack.c.bf16 %v2009_v28, %v2007_v18  ;;  %v2039_v18 = vld [vmem:[%s7182_s3 + $0x4a0] sm:$0xff]  ;;  %v2041_v28 = vld [vmem:[%s7182_s3 + $0x4b0] sm:$0xff] }
 0x36a   : > { %4074 = vmatprep.subr.bf16.mxu0 %v4073_v0  ;;  %v4109_v0 = vpack.c.bf16 %v2014_v5, %v2012_v14  ;;  %v2044_v14 = vld [vmem:[%s7182_s3 + $0x4c8] sm:$0xff]  ;;  %v2046_v5 = vld [vmem:[%s7182_s3 + $0x4d8] sm:$0xff] }
 0x36d   : > { %4076 = vmatpush1.bf16.msra.mxu0 %v4075_v16  ;;  %v4111_v16 = vpack.c.bf16 %v2013_v49, %v2011_v50  ;;  %v2043_v50 = vld [vmem:[%s7182_s3 + $0x4c0] sm:$0xff]  ;;  %v2045_v49 = vld [vmem:[%s7182_s3 + $0x4d0] sm:$0xff] }
 0x36e   : > { %4078 = vmatprep.subr.bf16.mxu0 %v4077_v25  ;;  %v4113_v25 = vpack.c.bf16 %v2018_v13, %v2016_v53  ;;  %v2048_v53 = vld [vmem:[%s7182_s3 + $0x4e8] sm:$0xff]  ;;  %v2050_v13 = vld [vmem:[%s7182_s3 + $0x4f8] sm:$0xff] }
 0x371   : > { %4080 = vmatpush1.bf16.msra.mxu0 %v4079_v47  ;;  %v4115_v47 = vpack.c.bf16 %v2017_v23, %v2015_v8  ;;  %v2047_v8 = vld [vmem:[%s7182_s3 + $0x4e0] sm:$0xff]  ;;  %v2049_v23 = vld [vmem:[%s7182_s3 + $0x4f0] sm:$0xff] }
 0x372   : > { %4082 = vmatprep.subr.bf16.mxu0 %v4081_v24  ;;  %v4117_v24 = vpack.c.bf16 %v2022_v26, %v2020_v38  ;;  %v2052_v38 = vld [vmem:[%s7182_s3 + $0x508] sm:$0xff]  ;;  %v2054_v26 = vld [vmem:[%s7182_s3 + $0x518] sm:$0xff] }
 0x375   : > { %4084 = vmatpush1.bf16.msra.mxu0 %v4083_v41  ;;  %v2021_v41 = vld [vmem:[%s7182_s3 + $0x410] sm:$0xff] }
 0x376   : > { %4086 = vmatprep.subr.bf16.mxu0 %v4085_v30  ;;  %v2024_v30 = vld [vmem:[%s7182_s3 + $0x428] sm:$0xff]  ;;  %v4119_v43 = vpack.c.bf16 %v2021_v41, %v2019_v34  ;;  %v2053_v34 = vld [vmem:[%s7182_s3 + $0x510] sm:$0xff] }
 0x377   : > { %v4121_v4 = vpack.c.bf16 %v2026_v17, %v2024_v30  ;;  %v2056_v41 = vld [vmem:[%s7182_s3 + $0x528] sm:$0xff]  ;;  %v2058_v30 = vld [vmem:[%s7182_s3 + $0x538] sm:$0xff] }
 0x379   : > { %4088 = vmatpush1.bf16.msra.mxu0 %v4087_v1 }
 0x37a   : > { %4090 = vmatprep.subr.bf16.mxu0 %v4089_v6 }
 0x37d   : > { %4092 = vmatpush1.bf16.msra.mxu0 %v4091_v20  ;;  %v2030_v20 = vld [vmem:[%s7182_s3 + $0x458] sm:$0xff] }
 0x37e   : > { %4094 = vmatprep.subr.bf16.mxu0 %v4093_v58 }
 0x381   : > { %4096 = vmatpush1.bf16.msra.mxu0 %v4095_v44 }
 0x382   : > { %4098 = vmatprep.subr.bf16.mxu0 %v4097_v33  ;;  %v4129_v33 = vpack.c.bf16 %v2034_v37, %v2032_v61  ;;  %v2070_v61 = vld [vmem:[%s7182_s3 + $0x598] sm:$0xff] }
 0x385   : > { %4100 = vmatpush1.bf16.msra.mxu0 %v4099_v54  ;;  %v4131_v54 = vpack.c.bf16 %v2033_v3, %v2031_v48  ;;  %v2069_v48 = vld [vmem:[%s7182_s3 + $0x590] sm:$0xff]  ;;  %v2072_v3 = vld [vmem:[%s7182_s3 + $0x5a8] sm:$0xff] }
 0x386   : > { %4102 = vmatprep.subr.bf16.mxu0 %v4101_v51  ;;  %v4133_v51 = vpack.c.bf16 %v2038_v57, %v2036_v10  ;;  %v2074_v10 = vld [vmem:[%s7182_s3 + $0x5b8] sm:$0xff] }
 0x389   : > { %4104 = vmatpush1.bf16.msra.mxu0 %v4103_v29  ;;  %v4135_v29 = vpack.c.bf16 %v2037_v9, %v2035_v22  ;;  %v2073_v22 = vld [vmem:[%s7182_s3 + $0x5b0] sm:$0xff]  ;;  %v2076_v9 = vld [vmem:[%s7182_s3 + $0x5c8] sm:$0xff] }
 0x38a   : > { %4106 = vmatprep.subr.bf16.mxu0 %v4105_v11  ;;  %v4137_v11 = vpack.c.bf16 %v2042_v32, %v2040_v63  ;;  %v2078_v63 = vld [vmem:[%s7182_s3 + $0x5d8] sm:$0xff] }
 0x38d   : > { %4108 = vmatpush1.bf16.msra.mxu0 %v4107_v46  ;;  %v4139_v46 = vpack.c.bf16 %v2041_v28, %v2039_v18  ;;  %v2077_v18 = vld [vmem:[%s7182_s3 + $0x5d0] sm:$0xff]  ;;  %v2080_v28 = vld [vmem:[%s7182_s3 + $0x5e8] sm:$0xff] }
 0x38e   : > { %4110 = vmatprep.subr.bf16.mxu0 %v4109_v0  ;;  %v4141_v0 = vpack.c.bf16 %v2046_v5, %v2044_v14  ;;  %v2082_v14 = vld [vmem:[%s7182_s3 + $0x5f8] sm:$0xff] }
 0x391   : > { %4112 = vmatpush1.bf16.msra.mxu0 %v4111_v16  ;;  %v4143_v16 = vpack.c.bf16 %v2045_v49, %v2043_v50  ;;  %v2081_v50 = vld [vmem:[%s7182_s3 + $0x5f0] sm:$0xff]  ;;  %v2084_v49 = vld [vmem:[%s7182_s3 + $0x608] sm:$0xff] }
 0x392   : > { %4114 = vmatprep.subr.bf16.mxu0 %v4113_v25  ;;  %v4145_v25 = vpack.c.bf16 %v2050_v13, %v2048_v53  ;;  %v2086_v53 = vld [vmem:[%s7182_s3 + $0x618] sm:$0xff] }
 0x395   : > { %4116 = vmatpush1.bf16.msra.mxu0 %v4115_v47  ;;  %v4147_v47 = vpack.c.bf16 %v2049_v23, %v2047_v8  ;;  %v2085_v8 = vld [vmem:[%s7182_s3 + $0x610] sm:$0xff] }
 0x396   : > { %4118 = vmatprep.subr.bf16.mxu0 %v4117_v24  ;;  %v4149_v24 = vpack.c.bf16 %v2054_v26, %v2052_v38  ;;  %v2088_v38 = vld [vmem:[%s7182_s3 + $0x628] sm:$0xff]  ;;  %v2090_v26 = vld [vmem:[%s7182_s3 + $0x638] sm:$0xff] }
 0x3ce   : > { %v6221_v62 = vpop.permute.xlu0 %1869 }
 0x3cf   : > { %v6199_v12 = vpop.permute.xlu1 %4504 }
 0x3d0   : > { %v4507_v19 = vunpack.i.h.bf16 %v6199_v12  ;;  %v4506_v42 = vunpack.i.l.bf16 %v6199_v12  ;;  %v2087_v12 = vld [vmem:[%s7182_s3 + $0x620] sm:$0xff] }
 0x3d2   : > { %v1873_v55 = vsel %vm662_vm4, %v4497_v40, %v4506_v42  ;;  %v1874_v7 = vsel %vm662_vm4, %v4506_v42, %v4507_v19  ;;  %v2023_v40 = vld [vmem:[%s7182_s3 + $0x420] sm:$0xff] }
 0x3d3   : > { %v1886_v1 = vmax.f32 %v5964_v39, %v1873_v55  ;;  %v6224_v6 = vpop.permute.xlu1 %1867  ;;  %v1887_v35 = vmax.f32 %v6015_v45, %v1874_v7  ;;  %v2028_v45 = vld [vmem:[%s7182_s3 + $0x448] sm:$0xff]  ;;  %v4123_v58 = vpack.c.bf16 %v2025_v60, %v2023_v40  ;;  %v2051_v42 = vld [vmem:[%s7182_s3 + $0x500] sm:$0xff]  ;;  %v4153_v55 = vpack.c.bf16 %v2058_v30, %v2056_v41  ;;  %v2061_v60 = vld [vmem:[%s7182_s3 + $0x550] sm:$0xff] }
 0x3d4   : > { %v1876_v15 = vsel %vm662_vm4, %v6224_v6, %v6221_v62  ;;  %v4125_v56 = vpack.c.bf16 %v2030_v20, %v2028_v45  ;;  %v4151_v17 = vpack.c.bf16 %v2053_v34, %v2051_v42  ;;  %v2055_v7 = vld [vmem:[%s7182_s3 + $0x520] sm:$0xff]  ;;  %v2066_v45 = vld [vmem:[%s7182_s3 + $0x578] sm:$0xff]  ;;  %v1875_v23 = vsel %vm662_vm4, %v4507_v19, %v6224_v6  ;;  %v2089_v19 = vld [vmem:[%s7182_s3 + $0x630] sm:$0xff] }
 0x3d5   : > { %v1889_v39 = vmax.f32 %v6045_v27, %v1876_v15  ;;  %2252 = vmatprep.mubr.f32.mxu0 %v1887_v35  ;;  %v2029_v27 = vld [vmem:[%s7182_s3 + $0x450] sm:$0xff]  ;;  %v2060_v35 = vld [vmem:[%s7182_s3 + $0x548] sm:$0xff]  ;;  %v2059_v40 = vld [vmem:[%s7182_s3 + $0x540] sm:$0xff]  ;;  %v4185_v42 = vpack.c.bf16 %v2090_v26, %v2088_v38 }
 0x3d6   : > { %2253 = vmatmul.mubr.f32.vlgmr.msra.gmra.mrb[4].mxu0 %v1886_v1  ;;  %v4127_v44 = vpack.c.bf16 %v2029_v27, %v2027_v2  ;;  %v2057_v1 = vld [vmem:[%s7182_s3 + $0x530] sm:$0xff]  ;;  %v4159_v20 = vpack.c.bf16 %v2061_v60, %v2059_v40  ;;  %v2068_v27 = vld [vmem:[%s7182_s3 + $0x588] sm:$0xff]  ;;  %v2094_v34 = vld [vmem:[%s7182_s3 + $0x658] sm:$0xff] }
 0x3d7   : > { %4120 = vmatpush1.bf16.msra.mxu0 %v4119_v43  ;;  %2323 = vmatprep.mubr.f32.mxu0 %v1889_v39  ;;  %v2062_v43 = vld [vmem:[%s7182_s3 + $0x558] sm:$0xff]  ;;  %v4155_v15 = vpack.c.bf16 %v2057_v1, %v2055_v7  ;;  %v2064_v39 = vld [vmem:[%s7182_s3 + $0x568] sm:$0xff]  ;;  %v2065_v2 = vld [vmem:[%s7182_s3 + $0x570] sm:$0xff] }
 0x3d8   : > { %4122 = vmatprep.subr.bf16.mxu0 %v4121_v4  ;;  %v4157_v4 = vpack.c.bf16 %v2062_v43, %v2060_v35  ;;  %v2092_v6 = vld [vmem:[%s7182_s3 + $0x648] sm:$0xff]  ;;  %v2091_v30 = vld [vmem:[%s7182_s3 + $0x640] sm:$0xff]  ;;  %v2098_v7 = vld [vmem:[%s7182_s3 + $0x678] sm:$0xff] }
 0x3d9   : > { %v4189_v41 = vpack.c.bf16 %v2094_v34, %v2092_v6  ;;  %v2095_v43 = vld [vmem:[%s7182_s3 + $0x660] sm:$0xff]  ;;  %v2102_v40 = vld [vmem:[%s7182_s3 + $0x698] sm:$0xff] }
 0x3db   : > { %4124 = vmatpush1.bf16.msra.mxu0 %v4123_v58  ;;  %v4161_v58 = vpack.c.bf16 %v2066_v45, %v2064_v39  ;;  %v2099_v45 = vld [vmem:[%s7182_s3 + $0x680] sm:$0xff] }
 0x3dc   : > { %4126 = vmatprep.subr.bf16.mxu0 %v4125_v56  ;;  %v2063_v56 = vld [vmem:[%s7182_s3 + $0x560] sm:$0xff] }
 0x3dd   : > { %v4163_v37 = vpack.c.bf16 %v2065_v2, %v2063_v56  ;;  %v2106_v56 = vld [vmem:[%s7182_s3 + $0x6b8] sm:$0x7] }
 0x3df   : > { %4128 = vmatpush1.bf16.msra.mxu0 %v4127_v44  ;;  %v4165_v44 = vpack.c.bf16 %v2070_v61, %v2068_v27  ;;  %v2103_v61 = vld [vmem:[%s7182_s3 + $0x6a0] sm:$0xff] }
 0x3e0   : > { %4130 = vmatprep.subr.bf16.mxu0 %v4129_v33  ;;  %v2067_v33 = vld [vmem:[%s7182_s3 + $0x580] sm:$0xff] }
 0x3e1   : > { %v4167_v57 = vpack.c.bf16 %v2069_v48, %v2067_v33  ;;  %v1890_v33 = vmax.f32 %v6019_v52, %v6221_v62 }
 0x3e3   : > { %4132 = vmatpush1.bf16.msra.mxu0 %v4131_v54  ;;  %v4169_v54 = vpack.c.bf16 %v2074_v10, %v2072_v3 }
 0x3e4   : > { %4134 = vmatprep.subr.bf16.mxu0 %v4133_v51  ;;  %v2071_v51 = vld [vmem:[%s7182_s3 + $0x5a0] sm:$0xff] }
 0x3e5   : > { %v4171_v32 = vpack.c.bf16 %v2073_v22, %v2071_v51  ;;  %v2677_v51 = vld [vmem:[%s7183_s4 + $0x8] sm:$0xff] }
 0x3e6   : > { %v2719_v22 = vld [vmem:[%s7184_s5 + $0x8] sm:$0xff] }
 0x3e7   : > { %4136 = vmatpush1.bf16.msra.mxu0 %v4135_v29  ;;  %v4173_v29 = vpack.c.bf16 %v2078_v63, %v2076_v9  ;;  %v2718_v9 = vld [vmem:[%s7184_s5] sm:$0xff] }
 0x3e8   : > { %4138 = vmatprep.subr.bf16.mxu0 %v4137_v11  ;;  %v2075_v11 = vld [vmem:[%s7182_s3 + $0x5c0] sm:$0xff] }
 0x3e9   : > { %v4175_v5 = vpack.c.bf16 %v2077_v18, %v2075_v11 }
 0x3eb   : > { %4140 = vmatpush1.bf16.msra.mxu0 %v4139_v46  ;;  %v4177_v46 = vpack.c.bf16 %v2082_v14, %v2080_v28 }
 0x3ec   : > { %4142 = vmatprep.subr.bf16.mxu0 %v4141_v0  ;;  %v2079_v0 = vld [vmem:[%s7182_s3 + $0x5e0] sm:$0xff] }
 0x3ed   : > { %v4179_v13 = vpack.c.bf16 %v2081_v50, %v2079_v0 }
 0x3ef   : > { %4144 = vmatpush1.bf16.msra.mxu0 %v4143_v16  ;;  %v4181_v16 = vpack.c.bf16 %v2086_v53, %v2084_v49 }
 0x3f0   : > { %4146 = vmatprep.subr.bf16.mxu0 %v4145_v25  ;;  %v2083_v25 = vld [vmem:[%s7182_s3 + $0x600] sm:$0xff] }
 0x3f3   : > { %4148 = vmatpush1.bf16.msra.mxu0 %v4147_v47  ;;  %v4183_v47 = vpack.c.bf16 %v2085_v8, %v2083_v25 }
 0x3f4   : > { %4150 = vmatprep.subr.bf16.mxu0 %v4149_v24  ;;  %v1888_v24 = vmax.f32 %v6017_v59, %v1875_v23  ;;  %v4187_v59 = vpack.c.bf16 %v2089_v19, %v2087_v12 }
 0x3f7   : > { %4152 = vmatpush1.bf16.msra.mxu0 %v4151_v17  ;;  %v2093_v17 = vld [vmem:[%s7182_s3 + $0x650] sm:$0xff] }
 0x3f8   : > { %4154 = vmatprep.subr.bf16.mxu0 %v4153_v55  ;;  %v2096_v55 = vld [vmem:[%s7182_s3 + $0x668] sm:$0xff]  ;;  %v4191_v1 = vpack.c.bf16 %v2093_v17, %v2091_v30 }
 0x3f9   : > { %v4193_v35 = vpack.c.bf16 %v2098_v7, %v2096_v55 }
 0x3fb   : > { %4156 = vmatpush1.bf16.msra.mxu0 %v4155_v15  ;;  %v2097_v15 = vld [vmem:[%s7182_s3 + $0x670] sm:$0xff] }
 0x3fc   : > { %4158 = vmatprep.subr.bf16.mxu0 %v4157_v4  ;;  %v2100_v4 = vld [vmem:[%s7182_s3 + $0x688] sm:$0xff]  ;;  %v4195_v60 = vpack.c.bf16 %v2097_v15, %v2095_v43 }
 0x3fd   : > { %v4197_v39 = vpack.c.bf16 %v2102_v40, %v2100_v4 }
 0x3ff   : > { %4160 = vmatpush1.bf16.msra.mxu0 %v4159_v20  ;;  %v2101_v20 = vld [vmem:[%s7182_s3 + $0x690] sm:$0xff] }
 0x400   : > { %4162 = vmatprep.subr.bf16.mxu0 %v4161_v58  ;;  %v2104_v58 = vld [vmem:[%s7182_s3 + $0x6a8] sm:$0xff]  ;;  %v4199_v2 = vpack.c.bf16 %v2101_v20, %v2099_v45 }
 0x401   : > { %v4201_v27 = vpack.c.bf16 %v2106_v56, %v2104_v58 }
 0x403   : > { %4164 = vmatpush1.bf16.msra.mxu0 %v4163_v37  ;;  %v2105_v37 = vld [vmem:[%s7182_s3 + $0x6b0] sm:$0x7] }
 0x404   : > { %4166 = vmatprep.subr.bf16.mxu0 %v4165_v44  ;;  %v4204_v44 = vpack.c.bf16 %v2105_v37, %v2103_v61 }
 0x407   : > { %4168 = vmatpush1.bf16.msra.mxu0 %v4167_v57 }
 0x408   : > { %4170 = vmatprep.subr.bf16.mxu0 %v4169_v54 }
 0x40b   : > { %4172 = vmatpush1.bf16.msra.mxu0 %v4171_v32 }
 0x40c   : > { %4174 = vmatprep.subr.bf16.mxu0 %v4173_v29 }
 0x40f   : > { %4176 = vmatpush1.bf16.msra.mxu0 %v4175_v5 }
 0x410   : > { %4178 = vmatprep.subr.bf16.mxu0 %v4177_v46 }
 0x413   : > { %4180 = vmatpush1.bf16.msra.mxu0 %v4179_v13 }
 0x414   : > { %4182 = vmatprep.subr.bf16.mxu0 %v4181_v16 }
 0x416   : > { %2324 = vmatmul.mubr.f32.vlgmr.msra.gmra.mrb[4].mxu0 %v1888_v24 }
 0x417   : > { %4184 = vmatpush1.bf16.msra.mxu0 %v4183_v47  ;;  %2394 = vmatprep.mubr.f32.mxu0 %v4600_v21 }
 0x418   : > { %4186 = vmatprep.subr.bf16.mxu0 %v4185_v42 }
 0x41b   : > { %4188 = vmatpush1.bf16.msra.mxu0 %v4187_v59 }
 0x41c   : > { %4190 = vmatprep.subr.bf16.mxu0 %v4189_v41 }
 0x41f   : > { %4192 = vmatpush1.bf16.msra.mxu0 %v4191_v1 }
 0x420   : > { %4194 = vmatprep.subr.bf16.mxu0 %v4193_v35 }
 0x423   : > { %4196 = vmatpush1.bf16.msra.mxu0 %v4195_v60 }
 0x424   : > { %4198 = vmatprep.subr.bf16.mxu0 %v4197_v39 }
 0x427   : > { %4200 = vmatpush1.bf16.msra.mxu0 %v4199_v2 }
 0x428   : > { %4203 = vmatprep.subr.msk.bf16.mxu0 %vm5512_vm15, %v4201_v27 }
 0x42b   : > { %4206 = vmatpush1.bf16.msk.msra.mxu0 %vm5512_vm15, %v4204_v44  ;;  %vm2730_vm15 = vcmask 179200  }
 0x42c   : > { %3671 = vmatprep.mubr.msk.f32.mxu1 %vm2730_vm15, %v2677_v51 }
 0x42e   : > { %3668 = vmatmul.mubr.msk.f32.vlgmr.msra.gmra.mrb[4].mxu0 %vm2107_vm7, %v1890_v33  ;;  %vm2461_vm7 = vcmask 932864  }
 0x501   : > { %v6489_v48 = vpop.f32.mrb[4].mxu0 }
 0x502   : > { %2401 = vst [vmem:[#allocation3] sm:$0x3f] %v6489_v48  ;;  %2448 = vrot.lane.b32.xlu1 %v6489_v48, %s7271_s16  ;;  %v6494_v3 = vpop.f32.mrb[5].mxu0  ;;  %v2406_v36 = vrot.slane %v6489_v48, 2  ;;  %v2421_v62 = vrot.slane %v6489_v48, 4  ;;  %v2436_v57 = vrot.slane %v6489_v48, 6 }
 0x503   : > { %2450 = vrot.lane.b32.xlu0 %v6494_v3, %s7271_s16  ;;  %2403 = vst.msk [vmem:[#allocation3 + $0x8] sm:$0x3f] %vm2402_vm8, %v6494_v3  ;;  %v2407_v52 = vrot.slane %v6494_v3, 2  ;;  %v2422_v10 = vrot.slane %v6494_v3, 4  ;;  %v2437_v54 = vrot.slane %v6494_v3, 6  ;;  %s4609_s16 = smov 114  }
 0x506   : > { %2491 = vrot.lane.b32.xlu1 %v6489_v48, %s4605_s14 }
 0x507   : > { %2493 = vrot.lane.b32.xlu0 %v6494_v3, %s4605_s14  ;;  %s4619_s14 = smov 82  }
 0x50a   : > { %2535 = vrot.lane.b32.xlu1 %v6489_v48, %s4606_s17 }
 0x50b   : > { %2537 = vrot.lane.b32.xlu0 %v6494_v3, %s4606_s17  ;;  %s4620_s17 = smov 71  }
 0x50e   : > { %2578 = vrot.lane.b32.xlu1 %v6489_v48, %s4607_s19 }
 0x50f   : > { %2580 = vrot.lane.b32.xlu0 %v6494_v3, %s4607_s19  ;;  %s4621_s19 = smov 70  }
 0x512   : > { %2622 = vrot.lane.b32.xlu1 %v6489_v48, %s4608_s15 }
 0x513   : > { %2624 = vrot.lane.b32.xlu0 %v6494_v3, %s4608_s15 }
 0x516   : > { %2408 = vrot.lane.b32.xlu1 %v2406_v36, %s7285_s13 }
 0x517   : > { %2410 = vrot.lane.b32.xlu0 %v2407_v52, %s7285_s13 }
 0x51a   : > { %2423 = vrot.lane.b32.xlu1 %v2421_v62, %s7270_s24 }
 0x51b   : > { %2425 = vrot.lane.b32.xlu0 %v2422_v10, %s7270_s24  ;;  %s4612_s24 = smov 110  }
 0x51e   : > { %2438 = vrot.lane.b32.xlu1 %v2436_v57, %s7272_s20 }
 0x51f   : > { %2440 = vrot.lane.b32.xlu0 %v2437_v54, %s7272_s20 }
 0x522   : > { %2457 = vrot.lane.b32.xlu1 %v2406_v36, %s4609_s16 }
 0x523   : > { %2459 = vrot.lane.b32.xlu0 %v2407_v52, %s4609_s16 }
 0x526   : > { %2469 = vrot.lane.b32.xlu1 %v2421_v62, %s4610_s21 }
 0x527   : > { %2471 = vrot.lane.b32.xlu0 %v2422_v10, %s4610_s21  ;;  %s4622_s21 = smov 69  }
 0x52a   : > { %2481 = vrot.lane.b32.xlu1 %v2436_v57, %s4611_s22 }
 0x52b   : > { %2483 = vrot.lane.b32.xlu0 %v2437_v54, %s4611_s22 }
 0x52e   : > { %2501 = vrot.lane.b32.xlu1 %v2406_v36, %s4612_s24 }
 0x52f   : > { %2503 = vrot.lane.b32.xlu0 %v2407_v52, %s4612_s24  ;;  %s4623_s24 = smov 68  }
 0x532   : > { %2513 = vrot.lane.b32.xlu1 %v2421_v62, %s4613_s23 }
 0x533   : > { %2515 = vrot.lane.b32.xlu0 %v2422_v10, %s4613_s23 }
 0x536   : > { %2525 = vrot.lane.b32.xlu1 %v2436_v57, %s4614_s18 }
 0x537   : > { %2527 = vrot.lane.b32.xlu0 %v2437_v54, %s4614_s18 }
 0x53a   : > { %2545 = vrot.lane.b32.xlu1 %v2406_v36, %s4615_s0 }
 0x53b   : > { %2547 = vrot.lane.b32.xlu0 %v2407_v52, %s4615_s0 }
 0x53e   : > { %2557 = vrot.lane.b32.xlu1 %v2421_v62, %s7273_s30 }
 0x53f   : > { %2559 = vrot.lane.b32.xlu0 %v2422_v10, %s7273_s30 }
 0x542   : > { %2568 = vrot.lane.b32.xlu1 %v2436_v57, %s4616_s27 }
 0x543   : > { %2570 = vrot.lane.b32.xlu0 %v2437_v54, %s4616_s27  ;;  %s4632_s27 = smov 44  }
 0x546   : > { %2588 = vrot.lane.b32.xlu1 %v2406_v36, %s4617_s25 }
 0x547   : > { %2590 = vrot.lane.b32.xlu0 %v2407_v52, %s4617_s25  ;;  %s4633_s25 = smov 119  }
 0x54a   : > { %2600 = vrot.lane.b32.xlu1 %v2421_v62, %s4618_s28 }
 0x54b   : > { %2602 = vrot.lane.b32.xlu0 %v2422_v10, %s4618_s28  ;;  %s4627_s28 = smov 50  }
 0x54e   : > { %2612 = vrot.lane.b32.xlu1 %v2436_v57, %s4619_s14 }
 0x54f   : > { %2614 = vrot.lane.b32.xlu0 %v2437_v54, %s4619_s14 }
 0x552   : > { %2632 = vrot.lane.b32.xlu1 %v2406_v36, %s4620_s17 }
 0x553   : > { %2634 = vrot.lane.b32.xlu0 %v2407_v52, %s4620_s17  ;;  %s7375_s17 = sld [smem:[#allocation17_spill]] }
 0x556   : > { %2644 = vrot.lane.b32.xlu1 %v2421_v62, %s4621_s19 }
 0x557   : > { %2646 = vrot.lane.b32.xlu0 %v2422_v10, %s4621_s19  ;;  %s4628_s19 = smov 19  }
 0x55a   : > { %2656 = vrot.lane.b32.xlu1 %v2436_v57, %s4622_s21 }
 0x55b   : > { %2658 = vrot.lane.b32.xlu0 %v2437_v54, %s4622_s21 }
 0x55e   : > { %2666 = vrot.lane.b32.xlu1 %v6489_v48, %s4623_s24 }
 0x55f   : > { %2668 = vrot.lane.b32.xlu0 %v6494_v3, %s4623_s24  ;;  %s4631_s24 = smov 47  }
 0x562   : > { %2722 = vperm.xlu1 %4508, %v2718_v9  }
 0x563   : > { %2727 = vperm.xlu0 %4482, %v2719_v22  }
 0x574   : > { %v2449_v63 = vpop.permute.xlu1 %2448 }
 0x575   : > { %v2451_v32 = vpop.permute.xlu0 %2450 }
 0x576   : > { %v2452_v29 = vsel %vm615_vm3, %v2449_v63, %v2451_v32  ;;  %2456 = vst.msk [vmem:[#allocation3 + $0x38] sm:$0x3f] %vm2402_vm8, %v2451_v32  ;;  %vm2626_vm3 = vcmask 588800  }
 0x577   : > { %2455 = vst [vmem:[#allocation3 + $0x30] sm:$0x3f] %v2452_v29 }
 0x578   : > { %v2492_v11 = vpop.permute.xlu1 %2491 }
 0x579   : > { %v2494_v18 = vpop.permute.xlu0 %2493 }
 0x57a   : > { %v2496_v28 = vsel %vm2495_vm9, %v2492_v11, %v2494_v18  ;;  %2500 = vst.msk [vmem:[#allocation3 + $0x68] sm:$0x3f] %vm2402_vm8, %v2494_v18  ;;  %vm2473_vm9 = vcmask 924672  }
 0x57b   : > { %2499 = vst [vmem:[#allocation3 + $0x60] sm:$0x3f] %v2496_v28 }
 0x57c   : > { %v2536_v14 = vpop.permute.xlu1 %2535 }
 0x57d   : > { %v2538_v5 = vpop.permute.xlu0 %2537 }
 0x57e   : > { %v2540_v46 = vsel %vm2539_vm13, %v2536_v14, %v2538_v5  ;;  %2544 = vst.msk [vmem:[#allocation3 + $0x98] sm:$0x3f] %vm2402_vm8, %v2538_v5  ;;  %vm2485_vm13 = vcmask 916480  }
 0x57f   : > { %2543 = vst [vmem:[#allocation3 + $0x90] sm:$0x3f] %v2540_v46 }
 0x580   : > { %v2579_v0 = vpop.permute.xlu1 %2578 }
 0x581   : > { %v2581_v50 = vpop.permute.xlu0 %2580 }
 0x582   : > { %v2583_v49 = vsel %vm2582_vm1, %v2579_v0, %v2581_v50  ;;  %2587 = vst.msk [vmem:[#allocation3 + $0xc8] sm:$0x3f] %vm2402_vm8, %v2581_v50  ;;  %vm2505_vm1 = vcmask 900096  }
 0x583   : > { %2586 = vst [vmem:[#allocation3 + $0xc0] sm:$0x3f] %v2583_v49 }
 0x584   : > { %v2623_v53 = vpop.permute.xlu1 %2622 }
 0x585   : > { %v2625_v13 = vpop.permute.xlu0 %2624 }
 0x586   : > { %v2627_v16 = vsel %vm2626_vm3, %v2623_v53, %v2625_v13  ;;  %2631 = vst.msk [vmem:[#allocation3 + $0xf8] sm:$0x3f] %vm2402_vm8, %v2625_v13  ;;  %vm2517_vm3 = vcmask 818176  }
 0x587   : > { %2630 = vst [vmem:[#allocation3 + $0xf0] sm:$0x3f] %v2627_v16 }
 0x588   : > { %v2409_v25 = vpop.permute.xlu1 %2408 }
 0x589   : > { %v2411_v8 = vpop.permute.xlu0 %2410 }
 0x58a   : > { %v2412_v23 = vsel %vm481_vm0, %v2409_v25, %v2411_v8  ;;  %2417 = vst.msk [vmem:[#allocation3 + $0x8] sm:$0xc0] %vm2416_vm10, %v2411_v8 }
 0x58b   : > { %2420 = vst.msk [vmem:[#allocation3 + $0x18] sm:$0xf] %vm2419_vm11, %v2411_v8  ;;  %2415 = vst [vmem:[#allocation3 + $0x10] ss:$-12 sps:$4 sm:$0xcf] %v2412_v23  }
 0x58c   : > { %v2424_v38 = vpop.permute.xlu1 %2423 }
 0x58d   : > { %v2426_v26 = vpop.permute.xlu0 %2425 }
 0x58e   : > { %v2427_v47 = vsel %vm7328_vm6, %v2424_v38, %v2426_v26  ;;  %2432 = vst.msk [vmem:[#allocation3 + $0x18] sm:$0xf0] %vm2431_vm14, %v2426_v26  ;;  %vm2529_vm6 = vcmask 809984  }
 0x58f   : > { %2435 = vst.msk [vmem:[#allocation3 + $0x28] sm:$0x3] %vm2434_vm5, %v2426_v26  ;;  %2430 = vst [vmem:[#allocation3 + $0x20] ss:$-12 sps:$4 sm:$0xf3] %v2427_v47  }
 0x590   : > { %v2439_v24 = vpop.permute.xlu1 %2438 }
 0x591   : > { %v2441_v42 = vpop.permute.xlu0 %2440  ;;  %v2681_v34 = vld [vmem:[#allocation3 + $0x8] sm:$0xff] }
 0x592   : > { %v2442_v12 = vsel %vm575_vm2, %v2439_v24, %v2441_v42  ;;  %2447 = vst.msk [vmem:[#allocation3 + $0x28] sm:$0xfc] %vm2446_vm12, %v2441_v42  ;;  %v2680_v17 = vld [vmem:[#allocation3] sm:$0xff] }
 0x593   : > { %2445 = vst [vmem:[#allocation3 + $0x20] sm:$0xfc] %v2442_v12 }
 0x594   : > { %v2458_v19 = vpop.permute.xlu1 %2457 }
 0x595   : > { %v2460_v6 = vpop.permute.xlu0 %2459  ;;  %v2683_v59 = vld [vmem:[#allocation3 + $0x18] sm:$0xff] }
 0x596   : > { %v2462_v41 = vsel %vm2461_vm7, %v2458_v19, %v2460_v6  ;;  %2466 = vst.msk [vmem:[#allocation3 + $0x38] sm:$0xc0] %vm2416_vm10, %v2460_v6  ;;  %v4207_v30 = vpack.c.bf16 %v2683_v59, %v2681_v34  ;;  %v2682_v55 = vld [vmem:[#allocation3 + $0x10] sm:$0xff] }
 0x597   : > { %2468 = vst.msk [vmem:[#allocation3 + $0x48] sm:$0xf] %vm2419_vm11, %v2460_v6  ;;  %2465 = vst [vmem:[#allocation3 + $0x40] ss:$-12 sps:$4 sm:$0xcf] %v2462_v41   ;;  %v4209_v7 = vpack.c.bf16 %v2682_v55, %v2680_v17 }
 0x598   : > { %v2470_v1 = vpop.permute.xlu1 %2469  ;;  %4208 = vmatprep.subr.bf16.mxu1 %v4207_v30 }
 0x599   : > { %v2472_v35 = vpop.permute.xlu0 %2471  ;;  %4210 = vmatpush1.bf16.msra.mxu1 %v4209_v7  ;;  %v2685_v40 = vld [vmem:[#allocation3 + $0x28] sm:$0xff] }
 0x59a   : > { %v2474_v43 = vsel %vm2473_vm9, %v2470_v1, %v2472_v35  ;;  %2478 = vst.msk [vmem:[#allocation3 + $0x48] sm:$0xf0] %vm2431_vm14, %v2472_v35  ;;  %v2684_v20 = vld [vmem:[#allocation3 + $0x20] sm:$0xff]  ;;  %vm2549_vm9 = vcmask 793600  }
 0x59b   : > { %2480 = vst.msk [vmem:[#allocation3 + $0x58] sm:$0x3] %vm2434_vm5, %v2472_v35  ;;  %2477 = vst [vmem:[#allocation3 + $0x50] ss:$-12 sps:$4 sm:$0xf3] %v2474_v43  }
 0x59c   : > { %v2482_v15 = vpop.permute.xlu1 %2481 }
 0x59d   : > { %v2484_v4 = vpop.permute.xlu0 %2483  ;;  %v2687_v60 = vld [vmem:[#allocation3 + $0x38] sm:$0xff] }
 0x59e   : > { %v2486_v39 = vsel %vm2485_vm13, %v2482_v15, %v2484_v4  ;;  %2490 = vst.msk [vmem:[#allocation3 + $0x58] sm:$0xfc] %vm2446_vm12, %v2484_v4  ;;  %v4211_v45 = vpack.c.bf16 %v2687_v60, %v2685_v40  ;;  %v2686_v58 = vld [vmem:[#allocation3 + $0x30] sm:$0xff]  ;;  %vm2572_vm13 = vcmask 703488  }
 0x59f   : > { %2489 = vst [vmem:[#allocation3 + $0x50] sm:$0xfc] %v2486_v39  ;;  %v4213_v56 = vpack.c.bf16 %v2686_v58, %v2684_v20 }
 0x5a0   : > { %v2502_v2 = vpop.permute.xlu1 %2501  ;;  %4212 = vmatprep.subr.bf16.mxu1 %v4211_v45 }
 0x5a1   : > { %v2504_v27 = vpop.permute.xlu0 %2503  ;;  %4214 = vmatpush1.bf16.msra.mxu1 %v4213_v56  ;;  %v2689_v33 = vld [vmem:[#allocation3 + $0x48] sm:$0xff] }
 0x5a2   : > { %v2506_v61 = vsel %vm2505_vm1, %v2502_v2, %v2504_v27  ;;  %2510 = vst.msk [vmem:[#allocation3 + $0x68] sm:$0xc0] %vm2416_vm10, %v2504_v27  ;;  %v2688_v52 = vld [vmem:[#allocation3 + $0x40] sm:$0xff]  ;;  %vm2592_vm1 = vcmask 687104  }
 0x5a3   : > { %2512 = vst.msk [vmem:[#allocation3 + $0x78] sm:$0xf] %vm2419_vm11, %v2504_v27  ;;  %2509 = vst [vmem:[#allocation3 + $0x70] ss:$-12 sps:$4 sm:$0xcf] %v2506_v61  }
 0x5a4   : > { %v2514_v37 = vpop.permute.xlu1 %2513 }
 0x5a5   : > { %v2516_v44 = vpop.permute.xlu0 %2515  ;;  %v2691_v48 = vld [vmem:[#allocation3 + $0x58] sm:$0xff] }
 0x5a6   : > { %v2518_v3 = vsel %vm2517_vm3, %v2514_v37, %v2516_v44  ;;  %2522 = vst.msk [vmem:[#allocation3 + $0x78] sm:$0xf0] %vm2431_vm14, %v2516_v44  ;;  %v4215_v36 = vpack.c.bf16 %v2691_v48, %v2689_v33  ;;  %v2690_v62 = vld [vmem:[#allocation3 + $0x50] sm:$0xff]  ;;  %vm2616_vm3 = vcmask 670720  }
 0x5a7   : > { %2524 = vst.msk [vmem:[#allocation3 + $0x88] sm:$0x3] %vm2434_vm5, %v2516_v44  ;;  %2521 = vst [vmem:[#allocation3 + $0x80] ss:$-12 sps:$4 sm:$0xf3] %v2518_v3   ;;  %v4217_v10 = vpack.c.bf16 %v2690_v62, %v2688_v52 }
 0x5a8   : > { %v2526_v57 = vpop.permute.xlu1 %2525  ;;  %4216 = vmatprep.subr.bf16.mxu1 %v4215_v36 }
 0x5a9   : > { %v2528_v54 = vpop.permute.xlu0 %2527  ;;  %4218 = vmatpush1.bf16.msra.mxu1 %v4217_v10  ;;  %v2693_v63 = vld [vmem:[#allocation3 + $0x68] sm:$0xff] }
 0x5aa   : > { %v2530_v51 = vsel %vm2529_vm6, %v2526_v57, %v2528_v54  ;;  %2534 = vst.msk [vmem:[#allocation3 + $0x88] sm:$0xfc] %vm2446_vm12, %v2528_v54  ;;  %v2692_v18 = vld [vmem:[#allocation3 + $0x60] sm:$0xff]  ;;  %vm2636_vm6 = vcmask 580608  }
 0x5ab   : > { %2533 = vst [vmem:[#allocation3 + $0x80] sm:$0xfc] %v2530_v51 }
 0x5ac   : > { %v2546_v22 = vpop.permute.xlu1 %2545 }
 0x5ad   : > { %v2548_v9 = vpop.permute.xlu0 %2547  ;;  %v2695_v32 = vld [vmem:[#allocation3 + $0x78] sm:$0xff] }
 0x5ae   : > { %v2550_v29 = vsel %vm2549_vm9, %v2546_v22, %v2548_v9  ;;  %2554 = vst.msk [vmem:[#allocation3 + $0x98] sm:$0xc0] %vm2416_vm10, %v2548_v9  ;;  %v4219_v11 = vpack.c.bf16 %v2695_v32, %v2693_v63  ;;  %v2694_v28 = vld [vmem:[#allocation3 + $0x70] sm:$0xff]  ;;  %vm2648_vm9 = vcmask 572416  }
 0x5af   : > { %2556 = vst.msk [vmem:[#allocation3 + $0xa8] sm:$0xf] %vm2419_vm11, %v2548_v9  ;;  %2553 = vst [vmem:[#allocation3 + $0xa0] ss:$-12 sps:$4 sm:$0xcf] %v2550_v29   ;;  %v4221_v14 = vpack.c.bf16 %v2694_v28, %v2692_v18  ;;  %v2679_v28 = vld [vmem:[%s7183_s4 + $0x18] sm:$0xff] }
 0x5b0   : > { %v2558_v5 = vpop.permute.xlu1 %2557  ;;  %4220 = vmatprep.subr.bf16.mxu1 %v4219_v11  ;;  %v2676_v11 = vld [vmem:[%s7183_s4] sm:$0xff] }
 0x5b1   : > { %v2560_v46 = vpop.permute.xlu0 %2559  ;;  %4222 = vmatpush1.bf16.msra.mxu1 %v4221_v14  ;;  %v2697_v53 = vld [vmem:[#allocation3 + $0x88] sm:$0xff]  ;;  %v2678_v14 = vld [vmem:[%s7183_s4 + $0x10] sm:$0xff] }
 0x5b2   : > { %v2561_v0 = vsel %vm662_vm4, %v2558_v5, %v2560_v46  ;;  %2565 = vst.msk [vmem:[#allocation3 + $0xa8] sm:$0xf0] %vm2431_vm14, %v2560_v46  ;;  %v2696_v8 = vld [vmem:[#allocation3 + $0x80] sm:$0xff]  ;;  %vm2604_vm4 = vcmask 678912  }
 0x5b3   : > { %2567 = vst.msk [vmem:[#allocation3 + $0xb8] sm:$0x3] %vm2434_vm5, %v2560_v46  ;;  %2564 = vst [vmem:[#allocation3 + $0xb0] ss:$-12 sps:$4 sm:$0xf3] %v2561_v0   ;;  %v2869_v0 = vld [vmem:[%s7185_s6] sm:$0xff] }
 0x5b4   : > { %v2569_v50 = vpop.permute.xlu1 %2568 }
 0x5b5   : > { %v2571_v49 = vpop.permute.xlu0 %2570  ;;  %v2699_v13 = vld [vmem:[#allocation3 + $0x98] sm:$0xff] }
 0x5b6   : > { %v2573_v16 = vsel %vm2572_vm13, %v2569_v50, %v2571_v49  ;;  %2577 = vst.msk [vmem:[#allocation3 + $0xb8] sm:$0xfc] %vm2446_vm12, %v2571_v49  ;;  %v4223_v25 = vpack.c.bf16 %v2699_v13, %v2697_v53  ;;  %v2698_v23 = vld [vmem:[#allocation3 + $0x90] sm:$0xff]  ;;  %vm2660_vm13 = vcmask 564224   ;;  %v2870_v50 = vld [vmem:[%s7185_s6 + $0x8] sm:$0xff]  ;;  %v2871_v49 = vld [vmem:[%s7185_s6 + $0x10] sm:$0xff] }
 0x5b7   : > { %2576 = vst [vmem:[#allocation3 + $0xb0] sm:$0xfc] %v2573_v16  ;;  %v4225_v38 = vpack.c.bf16 %v2698_v23, %v2696_v8  ;;  %v4243_v16 = vpack.c.bf16 %v2870_v50, %v2869_v0  ;;  %v3207_v0 = vld [vmem:[%s7186_s7 + $0x88] sm:$0xff] }
 0x5b8   : > { %v2589_v26 = vpop.permute.xlu1 %2588  ;;  %4224 = vmatprep.subr.bf16.mxu1 %v4223_v25  ;;  %v2872_v25 = vld [vmem:[%s7185_s6 + $0x18] sm:$0xff] }
 0x5b9   : > { %v2591_v47 = vpop.permute.xlu0 %2590  ;;  %4226 = vmatpush1.bf16.msra.mxu1 %v4225_v38  ;;  %v2701_v19 = vld [vmem:[#allocation3 + $0xa8] sm:$0xff]  ;;  %v4247_v23 = vpack.c.bf16 %v2872_v25, %v2871_v49  ;;  %v2873_v38 = vld [vmem:[%s7185_s6 + $0x20] sm:$0xff] }
 0x5ba   : > { %v2593_v24 = vsel %vm2592_vm1, %v2589_v26, %v2591_v47  ;;  %2597 = vst.msk [vmem:[#allocation3 + $0xc8] sm:$0xc0] %vm2416_vm10, %v2591_v47  ;;  %v2700_v41 = vld [vmem:[#allocation3 + $0xa0] sm:$0xff]  ;;  %v2874_v26 = vld [vmem:[%s7185_s6 + $0x28] sm:$0xff] }
 0x5bb   : > { %2599 = vst.msk [vmem:[#allocation3 + $0xd8] sm:$0xf] %vm2419_vm11, %v2591_v47  ;;  %2596 = vst [vmem:[#allocation3 + $0xd0] ss:$-12 sps:$4 sm:$0xcf] %v2593_v24  }
 0x5bc   : > { %v2601_v42 = vpop.permute.xlu1 %2600 }
 0x5bd   : > { %v2603_v12 = vpop.permute.xlu0 %2602  ;;  %v2703_v6 = vld [vmem:[#allocation3 + $0xb8] sm:$0xff] }
 0x5be   : > { %v2605_v34 = vsel %vm2604_vm4, %v2601_v42, %v2603_v12  ;;  %2609 = vst.msk [vmem:[#allocation3 + $0xd8] sm:$0xf0] %vm2431_vm14, %v2603_v12  ;;  %v4227_v59 = vpack.c.bf16 %v2703_v6, %v2701_v19  ;;  %v2702_v30 = vld [vmem:[#allocation3 + $0xb0] sm:$0xff] }
 0x5bf   : > { %2611 = vst.msk [vmem:[#allocation3 + $0xe8] sm:$0x3] %vm2434_vm5, %v2603_v12  ;;  %2608 = vst [vmem:[#allocation3 + $0xe0] ss:$-12 sps:$4 sm:$0xf3] %v2605_v34   ;;  %v4229_v17 = vpack.c.bf16 %v2702_v30, %v2700_v41  ;;  %v4251_v34 = vpack.c.bf16 %v2874_v26, %v2873_v38  ;;  %v2875_v41 = vld [vmem:[%s7185_s6 + $0x30] sm:$0xff] }
 0x5c0   : > { %v2613_v55 = vpop.permute.xlu1 %2612  ;;  %4228 = vmatprep.subr.bf16.mxu1 %v4227_v59  ;;  %v2876_v30 = vld [vmem:[%s7185_s6 + $0x38] sm:$0xff] }
 0x5c1   : > { %v2615_v7 = vpop.permute.xlu0 %2614  ;;  %4230 = vmatpush1.bf16.msra.mxu1 %v4229_v17  ;;  %v2705_v15 = vld [vmem:[#allocation3 + $0xc8] sm:$0xff] }
 0x5c2   : > { %v2617_v1 = vsel %vm2616_vm3, %v2613_v55, %v2615_v7  ;;  %2621 = vst.msk [vmem:[#allocation3 + $0xe8] sm:$0xfc] %vm2446_vm12, %v2615_v7  ;;  %v2704_v39 = vld [vmem:[#allocation3 + $0xc0] sm:$0xff]  ;;  %v4255_v7 = vpack.c.bf16 %v2876_v30, %v2875_v41 }
 0x5c3   : > { %2620 = vst [vmem:[#allocation3 + $0xe0] sm:$0xfc] %v2617_v1  ;;  %v2877_v1 = vld [vmem:[%s7185_s6 + $0x40] sm:$0xff] }
 0x5c4   : > { %v2633_v35 = vpop.permute.xlu1 %2632 }
 0x5c5   : > { %v2635_v43 = vpop.permute.xlu0 %2634  ;;  %v2707_v4 = vld [vmem:[#allocation3 + $0xd8] sm:$0xff] }
 0x5c6   : > { %v2637_v40 = vsel %vm2636_vm6, %v2633_v35, %v2635_v43  ;;  %2641 = vst.msk [vmem:[#allocation3 + $0xf8] sm:$0xc0] %vm2416_vm10, %v2635_v43  ;;  %v4231_v60 = vpack.c.bf16 %v2707_v4, %v2705_v15  ;;  %v2706_v45 = vld [vmem:[#allocation3 + $0xd0] sm:$0xff]  ;;  %vm2670_vm10 = vcmask 556032   ;;  %v2878_v35 = vld [vmem:[%s7185_s6 + $0x48] sm:$0xff]  ;;  %v2879_v15 = vld [vmem:[%s7185_s6 + $0x50] sm:$0xff] }
 0x5c7   : > { %2643 = vst.msk [vmem:[#allocation3 + $0x108] sm:$0xf] %vm2419_vm11, %v2635_v43  ;;  %2640 = vst [vmem:[#allocation3 + $0x100] ss:$-12 sps:$4 sm:$0xcf] %v2637_v40   ;;  %v4233_v20 = vpack.c.bf16 %v2706_v45, %v2704_v39  ;;  %vm2737_vm11 = vcmask 1045504   ;;  %v4259_v43 = vpack.c.bf16 %v2878_v35, %v2877_v1 }
 0x5c8   : > { %v2645_v58 = vpop.permute.xlu1 %2644  ;;  %4232 = vmatprep.subr.bf16.mxu1 %v4231_v60  ;;  %v2880_v4 = vld [vmem:[%s7185_s6 + $0x58] sm:$0xff]  ;;  %v2881_v60 = vld [vmem:[%s7185_s6 + $0x60] sm:$0xff]  ;;  %v2882_v39 = vld [vmem:[%s7185_s6 + $0x68] sm:$0xff] }
 0x5c9   : > { %v2647_v56 = vpop.permute.xlu0 %2646  ;;  %4234 = vmatpush1.bf16.msra.mxu1 %v4233_v20  ;;  %v2709_v37 = vld [vmem:[#allocation3 + $0xe8] sm:$0xff]  ;;  %v4263_v40 = vpack.c.bf16 %v2880_v4, %v2879_v15  ;;  %v4267_v45 = vpack.c.bf16 %v2882_v39, %v2881_v60  ;;  %v2883_v20 = vld [vmem:[%s7185_s6 + $0x70] sm:$0xff]  ;;  %v3194_v1 = vld [vmem:[%s7186_s7 + $0x20] sm:$0xff] }
 0x5ca   : > { %v2649_v2 = vsel %vm2648_vm9, %v2645_v58, %v2647_v56  ;;  %2653 = vst.msk [vmem:[#allocation3 + $0x108] sm:$0xf0] %vm2431_vm14, %v2647_v56  ;;  %v2708_v3 = vld [vmem:[#allocation3 + $0xe0] sm:$0xff]  ;;  %v2884_v58 = vld [vmem:[%s7185_s6 + $0x78] sm:$0x1]  ;;  %v3195_v35 = vld [vmem:[%s7186_s7 + $0x28] sm:$0xff] }
 0x5cb   : > { %2655 = vst.msk [vmem:[#allocation3 + $0x118] sm:$0x3] %vm2434_vm5, %v2647_v56  ;;  %2652 = vst [vmem:[#allocation3 + $0x110] ss:$-12 sps:$4 sm:$0xf3] %v2649_v2   ;;  %v4271_v56 = vpack.c.bf16 %v2884_v58, %v2883_v20  ;;  %vm2885_vm5 = vcmask 990208  }
 0x5cc   : > { %v2657_v27 = vpop.permute.xlu1 %2656  ;;  %v3212_v15 = vld [vmem:[%s7186_s7 + $0xb0] sm:$0xff]  ;;  %v3213_v4 = vld [vmem:[%s7186_s7 + $0xb8] sm:$0xff] }
 0x5cd   : > { %v2659_v61 = vpop.permute.xlu0 %2658  ;;  %v2711_v44 = vld [vmem:[#allocation3 + $0xf8] sm:$0xff]  ;;  %v3196_v20 = vld [vmem:[%s7186_s7 + $0x30] sm:$0xff]  ;;  %v3197_v58 = vld [vmem:[%s7186_s7 + $0x38] sm:$0xff] }
 0x5ce   : > { %v2661_v33 = vsel %vm2660_vm13, %v2657_v27, %v2659_v61  ;;  %2665 = vst.msk [vmem:[#allocation3 + $0x118] sm:$0xfc] %vm2446_vm12, %v2659_v61  ;;  %v4235_v48 = vpack.c.bf16 %v2711_v44, %v2709_v37  ;;  %v2710_v36 = vld [vmem:[#allocation3 + $0xf0] sm:$0xff] }
 0x5cf   : > { %2664 = vst [vmem:[#allocation3 + $0x110] sm:$0xfc] %v2661_v33  ;;  %v4237_v52 = vpack.c.bf16 %v2710_v36, %v2708_v3 }
 0x5d0   : > { %v2667_v62 = vpop.permute.xlu1 %2666  ;;  %4236 = vmatprep.subr.bf16.mxu1 %v4235_v48 }
 0x5d1   : > { %v2669_v10 = vpop.permute.xlu0 %2668  ;;  %4238 = vmatpush1.bf16.msra.mxu1 %v4237_v52  ;;  %v2713_v54 = vld [vmem:[#allocation3 + $0x108] sm:$0xff] }
 0x5d2   : > { %v2671_v57 = vsel %vm2670_vm10, %v2667_v62, %v2669_v10  ;;  %2675 = vst.msk [vmem:[#allocation3 + $0x128] sm:$0x3f] %vm2402_vm8, %v2669_v10  ;;  %v2712_v9 = vld [vmem:[#allocation3 + $0x100] sm:$0xff]  ;;  %vm2892_vm8 = vcmask 1040384  }
 0x5d3   : > { %2674 = vst [vmem:[#allocation3 + $0x120] sm:$0x3f] %v2671_v57 }
 0x5d5   : > { %v2715_v51 = vld [vmem:[#allocation3 + $0x118] sm:$0xff] }
 0x5d6   : > { %v4239_v22 = vpack.c.bf16 %v2715_v51, %v2713_v54  ;;  %v2714_v63 = vld [vmem:[#allocation3 + $0x110] sm:$0xff] }
 0x5d7   : > { %v4241_v32 = vpack.c.bf16 %v2714_v63, %v2712_v9 }
 0x5d8   : > { %4240 = vmatprep.subr.bf16.mxu1 %v4239_v22 }
 0x5d9   : > { %4242 = vmatpush1.bf16.msra.mxu1 %v4241_v32  ;;  %v2717_v29 = vld [vmem:[#allocation3 + $0x128] sm:$0x3f] }
 0x5da   : > { %3669 = vmatprep.subr.msk.mxu1 %vm2737_vm11, %v2717_v29  ;;  %v2716_v18 = vld [vmem:[#allocation3 + $0x120] sm:$0x3f] }
 0x5dd   : > { %3670 = vmatpush1.msk.msra.mxu1 %vm2737_vm11, %v2716_v18  ;;  %v4624_v18 = vmov 1966171168  }
 0x5de   : > { %2809 = vmatmul.mubr.f32.vlgmr.msra.gmra.mrb[4].mxu1 %v2676_v11  ;;  %4244 = vmatprep.subr.bf16.mxu1 %v4243_v16  ;;  %v2971_v11 = vlaneseq }
 0x5df   : > { %3672 = vmatprep.mubr.msk.f32.mxu1 %vm2730_vm15, %v2679_v28  ;;  %4246 = vmatpush3.bf16.msra.mxu1 %v4243_v16  ;;  %vm7329_vm15 = vmmov 1   ;;  %v2978_v28 = vunpack.c.l.s4 %v4624_v18 }
 0x5e0   : > { %4248 = vmatprep.subr.bf16.mxu1 %v4247_v23  ;;  %vm4272_vm14 = vmpackc.low %vm2892_vm8, %vm7329_vm15  ;;  %vm3002_vm12 = vcmp.ge.s32.totalorder %v2971_v11, 25  ;;  %vm3010_vm4 = vcmp.ge.s32.totalorder %v2971_v11, 50  ;;  %vm3011_vm3 = vcmp.lt.s32.totalorder %v2971_v11, 75  ;;  %vm3018_vm9 = vcmp.ge.s32.totalorder %v2971_v11, 75 }
 0x5e1   : > { %v2723_v5 = vpop.permute.xlu1 %2722  ;;  %vm3012_vm6 = vmand %vm3010_vm4, %vm3011_vm3  ;;  %vm3019_vm13 = vcmp.lt.s32.totalorder %v2971_v11, 100  ;;  %vm3040_vm10 = vcmp.ge.s32.totalorder %v2971_v11, 100  ;;  %vm3041_vm11 = vcmp.lt.s32.totalorder %v2971_v11, 125  ;;  %vm6827_vm3 = vcmp.ge.s32.totalorder %v2971_v11, 72 }
 0x5e2   : > { %2815 = vmatmul.mubr.f32.gmra.mrb[6].mxu1 %v2678_v14  ;;  %v2728_v24 = vpop.permute.xlu0 %2727  ;;  %v2979_v14 = vunpack.c.0.s8 %v2978_v28  ;;  %vm3020_vm8 = vmand %vm3018_vm9, %vm3019_vm13  ;;  %vm6841_vm13 = vcmp.ge.s32.totalorder %v2971_v11, 97 }
 0x5e3   : > { %4250 = vmatpush3.bf16.msra.mxu1 %v4247_v23  ;;  %v3209_v23 = vld [vmem:[%s7186_s7 + $0x98] sm:$0xff]  ;;  %vm3042_vm15 = vmand %vm3040_vm10, %vm3041_vm11  ;;  %vm6846_vm10 = vcmp.lt.s32.totalorder %v2971_v11, 122 }
 0x5e4   : > { %4252 = vmatprep.subr.bf16.mxu1 %v4251_v34 }
 0x5e7   : > { %4254 = vmatpush3.bf16.msra.mxu1 %v4251_v34 }
 0x5e8   : > { %4256 = vmatprep.subr.bf16.mxu1 %v4255_v7 }
 0x5eb   : > { %4258 = vmatpush3.bf16.msra.mxu1 %v4255_v7  ;;  %v3211_v7 = vld [vmem:[%s7186_s7 + $0xa8] sm:$0xff] }
 0x5ec   : > { %4260 = vmatprep.subr.bf16.mxu1 %v4259_v43 }
 0x5ef   : > { %4262 = vmatpush3.bf16.msra.mxu1 %v4259_v43 }
 0x5f0   : > { %4264 = vmatprep.subr.bf16.mxu1 %v4263_v40 }
 0x5f3   : > { %4266 = vmatpush3.bf16.msra.mxu1 %v4263_v40 }
 0x5f4   : > { %4268 = vmatprep.subr.bf16.mxu1 %v4267_v45 }
 0x5f7   : > { %4270 = vmatpush3.bf16.msra.mxu1 %v4267_v45  ;;  %v4287_v45 = vpack.c.bf16 %v3195_v35, %v3194_v1  ;;  %v3236_v35 = vld [vmem:[%s7186_s7 + $0x170] sm:$0xff] }
 0x5f8   : > { %4273 = vmatprep.subr.msk.bf16.mxu1 %vm4272_vm14, %v4271_v56 }
 0x5fb   : > { %4276 = vmatpush3.bf16.msk.msra.mxu1 %vm4272_vm14, %v4271_v56  ;;  %vm6793_vm14 = vcmp.ge.s32.totalorder %v2971_v11, 125 }
 0x6b1   : > { %v2810_v46 = vpop.f32.mrb[4].mxu1 }
 0x6b2   : > { %v2811_v53 = vadd.f32 %v2810_v46, %v2723_v5  ;;  %v2812_v13 = vpop.f32.mrb[5].mxu1  ;;  %v3206_v46 = vld [vmem:[%s7186_s7 + $0x80] sm:$0xff] }
 0x6b3   : > { %v2813_v8 = vadd.f32 %v2812_v13, %v2723_v5  ;;  %v6663_v5 = vshrl.u32 %v2971_v11, 7  ;;  %v4277_v49 = vpack.c.bf16 %v3207_v0, %v3206_v46  ;;  %v3191_v13 = vld [vmem:[%s7186_s7 + $0x8] sm:$0xff] }
 0x6b4   : > { %v6614_v47 = vmax.f32 %v2811_v53, 0.0  ;;  %v3190_v53 = vld [vmem:[%s7186_s7] sm:$0xff]  ;;  %v3219_v46 = vld [vmem:[%s7186_s7 + $0xe8] sm:$0xff] }
 0x6b5   : > { %v2822_v42 = vmax.f32 %v2813_v8, 0.0  ;;  %v2816_v12 = vpop.f32.mrb[6].mxu1  ;;  %v6672_v50 = vsub.s32 %v2979_v14, %v6663_v5  ;;  %v4279_v16 = vpack.c.bf16 %v3191_v13, %v3190_v53  ;;  %4278 = vmatprep.subr.bf16.mxu1 %v4277_v49  ;;  %v3208_v8 = vld [vmem:[%s7186_s7 + $0x90] sm:$0xff]  ;;  %v3218_v14 = vld [vmem:[%s7186_s7 + $0xe0] sm:$0xff]  ;;  %v3203_v13 = vld [vmem:[%s7186_s7 + $0x68] sm:$0xff] }
 0x6b6   : > { %v2817_v19 = vadd.f32 %v2816_v12, %v2728_v24  ;;  %v2818_v6 = vpop.f32.mrb[7].mxu1  ;;  %2827 = vrot.lane.b32.xlu1 %v6614_v47, %s7285_s13  ;;  %v4301_v49 = vpack.c.bf16 %v3219_v46, %v3218_v14  ;;  %v3202_v53 = vld [vmem:[%s7186_s7 + $0x60] sm:$0xff]  ;;  %v3244_v14 = vsub.s32 0, %v6663_v5 }
 0x6b7   : > { %v2819_v59 = vadd.f32 %v2818_v6, %v2728_v24  ;;  %2837 = vrot.lane.b32.xlu0 %v2822_v42, %s7285_s13  ;;  %v3192_v24 = vld [vmem:[%s7186_s7 + $0x10] sm:$0xff]  ;;  %v3222_v46 = vld [vmem:[%s7186_s7 + $0x100] sm:$0xff] }
 0x6b8   : > { %v2823_v17 = vmax.f32 %v2817_v19, 0.0 }
 0x6b9   : > { %v2824_v55 = vmax.f32 %v2819_v59, 0.0 }
 0x6ba   : > { %2829 = vrot.lane.b32.xlu1 %v2823_v17, %s7285_s13 }
 0x6bb   : > { %2839 = vrot.lane.b32.xlu0 %v2824_v55, %s7285_s13  ;;  %s4626_s13 = smov 25  }
 0x728   : > { %v2828_v2 = vpop.permute.xlu1 %2827 }
 0x729   : > { %v2838_v27 = vpop.permute.xlu0 %2837  ;;  %v2833_v10 = vmax.f32 %v6614_v47, %v2828_v2 }
 0x72a   : > { %v2841_v61 = vsel %vm481_vm0, %v2828_v2, %v2838_v27  ;;  %v2848_v37 = vmax.f32 %v2822_v42, %v2838_v27  ;;  %v3193_v42 = vld [vmem:[%s7186_s7 + $0x18] sm:$0xff]  ;;  %v4289_v27 = vpack.c.bf16 %v3213_v4, %v3212_v15 }
 0x72b   : > { %v2847_v44 = vmax.f32 %v6614_v47, %v2841_v61  ;;  %v4281_v47 = vpack.c.bf16 %v3209_v23, %v3208_v8  ;;  %v4283_v19 = vpack.c.bf16 %v3193_v42, %v3192_v24  ;;  %v4291_v61 = vpack.c.bf16 %v3197_v58, %v3196_v20  ;;  %v3204_v24 = vld [vmem:[%s7186_s7 + $0x70] sm:$0xff]  ;;  %v3205_v42 = vld [vmem:[%s7186_s7 + $0x78] sm:$0xff]  ;;  %v3405_v20 = vld [vmem:[%s7188_s9] sm:$0xff] }
 0x72c   : > { %2857 = vrot.lane.b32.xlu0 %v2848_v37, %s4609_s16  ;;  %v2830_v33 = vpop.permute.xlu1 %2829  ;;  %v3214_v37 = vld [vmem:[%s7186_s7 + $0xc0] sm:$0xff] }
 0x72d   : > { %v2840_v48 = vpop.permute.xlu0 %2839  ;;  %2855 = vrot.lane.b32.xlu1 %v2847_v44, %s4609_s16  ;;  %v2834_v9 = vmax.f32 %v2823_v17, %v2830_v33  ;;  %v3215_v44 = vld [vmem:[%s7186_s7 + $0xc8] sm:$0xff] }
 0x72e   : > { %v2842_v3 = vsel %vm481_vm0, %v2830_v33, %v2840_v48  ;;  %v2850_v36 = vmax.f32 %v2824_v55, %v2840_v48  ;;  %vm2973_vm0 = vcmp.lt.s32.totalorder %v2971_v11, 25  ;;  %v4293_v48 = vpack.c.bf16 %v3215_v44, %v3214_v37  ;;  %v3410_v37 = vld [vmem:[%s7188_s9 + $0x28] sm:$0xff] }
 0x72f   : > { %v2849_v52 = vmax.f32 %v2823_v17, %v2842_v3  ;;  %v3210_v17 = vld [vmem:[%s7186_s7 + $0xa0] sm:$0xff] }
 0x730   : > { %2861 = vrot.lane.b32.xlu0 %v2850_v36, %s4609_s16  ;;  %v4285_v39 = vpack.c.bf16 %v3211_v7, %v3210_v17  ;;  %v3198_v3 = vld [vmem:[%s7186_s7 + $0x40] sm:$0xff]  ;;  %v3199_v36 = vld [vmem:[%s7186_s7 + $0x48] sm:$0xff] }
 0x731   : > { %2859 = vrot.lane.b32.xlu1 %v2849_v52, %s4609_s16  ;;  %s431_s16 = sand.u32 1, %s4571_s26  }
 0x732   : > { %s3582_s30 = scalar_lea.sflag [#allocation6], %s431_s16 }
 0x79e   : > { %v2858_v62 = vpop.permute.xlu0 %2857 }
 0x79f   : > { %v2856_v57 = vpop.permute.xlu1 %2855 }
 0x7a0   : > { %v2863_v54 = vsel %vm2461_vm7, %v2856_v57, %v2858_v62  ;;  %v4295_v57 = vpack.c.bf16 %v3199_v36, %v3198_v3  ;;  %v3413_v36 = vld [vmem:[%s7188_s9 + $0x40] sm:$0xff] }
 0x7a1   : > { %v2867_v51 = vmax.f32 %v2833_v10, %v2863_v54  ;;  %v3216_v54 = vld [vmem:[%s7186_s7 + $0xd0] sm:$0xff] }
 0x7a2   : > { %v2862_v22 = vpop.permute.xlu0 %2861 }
 0x7a3   : > { %3834 = vmatprep.mubr.msk.f32.mxu1 %vm2885_vm5, %v2867_v51  ;;  %v2860_v63 = vpop.permute.xlu1 %2859  ;;  %v3217_v51 = vld [vmem:[%s7186_s7 + $0xd8] sm:$0xff] }
 0x7a4   : > { %v2864_v32 = vsel %vm2461_vm7, %v2860_v63, %v2862_v22  ;;  %v3200_v63 = vld [vmem:[%s7186_s7 + $0x50] sm:$0xff]  ;;  %vm3003_vm7 = vcmp.lt.s32.totalorder %v2971_v11, 50 }
 0x7a5   : > { %v2868_v29 = vmax.f32 %v2834_v9, %v2864_v32  ;;  %v4297_v9 = vpack.c.bf16 %v3217_v51, %v3216_v54  ;;  %v3201_v32 = vld [vmem:[%s7186_s7 + $0x58] sm:$0xff]  ;;  %vm3004_vm1 = vmand %vm3002_vm12, %vm3003_vm7  ;;  %vm6808_vm12 = vcmp.lt.s32.totalorder %v2971_v11, 47  ;;  %vm6813_vm7 = vcmp.ge.s32.totalorder %v2971_v11, 47  ;;  %v3417_v51 = vld [vmem:[%s7188_s9 + $0x60] sm:$0xff] }
 0x7a6   : > { %v4299_v28 = vpack.c.bf16 %v3201_v32, %v3200_v63  ;;  %v3419_v63 = vld [vmem:[%s7188_s9 + $0x70] sm:$0xff] }
 0x7a7   : > { %3835 = vmatmul.mubr.msk.f32.vlgmr.msra.gmra.mrb[8].mxu1 %vm2885_vm5, %v2868_v29  ;;  %vm6798_vm5 = vcmp.lt.s32.totalorder %v2971_v11, 150 }
 0x7a8   : > { %4280 = vmatpush3.bf16.msra.mxu1 %v4279_v16  ;;  %v3220_v16 = vld [vmem:[%s7186_s7 + $0xf0] sm:$0xff]  ;;  %vm3059_vm4 = vmand %vm6793_vm14, %vm6798_vm5  ;;  %vm6870_vm14 = vcmp.ge.s32.totalorder %v2971_v11, 19  ;;  %vm6875_vm5 = vcmp.lt.s32.totalorder %v2971_v11, 44 }
 0x7a9   : > { %4282 = vmatprep.subr.bf16.mxu1 %v4281_v47 }
 0x7ac   : > { %4284 = vmatpush3.bf16.msra.mxu1 %v4283_v19  ;;  %v4307_v19 = vpack.c.bf16 %v3205_v42, %v3204_v24  ;;  %v3227_v24 = vld [vmem:[%s7186_s7 + $0x128] sm:$0xff] }
 0x7ad   : > { %4286 = vmatprep.subr.bf16.mxu1 %v4285_v39 }
 0x7b0   : > { %4288 = vmatpush3.bf16.msra.mxu1 %v4287_v45 }
 0x7b1   : > { %4290 = vmatprep.subr.bf16.mxu1 %v4289_v27 }
 0x7b4   : > { %4292 = vmatpush3.bf16.msra.mxu1 %v4291_v61  ;;  %v3409_v61 = vld [vmem:[%s7188_s9 + $0x20] sm:$0xff] }
 0x7b5   : > { %4294 = vmatprep.subr.bf16.mxu1 %v4293_v48  ;;  %v3412_v48 = vld [vmem:[%s7188_s9 + $0x38] sm:$0xff] }
 0x7b8   : > { %4296 = vmatpush3.bf16.msra.mxu1 %v4295_v57  ;;  %v3416_v57 = vld [vmem:[%s7188_s9 + $0x58] sm:$0xff] }
 0x7b9   : > { %4298 = vmatprep.subr.bf16.mxu1 %v4297_v9 }
 0x7bc   : > { %4300 = vmatpush3.bf16.msra.mxu1 %v4299_v28  ;;  %v3248_v28 = vsub.s32 1, %v6663_v5 }
 0x7bd   : > { %4302 = vmatprep.subr.bf16.mxu1 %v4301_v49  ;;  %v3256_v49 = vsub.s32 3, %v6663_v5 }
 0x87a   : > { %v3836_v25 = vpop.f32.mrb[8].mxu1 }
 0x87b   : > { %v3084_v38 = vrot.slane %v3836_v25, %v6672_v50  ;;  %v2962_v26 = vpop.f32.mrb[9].mxu1  ;;  %v3133_v56 = vcombine.high %v3836_v25, %v3836_v25  ;;  %v3221_v25 = vld [vmem:[%s7186_s7 + $0xf8] sm:$0xff] }
 0x87c   : > { %2975 = vst.msk [vmem:[#allocation4] sm:$0x1] %vm2973_vm0, %v2962_v26  ;;  %v2983_v12 = vrot.slane %v2962_v26, %v6672_v50  ;;  %v3022_v34 = vcombine.high %v2962_v26, %v2962_v26  ;;  %v4305_v47 = vpack.c.bf16 %v3221_v25, %v3220_v16  ;;  %vm6803_vm0 = vcmp.ge.s32.totalorder %v2971_v11, 22 }
 0x87d   : > { %v3091_v6 = vrot.slane %v3084_v38, %v6672_v50  ;;  %v3099_v41 = vcombine.high %v3084_v38, %v3084_v38  ;;  %v3140_v52 = vrot.slane %v3133_v56, %v6672_v50  ;;  %v4303_v38 = vpack.c.bf16 %v3203_v13, %v3202_v53  ;;  %vm3067_vm9 = vmand %vm6803_vm0, %vm6808_vm12 }
 0x87e   : > { %v2984_v59 = vcombine.high %v2983_v12, %v2983_v12  ;;  %v3029_v43 = vrot.slane %v3022_v34, %v6672_v50  ;;  %v2991_v60 = vrot.slane %v2983_v12, %v6672_v50  ;;  %vm3118_vm0 = vcmask 998400   ;;  %vm3112_vm12 = vmand %vm6841_vm13, %vm6846_vm10 }
 0x87f   : > { %v3114_v30 = vcombine.high %v3091_v6, %v3091_v6  ;;  %3092 = vrot.lane.b32.xlu1 %v3091_v6, %s4608_s15  ;;  %s4625_s15 = smov 122   ;;  %v3106_v40 = vrot.slane %v3099_v41, %v6672_v50  ;;  %v3155_v29 = vcombine.high %v3140_v52, %v3140_v52  ;;  %v3147_v26 = vrot.slane %v3140_v52, %v6672_v50  ;;  %v3414_v52 = vld [vmem:[%s7188_s9 + $0x48] sm:$0xff] }
 0x880   : > { %v2998_v55 = vrot.slane %v2984_v59, %v6672_v50  ;;  %v3036_v2 = vrot.slane %v3029_v43, %v6672_v50  ;;  %v3006_v33 = vcombine.high %v2991_v60, %v2991_v60  ;;  %v3044_v62 = vcombine.high %v3029_v43, %v3029_v43  ;;  %4304 = vmatpush3.bf16.msra.mxu1 %v4303_v38  ;;  %v3237_v43 = vld [vmem:[%s7186_s7 + $0x178] sm:$0xff] }
 0x881   : > { %3115 = vrot.lane.b32.xlu0 %v3114_v30, %s4625_s15  ;;  %v3125_v10 = vcombine.high %v3106_v40, %v3106_v40  ;;  %s4629_s15 = smov 75   ;;  %v3162_v8 = vrot.slane %v3155_v29, %v6672_v50  ;;  %4306 = vmatprep.subr.bf16.mxu1 %v4305_v47  ;;  %vm6912_vm13 = vcmp.ge.s32.totalorder %v2971_v11, 94  ;;  %vm6917_vm10 = vcmp.lt.s32.totalorder %v2971_v11, 119  ;;  %v3226_v47 = vld [vmem:[%s7186_s7 + $0x120] sm:$0xff] }
 0x882   : > { %v3014_v22 = vcombine.high %v2998_v55, %v2998_v55  ;;  %v3051_v18 = vrot.slane %v3044_v62, %v6672_v50  ;;  %v3061_v0 = vcombine.high %v3036_v2, %v3036_v2  ;;  %v3170_v50 = vcombine.high %v3147_v26, %v3147_v26 }
 0x883   : > { %2999 = vrot.lane.b32.xlu1 %v2998_v55, %s4626_s13  ;;  %v3178_v12 = vcombine.high %v3162_v8, %v3162_v8  ;;  %v4316_v42 = vpack.c.bf16 %v3227_v24, %v3226_v47  ;;  %v4331_v15 = vpack.c.bf16 %v3237_v43, %v3236_v35  ;;  %v3497_v47 = vld [vmem:[%s7190_s11 + $0x20] sm:$0xff]  ;;  %v3498_v24 = vld [vmem:[%s7190_s11 + $0x28] sm:$0xff]  ;;  %v3508_v35 = vld [vmem:[%s7190_s11 + $0x78] sm:$0xff] }
 0x884   : > { %v3069_v23 = vcombine.high %v3051_v18, %v3051_v18  ;;  %4308 = vmatpush3.bf16.msra.mxu1 %v4307_v19  ;;  %v3229_v19 = vld [vmem:[%s7186_s7 + $0x138] sm:$0xff] }
 0x885   : > { %3107 = vrot.lane.b32.xlu0 %v3106_v40, %s4615_s0  ;;  %4309 = vmatprep.subr.bf16.mxu1 %v4603_v31  ;;  %v3239_v40 = vld [vmem:[%s7186_s7 + $0x188] sm:$0xff] }
 0x887   : > { %3037 = vrot.lane.b32.xlu1 %v3036_v2, %s4613_s23  ;;  %v3408_v2 = vld [vmem:[%s7188_s9 + $0x18] sm:$0xff] }
 0x889   : > { %3007 = vrot.lane.b32.xlu0 %v3006_v33, %s4627_s28  ;;  %s432_s28 = scalar_lea.vmem [#allocation5], %s431_s16 }
 0x88a   : > { %s3594_s13 = sshll.u32 %s432_s28, 4  ;;  %s7139_s13 = int_to_ptr.vmem [resolvable:$true] %s3594_s13 }
 0x88b   : > { %3126 = vrot.lane.b32.xlu1 %v3125_v10, %s4628_s19  ;;  %v3415_v10 = vld [vmem:[%s7188_s9 + $0x50] sm:$0xff]  ;;  %s4517_s22 = scalar_lea.vmem %s7139_s13, 16 }
 0x88c   : > { %v4352_v54 = vpack.c.bf16 %v3416_v57, %v3415_v10  ;;  %p4518_p11 = scmp.ne.s32.totalorder %s7139_s13, %s4517_s22 }
 0x88d   : > { %3015 = vrot.lane.b32.xlu0 %v3014_v22, %s4629_s15 }
 0x88e   : > { %p4519_p12 = pnand %p4518_p11, %p4743_p5 }
 0x88f   : > { %3052 = vrot.lane.b32.xlu1 %v3051_v18, %s7272_s20  ;;  %s4630_s20 = smov 22  }
 0x890   : > { %p4520_p13 = pneg %p4519_p12 }
 0x891   : > { %3062 = vrot.lane.b32.xlu0 %v3061_v0, %s4630_s20  ;;  %v3223_v0 = vld [vmem:[%s7186_s7 + $0x108] sm:$0xff] }
 0x892   : > { %v4310_v25 = vpack.c.bf16 %v3223_v0, %v3222_v46  ;;  %v3493_v0 = vld [vmem:[%s7190_s11] sm:$0xff] }
 0x893   : > { %3070 = vrot.lane.b32.xlu1 %v3069_v23, %s4631_s24  ;;  %v3225_v23 = vld [vmem:[%s7186_s7 + $0x118] sm:$0xff] }
 0x895   : > { %3148 = vrot.lane.b32.xlu0 %v3147_v26, %s4632_s27 }
 0x897   : > { %3179 = vrot.lane.b32.xlu1 %v3178_v12, %s4633_s25  ;;  %v3228_v12 = vld [vmem:[%s7186_s7 + $0x130] sm:$0xff] }
 0x899   : > { %3163 = vrot.lane.b32.xlu0 %v3162_v8, %s4622_s21  ;;  %v3224_v8 = vld [vmem:[%s7186_s7 + $0x110] sm:$0xff]  ;;  %s3677_s21 = sshll.u32 %s4726_s29, 4  ;;  %s4634_s29 = smov [#allocation5]  }
 0x89a   : > { %v4313_v26 = vpack.c.bf16 %v3225_v23, %v3224_v8  ;;  %v3495_v23 = vld [vmem:[%s7190_s11 + $0x10] sm:$0xff]  ;;  %s7137_s19 = scalar_lea.hbm %s7375_s17, %s3677_s21  ;;  %s4521_s20 = sshll.u32 %s4634_s29, 4  ;;  %s4522_s20 = int_to_ptr.vmem [resolvable:$false] %s4521_s20 }
 0x89b   : > { %3171 = vrot.lane.b32.xlu1 %v3170_v50, %s7286_s12  ;;  %v4319_v50 = vpack.c.bf16 %v3229_v19, %v3228_v12  ;;  %v3499_v12 = vld [vmem:[%s7190_s11 + $0x30] sm:$0xff]  ;;  %s7374_s12 = sld [smem:[#allocation16_spill]]  ;;  %s4523_s24 = scalar_lea.vmem %s4522_s20, 32 }
 0x89c   : > { %p4524_p0 = scmp.lt.s32.totalorder %s7139_s13, %s4522_s20  ;;  %p4525_p1 = scmp.lt.s32.totalorder %s4523_s24, %s4517_s22 }
 0x89e   : > { %p4526_p2 = por %p4525_p1, %p4524_p0 }
 0x8a0   : > { %p4527_p3 = pnand %p4526_p2, %p4520_p13 }
 0x8f1   : > { %v3093_v6 = vpop.permute.xlu1 %3092 }
 0x8f3   : > { %v3116_v34 = vpop.permute.xlu0 %3115 }
 0x8f4   : > { %v3117_v44 = vrot.slane %v3116_v34, 7 }
 0x8f5   : > { %v3000_v59 = vpop.permute.xlu1 %2999 }
 0x8f6   : > { %3005 = vst.msk [vmem:[#allocation4] sm:$0x1] %vm3004_vm1, %v3000_v59  ;;  %vm6818_vm1 = vcmp.lt.s32.totalorder %v2971_v11, 72  ;;  %v3119_v22 = vsel %vm3118_vm0, %v3117_v44, %v3116_v34  ;;  %v3231_v34 = vld [vmem:[%s7186_s7 + $0x148] sm:$0xff]  ;;  %v4343_v44 = vpack.c.bf16 %v3410_v37, %v3409_v61 }
 0x8f7   : > { %v3108_v41 = vpop.permute.xlu0 %3107  ;;  %vm3075_vm11 = vmand %vm6813_vm7, %vm6818_vm1  ;;  %vm6884_vm7 = vcmp.ge.s32.totalorder %v2971_v11, 44  ;;  %vm6889_vm1 = vcmp.lt.s32.totalorder %v2971_v11, 69 }
 0x8f9   : > { %v3038_v30 = vpop.permute.xlu1 %3037 }
 0x8fb   : > { %v3008_v17 = vpop.permute.xlu0 %3007 }
 0x8fc   : > { %3013 = vst.msk [vmem:[#allocation4] sm:$0x1] %vm3012_vm6, %v3008_v17  ;;  %vm6832_vm6 = vcmp.lt.s32.totalorder %v2971_v11, 97 }
 0x8fd   : > { %v3127_v55 = vpop.permute.xlu1 %3126 }
 0x8ff   : > { %v3016_v7 = vpop.permute.xlu0 %3015 }
 0x900   : > { %3021 = vst.msk [vmem:[#allocation4] sm:$0x1] %vm3020_vm8, %v3016_v7  ;;  %vm6856_vm8 = vcmp.ge.s32.totalorder %v2971_v11, 122  ;;  %v3235_v7 = vld [vmem:[%s7186_s7 + $0x168] sm:$0xff] }
 0x901   : > { %3043 = vst.msk [vmem:[#allocation4] sm:$0x1] %vm3042_vm15, %v3038_v30  ;;  %v3053_v4 = vpop.permute.xlu1 %3052  ;;  %vm6861_vm15 = vcmp.lt.s32.totalorder %v2971_v11, 147  ;;  %v3233_v30 = vld [vmem:[%s7186_s7 + $0x158] sm:$0xff] }
 0x902   : > { %v3054_v39 = vrot.slane %v3053_v4, 7 }
 0x903   : > { %v3063_v58 = vpop.permute.xlu0 %3062 }
 0x904   : > { %v3055_v27 = vsel %vm575_vm2, %v3054_v39, %v3053_v4  ;;  %vm3097_vm2 = vmand %vm6827_vm3, %vm6832_vm6  ;;  %vm6898_vm3 = vcmp.ge.s32.totalorder %v2971_v11, 69  ;;  %vm6903_vm6 = vcmp.lt.s32.totalorder %v2971_v11, 94  ;;  %v3238_v4 = vld [vmem:[%s7186_s7 + $0x180] sm:$0xff]  ;;  %v3252_v39 = vsub.s32 2, %v6663_v5  ;;  %v3407_v5 = vld [vmem:[%s7188_s9 + $0x10] sm:$0xff] }
 0x905   : > { %3060 = vst.msk [vmem:[#allocation4] sm:$0x3] %vm3059_vm4, %v3055_v27  ;;  %v3071_v33 = vpop.permute.xlu1 %3070  ;;  %vm3123_vm4 = vmand %vm6856_vm8, %vm6861_vm15  ;;  %vm6926_vm8 = vcmp.ge.s32.totalorder %v2971_v11, 119  ;;  %vm3186_vm15 = vcmp.lt.s32.totalorder %v2971_v11, 144  ;;  %v4334_v60 = vpack.c.bf16 %v3239_v40, %v3238_v4  ;;  %v4340_v27 = vpack.c.bf16 %v3408_v2, %v3407_v5 }
 0x906   : > { %3068 = vst.msk [vmem:[#allocation4 + $0x1] sm:$0x1] %vm3067_vm9, %v3063_v58  ;;  %vm3131_vm9 = vmand %vm6870_vm14, %vm6875_vm5  ;;  %vm3182_vm14 = vcmask 973824   ;;  %v3406_v58 = vld [vmem:[%s7188_s9 + $0x8] sm:$0xff] }
 0x907   : > { %3076 = vst.msk [vmem:[#allocation4 + $0x1] sm:$0x1] %vm3075_vm11, %v3071_v33  ;;  %v3149_v62 = vpop.permute.xlu0 %3148  ;;  %vm3153_vm11 = vmand %vm6884_vm7, %vm6889_vm1  ;;  %vm7372_vm7 = vmmov 0   ;;  %v4337_v56 = vpack.c.bf16 %v3406_v58, %v3405_v20  ;;  %v3411_v33 = vld [vmem:[%s7188_s9 + $0x30] sm:$0xff] }
 0x908   : > { %3098 = vst.msk [vmem:[#allocation4 + $0x1] sm:$0x1] %vm3097_vm2, %v3093_v6  ;;  %vm3168_vm2 = vmand %vm6898_vm3, %vm6903_vm6  ;;  %v3230_v6 = vld [vmem:[%s7186_s7 + $0x140] sm:$0xff]  ;;  %v4346_v3 = vpack.c.bf16 %v3412_v48, %v3411_v33 }
 0x909   : > { %3113 = vst.msk [vmem:[#allocation4 + $0x1] sm:$0x1] %vm3112_vm12, %v3108_v41  ;;  %v3180_v9 = vpop.permute.xlu1 %3179  ;;  %vm3176_vm5 = vmand %vm6912_vm13, %vm6917_vm10  ;;  %vm3261_vm12 = vcmask 130048   ;;  %v4322_v59 = vpack.c.bf16 %v3231_v34, %v3230_v6  ;;  %v3232_v41 = vld [vmem:[%s7186_s7 + $0x150] sm:$0xff]  ;;  %v3502_v6 = vld [vmem:[%s7190_s11 + $0x48] sm:$0xff] }
 0x90a   : > { %3124 = vst.msk [vmem:[#allocation4 + $0x1] sm:$0x3] %vm3123_vm4, %v3119_v22  ;;  %v3181_v32 = vrot.slane %v3180_v9, 7  ;;  %vm3187_vm0 = vmand %vm6926_vm8, %vm3186_vm15  ;;  %v4325_v17 = vpack.c.bf16 %v3233_v30, %v3232_v41  ;;  %v3418_v22 = vld [vmem:[%s7188_s9 + $0x68] sm:$0xff]  ;;  %v3504_v41 = vld [vmem:[%s7190_s11 + $0x58] sm:$0xff] }
 0x90b   : > { %3132 = vst.msk [vmem:[#allocation4 + $0x2] sm:$0x1] %vm3131_vm9, %v3127_v55  ;;  %v3164_v29 = vpop.permute.xlu0 %3163  ;;  %v3234_v55 = vld [vmem:[%s7186_s7 + $0x160] sm:$0xff] }
 0x90c   : > { %3154 = vst.msk [vmem:[#allocation4 + $0x2] sm:$0x1] %vm3153_vm11, %v3149_v62  ;;  %v3183_v18 = vsel %vm3182_vm14, %v3181_v32, %v3180_v9  ;;  %v4328_v1 = vpack.c.bf16 %v3235_v7, %v3234_v55  ;;  %v4349_v62 = vpack.c.bf16 %v3414_v52, %v3413_v36  ;;  %v4355_v9 = vpack.c.bf16 %v3418_v22, %v3417_v51  ;;  %v3420_v32 = vld [vmem:[%s7188_s9 + $0x78] sm:$0xff]  ;;  %v3506_v55 = vld [vmem:[%s7190_s11 + $0x68] sm:$0xff] }
 0x90d   : > { %3169 = vst.msk [vmem:[#allocation4 + $0x2] sm:$0x1] %vm3168_vm2, %v3164_v29  ;;  %v3172_v11 = vpop.permute.xlu1 %3171  ;;  %v4358_v29 = vpack.c.bf16 %v3420_v32, %v3419_v63 }
 0x90e   : > { %3177 = vst.msk [vmem:[#allocation4 + $0x2] sm:$0x1] %vm3176_vm5, %v3172_v11 }
 0x90f   : > { %3188 = vst.msk [vmem:[#allocation4 + $0x2] sm:$0x3] %vm3187_vm0, %v3183_v18 }
 0x916   : > { %v3189_v53 = vld [vmem:[#allocation4] sm:$0xf] }
 0x917   : > { %v3249_v13 = vrot.slane %v3189_v53, %v3248_v28  ;;  %v3245_v16 = vrot.slane %v3189_v53, %v3244_v14  ;;  %v3257_v38 = vrot.slane %v3189_v53, %v3256_v49  ;;  %v3253_v45 = vrot.slane %v3189_v53, %v3252_v39  ;;  %v3240_v14 = vld [vmem:[%s7187_s8] sm:$0x1]  ;;  %v3494_v49 = vld [vmem:[%s7190_s11 + $0x8] sm:$0xff] }
 0x919   : > { %3328 = vmatprep.mubr.f32.mxu1 %v3249_v13 }
 0x91a   : > { %3329 = vmatmul.mubr.f32.vlgmr.msra.gmra.mrb[10].mxu1 %v3245_v16 }
 0x91b   : > { %4311 = vmatpush1.bf16.msra.mxu1 %v4310_v25  ;;  %3676 = vmatprep.mubr.msk.f32.mxu1 %vm3261_vm12, %v3257_v38  ;;  %v4361_v25 = vpack.c.bf16 %v3494_v49, %v3493_v0  ;;  %v3496_v38 = vld [vmem:[%s7190_s11 + $0x18] sm:$0xff] }
 0x91c   : > { %4312 = vmatprep.subr.bf16.mxu1 %v4603_v31 }
 0x91f   : > { %4314 = vmatpush1.bf16.msra.mxu1 %v4313_v26  ;;  %v4364_v26 = vpack.c.bf16 %v3496_v38, %v3495_v23 }
 0x920   : > { %4315 = vmatprep.subr.bf16.mxu1 %v4603_v31 }
 0x923   : > { %4317 = vmatpush1.bf16.msra.mxu1 %v4316_v42  ;;  %v4367_v42 = vpack.c.bf16 %v3498_v24, %v3497_v47 }
 0x924   : > { %4318 = vmatprep.subr.bf16.mxu1 %v4603_v31 }
 0x927   : > { %4320 = vmatpush1.bf16.msra.mxu1 %v4319_v50  ;;  %v3501_v50 = vld [vmem:[%s7190_s11 + $0x40] sm:$0xff] }
 0x928   : > { %4321 = vmatprep.subr.bf16.mxu1 %v4603_v31  ;;  %v4373_v34 = vpack.c.bf16 %v3502_v6, %v3501_v50 }
 0x92b   : > { %4323 = vmatpush1.bf16.msra.mxu1 %v4322_v59  ;;  %v3503_v59 = vld [vmem:[%s7190_s11 + $0x50] sm:$0xff] }
 0x92c   : > { %4324 = vmatprep.subr.bf16.mxu1 %v4603_v31  ;;  %v4376_v30 = vpack.c.bf16 %v3504_v41, %v3503_v59 }
 0x92f   : > { %4326 = vmatpush1.bf16.msra.mxu1 %v4325_v17  ;;  %v3505_v17 = vld [vmem:[%s7190_s11 + $0x60] sm:$0xff] }
 0x930   : > { %4327 = vmatprep.subr.bf16.mxu1 %v4603_v31  ;;  %v4379_v7 = vpack.c.bf16 %v3506_v55, %v3505_v17 }
 0x933   : > { %4329 = vmatpush1.bf16.msra.mxu1 %v4328_v1  ;;  %v3507_v1 = vld [vmem:[%s7190_s11 + $0x70] sm:$0xff] }
 0x934   : > { %4330 = vmatprep.subr.bf16.mxu1 %v4603_v31  ;;  %v4382_v43 = vpack.c.bf16 %v3508_v35, %v3507_v1 }
 0x937   : > { %4332 = vmatpush1.bf16.msra.mxu1 %v4331_v15  ;;  %v3421_v15 = vld [vmem:[%s7189_s10] sm:$0x1] }
 0x938   : > { %4333 = vmatprep.subr.bf16.mxu1 %v4603_v31 }
 0x93b   : > { %4335 = vmatpush1.bf16.msra.mxu1 %v4334_v60 }
 0x93c   : > { %4336 = vmatprep.subr.bf16.mxu1 %v4603_v31 }
 0x93e   : > { %3399 = vmatmul.mubr.f32.vlgmr.msra.gmra.mrb[12].mxu1 %v3253_v45 }
 0x93f   : > { %3869 = vmatprep.mubr.msk.f32.mxu1 %vm7372_vm7, %v4600_v21  ;;  %4338 = vmatpush3.bf16.msra.mxu1 %v4337_v56 }
 0x940   : > { %4339 = vmatprep.subr.bf16.mxu1 %v4603_v31 }
 0x943   : > { %4341 = vmatpush3.bf16.msra.mxu1 %v4340_v27 }
 0x944   : > { %4342 = vmatprep.subr.bf16.mxu1 %v4603_v31 }
 0x947   : > { %4344 = vmatpush3.bf16.msra.mxu1 %v4343_v44 }
 0x948   : > { %4345 = vmatprep.subr.bf16.mxu1 %v4603_v31 }
 0x94b   : > { %4347 = vmatpush3.bf16.msra.mxu1 %v4346_v3 }
 0x94c   : > { %4348 = vmatprep.subr.bf16.mxu1 %v4603_v31 }
 0x94f   : > { %4350 = vmatpush3.bf16.msra.mxu1 %v4349_v62 }
 0x950   : > { %4351 = vmatprep.subr.bf16.mxu1 %v4603_v31 }
 0x953   : > { %4353 = vmatpush3.bf16.msra.mxu1 %v4352_v54 }
 0x954   : > { %4354 = vmatprep.subr.bf16.mxu1 %v4603_v31 }
 0x957   : > { %4356 = vmatpush3.bf16.msra.mxu1 %v4355_v9 }
 0x958   : > { %4357 = vmatprep.subr.bf16.mxu1 %v4603_v31 }
 0x95b   : > { %4359 = vmatpush3.bf16.msra.mxu1 %v4358_v29 }
 0x95c   : > { %4360 = vmatprep.subr.bf16.mxu1 %v4603_v31 }
 0x9ed   : > { %v3742_v11 = vpop.f32.mrb[10].mxu1 }
 0x9ee   : > { %v3743_v18 = vpop.f32.mrb[11].mxu1 }
 0x9ef   : > { %v3744_v28 = vadd.f32 %v3743_v18, %v3742_v11 }
 0x9f1   : > { %v3331_v46 = vadd.f32 %v3744_v28, %v3240_v14 }
 0xa11   : > { %v3400_v53 = vpop.f32.mrb[12].mxu1 }
 0xa12   : > { %v3401_v13 = vadd.f32 %v3400_v53, %v3331_v46  ;;  %v3402_v16 = vpop.f32.mrb[13].mxu1 }
 0xa14   : > { %v3404_v8 = vmax.f32 %v3401_v13, 0.0 }
 0xa16   : > { %3870 = vmatmul.mubr.f32.vlgmr.msra.gmra.mrb[14].mxu1 %v3404_v8 }
 0xa17   : > { %4362 = vmatpush3.bf16.msra.mxu1 %v4361_v25  ;;  %3904 = vmatprep.mubr.msk.f32.mxu1 %vm7372_vm7, %v4600_v21  ;;  %v3500_v21 = vld [vmem:[%s7190_s11 + $0x38] sm:$0xff] }
 0xa18   : > { %4363 = vmatprep.subr.bf16.mxu1 %v4603_v31  ;;  %v4370_v19 = vpack.c.bf16 %v3500_v21, %v3499_v12 }
 0xa1b   : > { %4365 = vmatpush3.bf16.msra.mxu1 %v4364_v26 }
 0xa1c   : > { %4366 = vmatprep.subr.bf16.mxu1 %v4603_v31 }
 0xa1f   : > { %4368 = vmatpush3.bf16.msra.mxu1 %v4367_v42 }
 0xa20   : > { %4369 = vmatprep.subr.bf16.mxu1 %v4603_v31 }
 0xa23   : > { %4371 = vmatpush3.bf16.msra.mxu1 %v4370_v19 }
 0xa24   : > { %4372 = vmatprep.subr.bf16.mxu1 %v4603_v31 }
 0xa27   : > { %4374 = vmatpush3.bf16.msra.mxu1 %v4373_v34 }
 0xa28   : > { %4375 = vmatprep.subr.bf16.mxu1 %v4603_v31 }
 0xa2b   : > { %4377 = vmatpush3.bf16.msra.mxu1 %v4376_v30 }
 0xa2c   : > { %4378 = vmatprep.subr.bf16.mxu1 %v4603_v31 }
 0xa2f   : > { %4380 = vmatpush3.bf16.msra.mxu1 %v4379_v7 }
 0xa30   : > { %4381 = vmatprep.subr.bf16.mxu1 %v4603_v31  ;;  %v3509_v31 = vld [vmem:[%s7374_s12] sm:$0x1] }
 0xa33   : > { %4383 = vmatpush3.bf16.msra.mxu1 %v4382_v43 }
 0xae9   : > { %v3488_v4 = vpop.f32.mrb[14].mxu1 }
 0xaea   : > { %v3489_v40 = vadd.f32 %v3488_v4, %v3421_v15  ;;  %v3871_v60 = vpop.f32.mrb[15].mxu1 }
 0xaec   : > { %v3492_v39 = vmax.f32 %v3489_v40, 0.0 }
 0xaee   : > { %3905 = vmatmul.mubr.f32.vlgmr.msra.gmra.mrb[16].mxu1 %v3492_v39 }
 0xbc1   : > { %v3576_v45 = vpop.f32.mrb[16].mxu1 }
 0xbc2   : > { %v3577_v20 = vadd.f32 %v3576_v45, %v3509_v31  ;;  %v3906_v58 = vpop.f32.mrb[17].mxu1 }
 0xbc4   : > { %3580 = vst [vmem:[%s432_s28] sm:$0x1] %v3577_v20 }
 0xbc5   : > { %4530 = shalt.err (!%p4527_p3)
}
 0xbc6   : > { %s4531_s18 = scalar_lea.hbm %s7137_s19, 16  ;;  %s4535_s27 = scalar_lea.hbm %s7375_s17, 32 }
 0xbc7   : > { %p4532_p4 = scmp.ne.s32.totalorder %s7137_s19, %s4531_s18  ;;  %p4536_p9 = scmp.lt.u32.totalorder %s7137_s19, %s7375_s17 }
 0xbc8   : > { %p4537_p10 = scmp.lt.u32.totalorder %s4535_s27, %s4531_s18  ;;  %p4539_p12 = scmp.lt.u32.totalorder %s4531_s18, %s7137_s19 }
 0xbc9   : > { %p4533_p7 = pnand %p4532_p4, %p4743_p5 }
 0xbca   : > { %p4538_p11 = por %p4537_p10, %p4536_p9 }
 0xbcb   : > { %p4534_p8 = pneg %p4533_p7 }
 0xbcc   : > { %p4540_p13 = por %p4539_p12, %p4538_p11 }
 0xbce   : > { %p4541_p0 = pnand %p4540_p13, %p4534_p8 }
 0xbd0   : > { %4544 = shalt.err (!%p4541_p0)
}
 0xbd1   : > { %4390 = dma.vmem_to_hbm [thread:$0]  (%p4743_p5), %s7139_s13, 16, %s7137_s19, %s3582_s30  }
 0xbd2 PF: > { %s7376_s21 = sld [smem:[#allocation10_spill]]  ;;  %s7377_s28 = sld [smem:[#allocation8_spill]] }
 0xbd8   : > { %p4396_p1 = scmp.ge.s32.totalorder %s7376_s21, 2  ;;  %s3606_s14 = sand.u32 1, %s7377_s28  }
 0xbd9   : > { %s3607_s22 = scalar_lea.sflag [#allocation6], %s3606_s14 }
 0xbda   : > { %p4393_p2 = pnand %p4396_p1, %p4747_p6 }
 0xbdc   : > { %4562 = dma.done.wait (!%p4393_p2), %s3607_s22, 16  }
 0xbdd   : > { %4564 = vsyncadd (!%p4393_p2), %s3607_s22, 4294967280  ;;  %s7379_s28 = sld [smem:[#allocation11_spill]]  ;;  %s7380_s29 = sld [smem:[#allocation9_spill]] }
 0xbde   : > { %s7381_s27 = sld [smem:[#allocation12_spill]]  ;;  %s7382_s25 = smov %s4571_s26 }
 0xbe3   : > { %p23_p3 = scmp.ge.s32.totalorder %s7379_s28, 4   ;;  %s7383_s26 = smov %s7380_s29 }
 0xbe5   :  { %25 = sbr.rel (!%p23_p3) target bundleno = 7 (0x7), region = 107 }
 0xbec   :  { %3611 = vsyncpa [#allocation6], 1 }
 0xbed   :  { %3613 = vsyncpa [#allocation6 + $0x1], 1 }

</bundles_post_ra>
